<compile_context>
chip_gen: v5e
topology: v5e:2x2
jax: 0.10.0
libtpu: 0.0.40
codegen_flags: <defaults>
</compile_context>

<pallas_src>
import functools
import math

import jax
import jax.numpy as jnp
from jax.experimental import pallas as pl
from jax.experimental.pallas import tpu as pltpu


def _fused_gru_kernel(sel_ref, x_ref, wi0_ref, wh0_ref, wc1_ref,
                      bgi0_ref, bhn0_ref, bc1_ref,
                      out_ref, gi0_buf, h1seq_buf, *, T, B, H):
    """grid=(1,): both GRU layers, all T steps, run inside one kernel body.

    sel_ref  : (T*B, H)  f32, one-hot over t (per batch row), pre-broadcast to lane width H
    x_ref    : (T*B, D)  bf16, pre-masked time-major input, rows ordered t*B + b
    wi0_ref  : (D, 3H)   bf16, layer-0 W_ih^T, gate order [r | z | n]
    wh0_ref  : (H, 3H)   bf16, layer-0 W_hh^T
    wc1_ref  : (2H, 4H)  bf16, layer-1 combined [W_ih^T ; W_hh^T] -> [rz | gi_n | gh_n]
    bgi0_ref : (1, 3H)   f32, layer-0 b_ih with b_hh r/z folded in
    bhn0_ref : (1, H)    f32, layer-0 b_hh_n
    bc1_ref  : (1, 4H)   f32, layer-1 bias [b_ih_rz + b_hh_rz | b_ih_n | b_hh_n]
    out_ref  : (B, H)    f32, layer-1 hidden at the last valid timestep
    gi0_buf  : VMEM (T*B, 3H) f32 — hoisted layer-0 input-side gate pre-activations
    h1seq_buf: VMEM (T*B, H)  f32 — layer-1 hidden sequence (for post-loop selection)
    """
    # Layer-0 input-side GEMM hoisted out of the recurrence (bf16 operands, f32 acc).
    gi0_buf[...] = (
        jnp.dot(x_ref[...], wi0_ref[...], preferred_element_type=jnp.float32)
        + bgi0_ref[...]
    )

    wh0 = wh0_ref[...]            # (H, 3H) bf16
    wc1 = wc1_ref[...]            # (2H, 4H) bf16
    bhn0 = bhn0_ref[...]          # (1, H)  f32
    bc1 = bc1_ref[...]            # (1, 4H) f32

    h0 = jnp.zeros((B, H), jnp.float32)
    h1 = jnp.zeros((B, H), jnp.float32)

    def layer0_step(t, h_prev):
        gi = gi0_buf[t * B:(t + 1) * B, :]                                   # (B, 3H)
        gh = jnp.dot(h_prev.astype(jnp.bfloat16), wh0,
                     preferred_element_type=jnp.float32)                     # (B, 3H)
        r = jax.nn.sigmoid(gi[:, :H] + gh[:, :H])
        z = jax.nn.sigmoid(gi[:, H:2 * H] + gh[:, H:2 * H])
        n = jnp.tanh(gi[:, 2 * H:] + r * (gh[:, 2 * H:] + bhn0))
        return (1.0 - z) * n + z * h_prev

    def layer1_step(x_in, h_prev):
        # K-fused input+hidden matmul: (B, 2H) @ (2H, 4H) -> [rz | gi_n | gh_n(+b_hn)]
        lhs = jnp.concatenate([x_in, h_prev], axis=1).astype(jnp.bfloat16)   # (B, 2H)
        g = jnp.dot(lhs, wc1, preferred_element_type=jnp.float32) + bc1      # (B, 4H)
        r = jax.nn.sigmoid(g[:, :H])
        z = jax.nn.sigmoid(g[:, H:2 * H])
        n = jnp.tanh(g[:, 2 * H:3 * H] + r * g[:, 3 * H:])
        return (1.0 - z) * n + z * h_prev

    # One-step-lagged wavefront: at iteration t, layer 0 runs step t (needs h0_{t-1})
    # and layer 1 runs step t-1 (needs h0_{t-1}, h1_{t-2}); both halves depend only on
    # values from before the iteration, so the LLO scheduler can interleave their
    # matmuls and EUP gate work. Fully unrolled (T is small, static slices).
    for t in range(T + 1):
        h0_lag = h0                              # h0_{t-1}
        if t < T:
            h0 = layer0_step(t, h0_lag)          # -> h0_t
        if t >= 1:
            h1 = layer1_step(h0_lag, h1)         # layer-1 step t-1 -> h1_{t-1}
            h1seq_buf[(t - 1) * B:t * B, :] = h1

    # Post-loop last-valid selection (off the serial chain, full-lane operands).
    acc = h1seq_buf[0:B, :] * sel_ref[0:B, :]
    for t in range(1, T):
        acc = acc + h1seq_buf[t * B:(t + 1) * B, :] * sel_ref[t * B:(t + 1) * B, :]
    out_ref[...] = acc


def temporal_gru_aggregator(x, mask, w_ih, w_hh, b_ih, b_hh):
    """x: (B, T, D) f32, mask: (B, T) bool (True = padded).

    w_ih: (L, 3H, D), w_hh: (L, 3H, H), b_ih/b_hh: (L, 3H) — PyTorch nn.GRU layout.
    Returns (B, H): GRU output at the last non-masked timestep of each sequence
    (PyTorch negative-index semantics: an all-masked row selects t = T-1).
    Requires L == 2 and D == H (module defaults: 128/128, num_layers=2).
    """
    B, T, D = x.shape
    L, threeH, _ = w_ih.shape
    H = threeH // 3
    assert L == 2, "fused wavefront kernel assumes num_layers == 2 (module default)"
    assert D == H, "kernel assumes input_size == hidden_size (module default 128/128)"

    f32, bf16 = jnp.float32, jnp.bfloat16

    # --- glue: pre-mask, go time-major, flatten (t, b) -> rows, cast to bf16 ---
    keep = (~mask).astype(x.dtype).T[:, :, None]                          # (T, B, 1)
    x_flat = (jnp.transpose(x, (1, 0, 2)) * keep).reshape(T * B, D).astype(bf16)

    # --- glue: one-hot selector of the last non-masked timestep, lane-dense ---
    flipped = jnp.flip(mask.astype(f32), axis=1)
    last_idx = (T - 1) - jnp.argmin(flipped, axis=1)                      # == -argmin(...) - 1
    sel = (jnp.arange(T)[:, None] == last_idx[None, :]).astype(f32)       # (T, B)
    sel_full = jnp.broadcast_to(sel.reshape(T * B, 1), (T * B, H))        # (T*B, H)

    # --- glue: layer-0 weights (pre-transposed, bf16) + folded biases (f32) ---
    wi0_t = jnp.transpose(w_ih[0]).astype(bf16)                           # (D, 3H)
    wh0_t = jnp.transpose(w_hh[0]).astype(bf16)                           # (H, 3H)
    bgi0 = jnp.concatenate(
        [b_ih[0, :2 * H] + b_hh[0, :2 * H], b_ih[0, 2 * H:]])[None, :]    # (1, 3H)
    bhn0 = b_hh[0, 2 * H:][None, :]                                       # (1, H)

    # --- glue: layer-1 combined weight (2H, 4H): cols = [rz | gi_n | gh_n] ---
    wi1_t = jnp.transpose(w_ih[1])                                        # (H, 3H)
    wh1_t = jnp.transpose(w_hh[1])                                        # (H, 3H)
    zHH = jnp.zeros((H, H), f32)
    wc1 = jnp.concatenate([
        jnp.concatenate([wi1_t[:, :2 * H], wi1_t[:, 2 * H:], zHH], axis=1),
        jnp.concatenate([wh1_t[:, :2 * H], zHH, wh1_t[:, 2 * H:]], axis=1),
    ], axis=0).astype(bf16)                                               # (2H, 4H)
    bc1 = jnp.concatenate(
        [b_ih[1, :2 * H] + b_hh[1, :2 * H], b_ih[1, 2 * H:], b_hh[1, 2 * H:]]
    )[None, :]                                                            # (1, 4H)

    kernel = functools.partial(_fused_gru_kernel, T=T, B=B, H=H)

    grid_spec = pltpu.PrefetchScalarGridSpec(
        num_scalar_prefetch=0,
        grid=(1,),
        in_specs=[
            pl.BlockSpec((T * B, H), lambda i: (0, 0)),          # sel (lane-dense)
            pl.BlockSpec((T * B, D), lambda i: (0, 0)),          # x (bf16)
            pl.BlockSpec((D, threeH), lambda i: (0, 0)),         # W_ih0^T (bf16)
            pl.BlockSpec((H, threeH), lambda i: (0, 0)),         # W_hh0^T (bf16)
            pl.BlockSpec((2 * H, 4 * H), lambda i: (0, 0)),      # W_c1 combined (bf16)
            pl.BlockSpec((1, threeH), lambda i: (0, 0)),         # folded layer-0 bias
            pl.BlockSpec((1, H), lambda i: (0, 0)),              # layer-0 b_hh_n
            pl.BlockSpec((1, 4 * H), lambda i: (0, 0)),          # layer-1 combined bias
        ],
        out_specs=pl.BlockSpec((B, H), lambda i: (0, 0)),        # (B, H) result
        scratch_shapes=[
            pltpu.VMEM((T * B, threeH), jnp.float32),            # gi0_buf
            pltpu.VMEM((T * B, H), jnp.float32),                 # h1seq_buf
        ],
    )

    return pl.pallas_call(
        kernel,
        out_shape=jax.ShapeDtypeStruct((B, H), jnp.float32),
        grid_spec=grid_spec,
        compiler_params=pltpu.CompilerParams(
            dimension_semantics=("arbitrary",),
            vmem_limit_bytes=32 * 1024 * 1024,
        ),
    )(sel_full, x_flat, wi0_t, wh0_t, wc1, bgi0, bhn0, bc1)


def _ref_forward(x, mask, w_ih, w_hh, b_ih, b_hh):
    """Pure-JAX f32 reference of the PyTorch forward (eval mode)."""
    B, T, D = x.shape
    L, threeH, _ = w_ih.shape
    H = threeH // 3
    hp = jax.lax.Precision.HIGHEST
    seq = x * (~mask)[:, :, None].astype(x.dtype)
    for l in range(L):
        Wi, Wh, bi, bh = w_ih[l], w_hh[l], b_ih[l], b_hh[l]

        def step(h, xt, Wi=Wi, Wh=Wh, bi=bi, bh=bh):
            gi = jnp.dot(xt, Wi.T, precision=hp) + bi
            gh = jnp.dot(h, Wh.T, precision=hp) + bh
            r = jax.nn.sigmoid(gi[:, :H] + gh[:, :H])
            z = jax.nn.sigmoid(gi[:, H:2 * H] + gh[:, H:2 * H])
            n = jnp.tanh(gi[:, 2 * H:] + r * gh[:, 2 * H:])
            h_new = (1.0 - z) * n + z * h
            return h_new, h_new

        h0 = jnp.zeros((B, H), x.dtype)
        _, ys = jax.lax.scan(step, h0, jnp.swapaxes(seq, 0, 1))
        seq = jnp.swapaxes(ys, 0, 1)
    flipped = jnp.flip(mask.astype(jnp.float32), axis=1)
    last_idx = (T - 1) - jnp.argmin(flipped, axis=1)
    return seq[jnp.arange(B), last_idx]


if __name__ == "__main__":
    B, T, D, H, L = 8, 8, 128, 128, 2   # input_size = hidden_size = 128, num_layers = 2

    key = jax.random.PRNGKey(0)
    k0, k1, k2, k3, k4 = jax.random.split(key, 5)

    x = jax.random.normal(k0, (B, T, D), dtype=jnp.float32)
    lengths = jnp.array([8, 5, 3, 8, 1, 6, 7, 2], dtype=jnp.int32)
    mask = jnp.arange(T)[None, :] >= lengths[:, None]                 # True = padding

    # Deterministic GRU parameter init (PyTorch-style U(-1/sqrt(H), 1/sqrt(H))).
    scale = 1.0 / math.sqrt(H)
    w_ih = jax.random.uniform(k1, (L, 3 * H, D), jnp.float32, -scale, scale)
    w_hh = jax.random.uniform(k2, (L, 3 * H, H), jnp.float32, -scale, scale)
    b_ih = jax.random.uniform(k3, (L, 3 * H), jnp.float32, -scale, scale)
    b_hh = jax.random.uniform(k4, (L, 3 * H), jnp.float32, -scale, scale)

    out = temporal_gru_aggregator(x, mask, w_ih, w_hh, b_ih, b_hh)
    out = jax.block_until_ready(out)

    ref = _ref_forward(x, mask, w_ih, w_hh, b_ih, b_hh)
    assert out.shape == (B, H)
    # Tolerance sized for bf16 MXU operands (f32 accumulation) across 2 layers x 8
    # recurrent steps vs. the f32 HIGHEST-precision reference.
    err = float(jnp.max(jnp.abs(out - ref)))
    assert jnp.allclose(out, ref, atol=2e-2, rtol=2e-2), f"max abs err = {err}"

    print("KERNEL_OK")
</pallas_src>

<mosaic_0001>
module attributes {stable_mosaic.version = 11 : i64} {
  func.func @_fused_gru_kernel(%arg0: i32, %arg1: memref<64x128xf32, #tpu.memory_space<vmem>>, %arg2: memref<64x128xbf16, #tpu.memory_space<vmem>>, %arg3: memref<128x384xbf16, #tpu.memory_space<vmem>>, %arg4: memref<128x384xbf16, #tpu.memory_space<vmem>>, %arg5: memref<256x512xbf16, #tpu.memory_space<vmem>>, %arg6: memref<1x384xf32, #tpu.memory_space<vmem>>, %arg7: memref<1x128xf32, #tpu.memory_space<vmem>>, %arg8: memref<1x512xf32, #tpu.memory_space<vmem>>, %arg9: memref<8x128xf32, #tpu.memory_space<vmem>>, %arg10: memref<64x384xf32, #tpu.memory_space<vmem>>, %arg11: memref<64x128xf32, #tpu.memory_space<vmem>>) attributes {dimension_semantics = [#tpu.dimension_semantics<arbitrary>], iteration_bounds = array<i64: 1>, scalar_prefetch = 0 : i64, scratch_operands = 2 : i64, tpu.core_type = #tpu.core_type<tc>, window_params = [{pipeline_mode = #tpu.pipeline_mode<synchronous>, transform_indices = @transform_0, window_bounds = array<i64: 64, 128>}, {pipeline_mode = #tpu.pipeline_mode<synchronous>, transform_indices = @transform_1, window_bounds = array<i64: 64, 128>}, {pipeline_mode = #tpu.pipeline_mode<synchronous>, transform_indices = @transform_2, window_bounds = array<i64: 128, 384>}, {pipeline_mode = #tpu.pipeline_mode<synchronous>, transform_indices = @transform_3, window_bounds = array<i64: 128, 384>}, {pipeline_mode = #tpu.pipeline_mode<synchronous>, transform_indices = @transform_4, window_bounds = array<i64: 256, 512>}, {pipeline_mode = #tpu.pipeline_mode<synchronous>, transform_indices = @transform_5, window_bounds = array<i64: 1, 384>}, {pipeline_mode = #tpu.pipeline_mode<synchronous>, transform_indices = @transform_6, window_bounds = array<i64: 1, 128>}, {pipeline_mode = #tpu.pipeline_mode<synchronous>, transform_indices = @transform_7, window_bounds = array<i64: 1, 512>}, {pipeline_mode = #tpu.pipeline_mode<synchronous>, transform_indices = @transform_8, window_bounds = array<i64: 8, 128>}]} {
    %c0 = arith.constant 0 : index
    %c0_0 = arith.constant 0 : index
    %0 = vector.load %arg2[%c0, %c0_0] : memref<64x128xbf16, #tpu.memory_space<vmem>>, vector<64x128xbf16>
    %c0_1 = arith.constant 0 : index
    %c0_2 = arith.constant 0 : index
    %1 = vector.load %arg3[%c0_1, %c0_2] : memref<128x384xbf16, #tpu.memory_space<vmem>>, vector<128x384xbf16>
    %cst = arith.constant dense<0.000000e+00> : vector<64x384xf32>
    %2 = tpu.matmul %0, %1, %cst {dimension_numbers = #tpu.dot_dimension_numbers<[1], [0], [0], [1], [0, 0, 1, 1], [], []>} : vector<64x128xbf16>, vector<128x384xbf16>, vector<64x384xf32> -> vector<64x384xf32>
    %c0_3 = arith.constant 0 : index
    %c0_4 = arith.constant 0 : index
    %3 = vector.load %arg6[%c0_3, %c0_4] : memref<1x384xf32, #tpu.memory_space<vmem>>, vector<1x384xf32>
    %4 = vector.broadcast %3 : vector<1x384xf32> to vector<64x384xf32>
    %5 = arith.addf %2, %4 : vector<64x384xf32>
    %c0_5 = arith.constant 0 : index
    %c0_6 = arith.constant 0 : index
    %6 = vector.load %arg10[%c0_5, %c0_6] : memref<64x384xf32, #tpu.memory_space<vmem>>, vector<64x384xf32>
    tpu.vector_store %arg10[%c0_5, %c0_6], %5 {strides = array<i32>} : memref<64x384xf32, #tpu.memory_space<vmem>>, vector<64x384xf32>,
    %c0_7 = arith.constant 0 : index
    %c0_8 = arith.constant 0 : index
    %7 = vector.load %arg4[%c0_7, %c0_8] : memref<128x384xbf16, #tpu.memory_space<vmem>>, vector<128x384xbf16>
    %c0_9 = arith.constant 0 : index
    %c0_10 = arith.constant 0 : index
    %8 = vector.load %arg5[%c0_9, %c0_10] : memref<256x512xbf16, #tpu.memory_space<vmem>>, vector<256x512xbf16>
    %c0_11 = arith.constant 0 : index
    %c0_12 = arith.constant 0 : index
    %9 = vector.load %arg7[%c0_11, %c0_12] : memref<1x128xf32, #tpu.memory_space<vmem>>, vector<1x128xf32>
    %c0_13 = arith.constant 0 : index
    %c0_14 = arith.constant 0 : index
    %10 = vector.load %arg8[%c0_13, %c0_14] : memref<1x512xf32, #tpu.memory_space<vmem>>, vector<1x512xf32>
    %cst_15 = arith.constant 0.000000e+00 : f32
    %11 = vector.broadcast %cst_15 : f32 to vector<8x128xf32>
    %cst_16 = arith.constant 0.000000e+00 : f32
    %12 = vector.broadcast %cst_16 : f32 to vector<8x128xf32>
    %c0_17 = arith.constant 0 : index
    %c0_18 = arith.constant 0 : index
    %13 = vector.load %arg10[%c0_17, %c0_18] : memref<64x384xf32, #tpu.memory_space<vmem>>, vector<8x384xf32>
    %14 = arith.truncf %11 : vector<8x128xf32> to vector<8x128xbf16>
    %cst_19 = arith.constant dense<0.000000e+00> : vector<8x384xf32>
    %15 = tpu.matmul %14, %7, %cst_19 {dimension_numbers = #tpu.dot_dimension_numbers<[1], [0], [0], [1], [0, 0, 1, 1], [], []>} : vector<8x128xbf16>, vector<128x384xbf16>, vector<8x384xf32> -> vector<8x384xf32>
    %16 = vector.extract_strided_slice %13 {offsets = [0, 0], sizes = [8, 128], strides = [1, 1]} : vector<8x384xf32> to vector<8x128xf32>
    %17 = vector.extract_strided_slice %15 {offsets = [0, 0], sizes = [8, 128], strides = [1, 1]} : vector<8x384xf32> to vector<8x128xf32>
    %18 = arith.addf %16, %17 : vector<8x128xf32>
    %19 = arith.negf %18 : vector<8x128xf32>
    %20 = math.exp %19 : vector<8x128xf32>
    %cst_20 = arith.constant 1.000000e+00 : f32
    %21 = vector.broadcast %cst_20 : f32 to vector<8x128xf32>
    %22 = arith.addf %21, %20 : vector<8x128xf32>
    %23 = arith.divf %21, %22 : vector<8x128xf32>
    %24 = vector.extract_strided_slice %13 {offsets = [0, 128], sizes = [8, 128], strides = [1, 1]} : vector<8x384xf32> to vector<8x128xf32>
    %25 = vector.extract_strided_slice %15 {offsets = [0, 128], sizes = [8, 128], strides = [1, 1]} : vector<8x384xf32> to vector<8x128xf32>
    %26 = arith.addf %24, %25 : vector<8x128xf32>
    %27 = arith.negf %26 : vector<8x128xf32>
    %28 = math.exp %27 : vector<8x128xf32>
    %cst_21 = arith.constant 1.000000e+00 : f32
    %29 = vector.broadcast %cst_21 : f32 to vector<8x128xf32>
    %30 = arith.addf %29, %28 : vector<8x128xf32>
    %31 = arith.divf %29, %30 : vector<8x128xf32>
    %32 = vector.extract_strided_slice %13 {offsets = [0, 256], sizes = [8, 128], strides = [1, 1]} : vector<8x384xf32> to vector<8x128xf32>
    %33 = vector.extract_strided_slice %15 {offsets = [0, 256], sizes = [8, 128], strides = [1, 1]} : vector<8x384xf32> to vector<8x128xf32>
    %34 = vector.broadcast %9 : vector<1x128xf32> to vector<8x128xf32>
    %35 = arith.addf %33, %34 : vector<8x128xf32>
    %36 = arith.mulf %23, %35 : vector<8x128xf32>
    %37 = arith.addf %32, %36 : vector<8x128xf32>
    %38 = math.tanh %37 : vector<8x128xf32>
    %cst_22 = arith.constant 1.000000e+00 : f32
    %39 = vector.broadcast %cst_22 : f32 to vector<8x128xf32>
    %40 = arith.subf %39, %31 : vector<8x128xf32>
    %41 = arith.mulf %40, %38 : vector<8x128xf32>
    %42 = arith.mulf %31, %11 : vector<8x128xf32>
    %43 = arith.addf %41, %42 : vector<8x128xf32>
    %c8 = arith.constant 8 : index
    %c0_23 = arith.constant 0 : index
    %44 = vector.load %arg10[%c8, %c0_23] : memref<64x384xf32, #tpu.memory_space<vmem>>, vector<8x384xf32>
    %45 = arith.truncf %43 : vector<8x128xf32> to vector<8x128xbf16>
    %cst_24 = arith.constant dense<0.000000e+00> : vector<8x384xf32>
    %46 = tpu.matmul %45, %7, %cst_24 {dimension_numbers = #tpu.dot_dimension_numbers<[1], [0], [0], [1], [0, 0, 1, 1], [], []>} : vector<8x128xbf16>, vector<128x384xbf16>, vector<8x384xf32> -> vector<8x384xf32>
    %47 = vector.extract_strided_slice %44 {offsets = [0, 0], sizes = [8, 128], strides = [1, 1]} : vector<8x384xf32> to vector<8x128xf32>
    %48 = vector.extract_strided_slice %46 {offsets = [0, 0], sizes = [8, 128], strides = [1, 1]} : vector<8x384xf32> to vector<8x128xf32>
    %49 = arith.addf %47, %48 : vector<8x128xf32>
    %50 = arith.negf %49 : vector<8x128xf32>
    %51 = math.exp %50 : vector<8x128xf32>
    %cst_25 = arith.constant 1.000000e+00 : f32
    %52 = vector.broadcast %cst_25 : f32 to vector<8x128xf32>
    %53 = arith.addf %52, %51 : vector<8x128xf32>
    %54 = arith.divf %52, %53 : vector<8x128xf32>
    %55 = vector.extract_strided_slice %44 {offsets = [0, 128], sizes = [8, 128], strides = [1, 1]} : vector<8x384xf32> to vector<8x128xf32>
    %56 = vector.extract_strided_slice %46 {offsets = [0, 128], sizes = [8, 128], strides = [1, 1]} : vector<8x384xf32> to vector<8x128xf32>
    %57 = arith.addf %55, %56 : vector<8x128xf32>
    %58 = arith.negf %57 : vector<8x128xf32>
    %59 = math.exp %58 : vector<8x128xf32>
    %cst_26 = arith.constant 1.000000e+00 : f32
    %60 = vector.broadcast %cst_26 : f32 to vector<8x128xf32>
    %61 = arith.addf %60, %59 : vector<8x128xf32>
    %62 = arith.divf %60, %61 : vector<8x128xf32>
    %63 = vector.extract_strided_slice %44 {offsets = [0, 256], sizes = [8, 128], strides = [1, 1]} : vector<8x384xf32> to vector<8x128xf32>
    %64 = vector.extract_strided_slice %46 {offsets = [0, 256], sizes = [8, 128], strides = [1, 1]} : vector<8x384xf32> to vector<8x128xf32>
    %65 = vector.broadcast %9 : vector<1x128xf32> to vector<8x128xf32>
    %66 = arith.addf %64, %65 : vector<8x128xf32>
    %67 = arith.mulf %54, %66 : vector<8x128xf32>
    %68 = arith.addf %63, %67 : vector<8x128xf32>
    %69 = math.tanh %68 : vector<8x128xf32>
    %cst_27 = arith.constant 1.000000e+00 : f32
    %70 = vector.broadcast %cst_27 : f32 to vector<8x128xf32>
    %71 = arith.subf %70, %62 : vector<8x128xf32>
    %72 = arith.mulf %71, %69 : vector<8x128xf32>
    %73 = arith.mulf %62, %43 : vector<8x128xf32>
    %74 = arith.addf %72, %73 : vector<8x128xf32>
    %75 = tpu.concatenate %43, %12 in 1 : vector<8x128xf32>, vector<8x128xf32> -> vector<8x256xf32>
    %76 = arith.truncf %75 : vector<8x256xf32> to vector<8x256xbf16>
    %cst_28 = arith.constant dense<0.000000e+00> : vector<8x512xf32>
    %77 = tpu.matmul %76, %8, %cst_28 {dimension_numbers = #tpu.dot_dimension_numbers<[1], [0], [0], [1], [0, 0, 1, 1], [], []>} : vector<8x256xbf16>, vector<256x512xbf16>, vector<8x512xf32> -> vector<8x512xf32>
    %78 = vector.broadcast %10 : vector<1x512xf32> to vector<8x512xf32>
    %79 = arith.addf %77, %78 : vector<8x512xf32>
    %80 = vector.extract_strided_slice %79 {offsets = [0, 0], sizes = [8, 128], strides = [1, 1]} : vector<8x512xf32> to vector<8x128xf32>
    %81 = arith.negf %80 : vector<8x128xf32>
    %82 = math.exp %81 : vector<8x128xf32>
    %cst_29 = arith.constant 1.000000e+00 : f32
    %83 = vector.broadcast %cst_29 : f32 to vector<8x128xf32>
    %84 = arith.addf %83, %82 : vector<8x128xf32>
    %85 = arith.divf %83, %84 : vector<8x128xf32>
    %86 = vector.extract_strided_slice %79 {offsets = [0, 128], sizes = [8, 128], strides = [1, 1]} : vector<8x512xf32> to vector<8x128xf32>
    %87 = arith.negf %86 : vector<8x128xf32>
    %88 = math.exp %87 : vector<8x128xf32>
    %cst_30 = arith.constant 1.000000e+00 : f32
    %89 = vector.broadcast %cst_30 : f32 to vector<8x128xf32>
    %90 = arith.addf %89, %88 : vector<8x128xf32>
    %91 = arith.divf %89, %90 : vector<8x128xf32>
    %92 = vector.extract_strided_slice %79 {offsets = [0, 256], sizes = [8, 128], strides = [1, 1]} : vector<8x512xf32> to vector<8x128xf32>
    %93 = vector.extract_strided_slice %79 {offsets = [0, 384], sizes = [8, 128], strides = [1, 1]} : vector<8x512xf32> to vector<8x128xf32>
    %94 = arith.mulf %85, %93 : vector<8x128xf32>
    %95 = arith.addf %92, %94 : vector<8x128xf32>
    %96 = math.tanh %95 : vector<8x128xf32>
    %cst_31 = arith.constant 1.000000e+00 : f32
    %97 = vector.broadcast %cst_31 : f32 to vector<8x128xf32>
    %98 = arith.subf %97, %91 : vector<8x128xf32>
    %99 = arith.mulf %98, %96 : vector<8x128xf32>
    %100 = arith.mulf %91, %12 : vector<8x128xf32>
    %101 = arith.addf %99, %100 : vector<8x128xf32>
    %c0_32 = arith.constant 0 : index
    %c0_33 = arith.constant 0 : index
    %102 = vector.load %arg11[%c0_32, %c0_33] : memref<64x128xf32, #tpu.memory_space<vmem>>, vector<8x128xf32>
    tpu.vector_store %arg11[%c0_32, %c0_33], %101 {strides = array<i32>} : memref<64x128xf32, #tpu.memory_space<vmem>>, vector<8x128xf32>,
    %c16 = arith.constant 16 : index
    %c0_34 = arith.constant 0 : index
    %103 = vector.load %arg10[%c16, %c0_34] : memref<64x384xf32, #tpu.memory_space<vmem>>, vector<8x384xf32>
    %104 = arith.truncf %74 : vector<8x128xf32> to vector<8x128xbf16>
    %cst_35 = arith.constant dense<0.000000e+00> : vector<8x384xf32>
    %105 = tpu.matmul %104, %7, %cst_35 {dimension_numbers = #tpu.dot_dimension_numbers<[1], [0], [0], [1], [0, 0, 1, 1], [], []>} : vector<8x128xbf16>, vector<128x384xbf16>, vector<8x384xf32> -> vector<8x384xf32>
    %106 = vector.extract_strided_slice %103 {offsets = [0, 0], sizes = [8, 128], strides = [1, 1]} : vector<8x384xf32> to vector<8x128xf32>
    %107 = vector.extract_strided_slice %105 {offsets = [0, 0], sizes = [8, 128], strides = [1, 1]} : vector<8x384xf32> to vector<8x128xf32>
    %108 = arith.addf %106, %107 : vector<8x128xf32>
    %109 = arith.negf %108 : vector<8x128xf32>
    %110 = math.exp %109 : vector<8x128xf32>
    %cst_36 = arith.constant 1.000000e+00 : f32
    %111 = vector.broadcast %cst_36 : f32 to vector<8x128xf32>
    %112 = arith.addf %111, %110 : vector<8x128xf32>
    %113 = arith.divf %111, %112 : vector<8x128xf32>
    %114 = vector.extract_strided_slice %103 {offsets = [0, 128], sizes = [8, 128], strides = [1, 1]} : vector<8x384xf32> to vector<8x128xf32>
    %115 = vector.extract_strided_slice %105 {offsets = [0, 128], sizes = [8, 128], strides = [1, 1]} : vector<8x384xf32> to vector<8x128xf32>
    %116 = arith.addf %114, %115 : vector<8x128xf32>
    %117 = arith.negf %116 : vector<8x128xf32>
    %118 = math.exp %117 : vector<8x128xf32>
    %cst_37 = arith.constant 1.000000e+00 : f32
    %119 = vector.broadcast %cst_37 : f32 to vector<8x128xf32>
    %120 = arith.addf %119, %118 : vector<8x128xf32>
    %121 = arith.divf %119, %120 : vector<8x128xf32>
    %122 = vector.extract_strided_slice %103 {offsets = [0, 256], sizes = [8, 128], strides = [1, 1]} : vector<8x384xf32> to vector<8x128xf32>
    %123 = vector.extract_strided_slice %105 {offsets = [0, 256], sizes = [8, 128], strides = [1, 1]} : vector<8x384xf32> to vector<8x128xf32>
    %124 = vector.broadcast %9 : vector<1x128xf32> to vector<8x128xf32>
    %125 = arith.addf %123, %124 : vector<8x128xf32>
    %126 = arith.mulf %113, %125 : vector<8x128xf32>
    %127 = arith.addf %122, %126 : vector<8x128xf32>
    %128 = math.tanh %127 : vector<8x128xf32>
    %cst_38 = arith.constant 1.000000e+00 : f32
    %129 = vector.broadcast %cst_38 : f32 to vector<8x128xf32>
    %130 = arith.subf %129, %121 : vector<8x128xf32>
    %131 = arith.mulf %130, %128 : vector<8x128xf32>
    %132 = arith.mulf %121, %74 : vector<8x128xf32>
    %133 = arith.addf %131, %132 : vector<8x128xf32>
    %134 = tpu.concatenate %74, %101 in 1 : vector<8x128xf32>, vector<8x128xf32> -> vector<8x256xf32>
    %135 = arith.truncf %134 : vector<8x256xf32> to vector<8x256xbf16>
    %cst_39 = arith.constant dense<0.000000e+00> : vector<8x512xf32>
    %136 = tpu.matmul %135, %8, %cst_39 {dimension_numbers = #tpu.dot_dimension_numbers<[1], [0], [0], [1], [0, 0, 1, 1], [], []>} : vector<8x256xbf16>, vector<256x512xbf16>, vector<8x512xf32> -> vector<8x512xf32>
    %137 = vector.broadcast %10 : vector<1x512xf32> to vector<8x512xf32>
    %138 = arith.addf %136, %137 : vector<8x512xf32>
    %139 = vector.extract_strided_slice %138 {offsets = [0, 0], sizes = [8, 128], strides = [1, 1]} : vector<8x512xf32> to vector<8x128xf32>
    %140 = arith.negf %139 : vector<8x128xf32>
    %141 = math.exp %140 : vector<8x128xf32>
    %cst_40 = arith.constant 1.000000e+00 : f32
    %142 = vector.broadcast %cst_40 : f32 to vector<8x128xf32>
    %143 = arith.addf %142, %141 : vector<8x128xf32>
    %144 = arith.divf %142, %143 : vector<8x128xf32>
    %145 = vector.extract_strided_slice %138 {offsets = [0, 128], sizes = [8, 128], strides = [1, 1]} : vector<8x512xf32> to vector<8x128xf32>
    %146 = arith.negf %145 : vector<8x128xf32>
    %147 = math.exp %146 : vector<8x128xf32>
    %cst_41 = arith.constant 1.000000e+00 : f32
    %148 = vector.broadcast %cst_41 : f32 to vector<8x128xf32>
    %149 = arith.addf %148, %147 : vector<8x128xf32>
    %150 = arith.divf %148, %149 : vector<8x128xf32>
    %151 = vector.extract_strided_slice %138 {offsets = [0, 256], sizes = [8, 128], strides = [1, 1]} : vector<8x512xf32> to vector<8x128xf32>
    %152 = vector.extract_strided_slice %138 {offsets = [0, 384], sizes = [8, 128], strides = [1, 1]} : vector<8x512xf32> to vector<8x128xf32>
    %153 = arith.mulf %144, %152 : vector<8x128xf32>
    %154 = arith.addf %151, %153 : vector<8x128xf32>
    %155 = math.tanh %154 : vector<8x128xf32>
    %cst_42 = arith.constant 1.000000e+00 : f32
    %156 = vector.broadcast %cst_42 : f32 to vector<8x128xf32>
    %157 = arith.subf %156, %150 : vector<8x128xf32>
    %158 = arith.mulf %157, %155 : vector<8x128xf32>
    %159 = arith.mulf %150, %101 : vector<8x128xf32>
    %160 = arith.addf %158, %159 : vector<8x128xf32>
    %c8_43 = arith.constant 8 : index
    %c0_44 = arith.constant 0 : index
    %161 = vector.load %arg11[%c8_43, %c0_44] : memref<64x128xf32, #tpu.memory_space<vmem>>, vector<8x128xf32>
    tpu.vector_store %arg11[%c8_43, %c0_44], %160 {strides = array<i32>} : memref<64x128xf32, #tpu.memory_space<vmem>>, vector<8x128xf32>,
    %c24 = arith.constant 24 : index
    %c0_45 = arith.constant 0 : index
    %162 = vector.load %arg10[%c24, %c0_45] : memref<64x384xf32, #tpu.memory_space<vmem>>, vector<8x384xf32>
    %163 = arith.truncf %133 : vector<8x128xf32> to vector<8x128xbf16>
    %cst_46 = arith.constant dense<0.000000e+00> : vector<8x384xf32>
    %164 = tpu.matmul %163, %7, %cst_46 {dimension_numbers = #tpu.dot_dimension_numbers<[1], [0], [0], [1], [0, 0, 1, 1], [], []>} : vector<8x128xbf16>, vector<128x384xbf16>, vector<8x384xf32> -> vector<8x384xf32>
    %165 = vector.extract_strided_slice %162 {offsets = [0, 0], sizes = [8, 128], strides = [1, 1]} : vector<8x384xf32> to vector<8x128xf32>
    %166 = vector.extract_strided_slice %164 {offsets = [0, 0], sizes = [8, 128], strides = [1, 1]} : vector<8x384xf32> to vector<8x128xf32>
    %167 = arith.addf %165, %166 : vector<8x128xf32>
    %168 = arith.negf %167 : vector<8x128xf32>
    %169 = math.exp %168 : vector<8x128xf32>
    %cst_47 = arith.constant 1.000000e+00 : f32
    %170 = vector.broadcast %cst_47 : f32 to vector<8x128xf32>
    %171 = arith.addf %170, %169 : vector<8x128xf32>
    %172 = arith.divf %170, %171 : vector<8x128xf32>
    %173 = vector.extract_strided_slice %162 {offsets = [0, 128], sizes = [8, 128], strides = [1, 1]} : vector<8x384xf32> to vector<8x128xf32>
    %174 = vector.extract_strided_slice %164 {offsets = [0, 128], sizes = [8, 128], strides = [1, 1]} : vector<8x384xf32> to vector<8x128xf32>
    %175 = arith.addf %173, %174 : vector<8x128xf32>
    %176 = arith.negf %175 : vector<8x128xf32>
    %177 = math.exp %176 : vector<8x128xf32>
    %cst_48 = arith.constant 1.000000e+00 : f32
    %178 = vector.broadcast %cst_48 : f32 to vector<8x128xf32>
    %179 = arith.addf %178, %177 : vector<8x128xf32>
    %180 = arith.divf %178, %179 : vector<8x128xf32>
    %181 = vector.extract_strided_slice %162 {offsets = [0, 256], sizes = [8, 128], strides = [1, 1]} : vector<8x384xf32> to vector<8x128xf32>
    %182 = vector.extract_strided_slice %164 {offsets = [0, 256], sizes = [8, 128], strides = [1, 1]} : vector<8x384xf32> to vector<8x128xf32>
    %183 = vector.broadcast %9 : vector<1x128xf32> to vector<8x128xf32>
    %184 = arith.addf %182, %183 : vector<8x128xf32>
    %185 = arith.mulf %172, %184 : vector<8x128xf32>
    %186 = arith.addf %181, %185 : vector<8x128xf32>
    %187 = math.tanh %186 : vector<8x128xf32>
    %cst_49 = arith.constant 1.000000e+00 : f32
    %188 = vector.broadcast %cst_49 : f32 to vector<8x128xf32>
    %189 = arith.subf %188, %180 : vector<8x128xf32>
    %190 = arith.mulf %189, %187 : vector<8x128xf32>
    %191 = arith.mulf %180, %133 : vector<8x128xf32>
    %192 = arith.addf %190, %191 : vector<8x128xf32>
    %193 = tpu.concatenate %133, %160 in 1 : vector<8x128xf32>, vector<8x128xf32> -> vector<8x256xf32>
    %194 = arith.truncf %193 : vector<8x256xf32> to vector<8x256xbf16>
    %cst_50 = arith.constant dense<0.000000e+00> : vector<8x512xf32>
    %195 = tpu.matmul %194, %8, %cst_50 {dimension_numbers = #tpu.dot_dimension_numbers<[1], [0], [0], [1], [0, 0, 1, 1], [], []>} : vector<8x256xbf16>, vector<256x512xbf16>, vector<8x512xf32> -> vector<8x512xf32>
    %196 = vector.broadcast %10 : vector<1x512xf32> to vector<8x512xf32>
    %197 = arith.addf %195, %196 : vector<8x512xf32>
    %198 = vector.extract_strided_slice %197 {offsets = [0, 0], sizes = [8, 128], strides = [1, 1]} : vector<8x512xf32> to vector<8x128xf32>
    %199 = arith.negf %198 : vector<8x128xf32>
    %200 = math.exp %199 : vector<8x128xf32>
    %cst_51 = arith.constant 1.000000e+00 : f32
    %201 = vector.broadcast %cst_51 : f32 to vector<8x128xf32>
    %202 = arith.addf %201, %200 : vector<8x128xf32>
    %203 = arith.divf %201, %202 : vector<8x128xf32>
    %204 = vector.extract_strided_slice %197 {offsets = [0, 128], sizes = [8, 128], strides = [1, 1]} : vector<8x512xf32> to vector<8x128xf32>
    %205 = arith.negf %204 : vector<8x128xf32>
    %206 = math.exp %205 : vector<8x128xf32>
    %cst_52 = arith.constant 1.000000e+00 : f32
    %207 = vector.broadcast %cst_52 : f32 to vector<8x128xf32>
    %208 = arith.addf %207, %206 : vector<8x128xf32>
    %209 = arith.divf %207, %208 : vector<8x128xf32>
    %210 = vector.extract_strided_slice %197 {offsets = [0, 256], sizes = [8, 128], strides = [1, 1]} : vector<8x512xf32> to vector<8x128xf32>
    %211 = vector.extract_strided_slice %197 {offsets = [0, 384], sizes = [8, 128], strides = [1, 1]} : vector<8x512xf32> to vector<8x128xf32>
    %212 = arith.mulf %203, %211 : vector<8x128xf32>
    %213 = arith.addf %210, %212 : vector<8x128xf32>
    %214 = math.tanh %213 : vector<8x128xf32>
    %cst_53 = arith.constant 1.000000e+00 : f32
    %215 = vector.broadcast %cst_53 : f32 to vector<8x128xf32>
    %216 = arith.subf %215, %209 : vector<8x128xf32>
    %217 = arith.mulf %216, %214 : vector<8x128xf32>
    %218 = arith.mulf %209, %160 : vector<8x128xf32>
    %219 = arith.addf %217, %218 : vector<8x128xf32>
    %c16_54 = arith.constant 16 : index
    %c0_55 = arith.constant 0 : index
    %220 = vector.load %arg11[%c16_54, %c0_55] : memref<64x128xf32, #tpu.memory_space<vmem>>, vector<8x128xf32>
    tpu.vector_store %arg11[%c16_54, %c0_55], %219 {strides = array<i32>} : memref<64x128xf32, #tpu.memory_space<vmem>>, vector<8x128xf32>,
    %c32 = arith.constant 32 : index
    %c0_56 = arith.constant 0 : index
    %221 = vector.load %arg10[%c32, %c0_56] : memref<64x384xf32, #tpu.memory_space<vmem>>, vector<8x384xf32>
    %222 = arith.truncf %192 : vector<8x128xf32> to vector<8x128xbf16>
    %cst_57 = arith.constant dense<0.000000e+00> : vector<8x384xf32>
    %223 = tpu.matmul %222, %7, %cst_57 {dimension_numbers = #tpu.dot_dimension_numbers<[1], [0], [0], [1], [0, 0, 1, 1], [], []>} : vector<8x128xbf16>, vector<128x384xbf16>, vector<8x384xf32> -> vector<8x384xf32>
    %224 = vector.extract_strided_slice %221 {offsets = [0, 0], sizes = [8, 128], strides = [1, 1]} : vector<8x384xf32> to vector<8x128xf32>
    %225 = vector.extract_strided_slice %223 {offsets = [0, 0], sizes = [8, 128], strides = [1, 1]} : vector<8x384xf32> to vector<8x128xf32>
    %226 = arith.addf %224, %225 : vector<8x128xf32>
    %227 = arith.negf %226 : vector<8x128xf32>
    %228 = math.exp %227 : vector<8x128xf32>
    %cst_58 = arith.constant 1.000000e+00 : f32
    %229 = vector.broadcast %cst_58 : f32 to vector<8x128xf32>
    %230 = arith.addf %229, %228 : vector<8x128xf32>
    %231 = arith.divf %229, %230 : vector<8x128xf32>
    %232 = vector.extract_strided_slice %221 {offsets = [0, 128], sizes = [8, 128], strides = [1, 1]} : vector<8x384xf32> to vector<8x128xf32>
    %233 = vector.extract_strided_slice %223 {offsets = [0, 128], sizes = [8, 128], strides = [1, 1]} : vector<8x384xf32> to vector<8x128xf32>
    %234 = arith.addf %232, %233 : vector<8x128xf32>
    %235 = arith.negf %234 : vector<8x128xf32>
    %236 = math.exp %235 : vector<8x128xf32>
    %cst_59 = arith.constant 1.000000e+00 : f32
    %237 = vector.broadcast %cst_59 : f32 to vector<8x128xf32>
    %238 = arith.addf %237, %236 : vector<8x128xf32>
    %239 = arith.divf %237, %238 : vector<8x128xf32>
    %240 = vector.extract_strided_slice %221 {offsets = [0, 256], sizes = [8, 128], strides = [1, 1]} : vector<8x384xf32> to vector<8x128xf32>
    %241 = vector.extract_strided_slice %223 {offsets = [0, 256], sizes = [8, 128], strides = [1, 1]} : vector<8x384xf32> to vector<8x128xf32>
    %242 = vector.broadcast %9 : vector<1x128xf32> to vector<8x128xf32>
    %243 = arith.addf %241, %242 : vector<8x128xf32>
    %244 = arith.mulf %231, %243 : vector<8x128xf32>
    %245 = arith.addf %240, %244 : vector<8x128xf32>
    %246 = math.tanh %245 : vector<8x128xf32>
    %cst_60 = arith.constant 1.000000e+00 : f32
    %247 = vector.broadcast %cst_60 : f32 to vector<8x128xf32>
    %248 = arith.subf %247, %239 : vector<8x128xf32>
    %249 = arith.mulf %248, %246 : vector<8x128xf32>
    %250 = arith.mulf %239, %192 : vector<8x128xf32>
    %251 = arith.addf %249, %250 : vector<8x128xf32>
    %252 = tpu.concatenate %192, %219 in 1 : vector<8x128xf32>, vector<8x128xf32> -> vector<8x256xf32>
    %253 = arith.truncf %252 : vector<8x256xf32> to vector<8x256xbf16>
    %cst_61 = arith.constant dense<0.000000e+00> : vector<8x512xf32>
    %254 = tpu.matmul %253, %8, %cst_61 {dimension_numbers = #tpu.dot_dimension_numbers<[1], [0], [0], [1], [0, 0, 1, 1], [], []>} : vector<8x256xbf16>, vector<256x512xbf16>, vector<8x512xf32> -> vector<8x512xf32>
    %255 = vector.broadcast %10 : vector<1x512xf32> to vector<8x512xf32>
    %256 = arith.addf %254, %255 : vector<8x512xf32>
    %257 = vector.extract_strided_slice %256 {offsets = [0, 0], sizes = [8, 128], strides = [1, 1]} : vector<8x512xf32> to vector<8x128xf32>
    %258 = arith.negf %257 : vector<8x128xf32>
    %259 = math.exp %258 : vector<8x128xf32>
    %cst_62 = arith.constant 1.000000e+00 : f32
    %260 = vector.broadcast %cst_62 : f32 to vector<8x128xf32>
    %261 = arith.addf %260, %259 : vector<8x128xf32>
    %262 = arith.divf %260, %261 : vector<8x128xf32>
    %263 = vector.extract_strided_slice %256 {offsets = [0, 128], sizes = [8, 128], strides = [1, 1]} : vector<8x512xf32> to vector<8x128xf32>
    %264 = arith.negf %263 : vector<8x128xf32>
    %265 = math.exp %264 : vector<8x128xf32>
    %cst_63 = arith.constant 1.000000e+00 : f32
    %266 = vector.broadcast %cst_63 : f32 to vector<8x128xf32>
    %267 = arith.addf %266, %265 : vector<8x128xf32>
    %268 = arith.divf %266, %267 : vector<8x128xf32>
    %269 = vector.extract_strided_slice %256 {offsets = [0, 256], sizes = [8, 128], strides = [1, 1]} : vector<8x512xf32> to vector<8x128xf32>
    %270 = vector.extract_strided_slice %256 {offsets = [0, 384], sizes = [8, 128], strides = [1, 1]} : vector<8x512xf32> to vector<8x128xf32>
    %271 = arith.mulf %262, %270 : vector<8x128xf32>
    %272 = arith.addf %269, %271 : vector<8x128xf32>
    %273 = math.tanh %272 : vector<8x128xf32>
    %cst_64 = arith.constant 1.000000e+00 : f32
    %274 = vector.broadcast %cst_64 : f32 to vector<8x128xf32>
    %275 = arith.subf %274, %268 : vector<8x128xf32>
    %276 = arith.mulf %275, %273 : vector<8x128xf32>
    %277 = arith.mulf %268, %219 : vector<8x128xf32>
    %278 = arith.addf %276, %277 : vector<8x128xf32>
    %c24_65 = arith.constant 24 : index
    %c0_66 = arith.constant 0 : index
    %279 = vector.load %arg11[%c24_65, %c0_66] : memref<64x128xf32, #tpu.memory_space<vmem>>, vector<8x128xf32>
    tpu.vector_store %arg11[%c24_65, %c0_66], %278 {strides = array<i32>} : memref<64x128xf32, #tpu.memory_space<vmem>>, vector<8x128xf32>,
    %c40 = arith.constant 40 : index
    %c0_67 = arith.constant 0 : index
    %280 = vector.load %arg10[%c40, %c0_67] : memref<64x384xf32, #tpu.memory_space<vmem>>, vector<8x384xf32>
    %281 = arith.truncf %251 : vector<8x128xf32> to vector<8x128xbf16>
    %cst_68 = arith.constant dense<0.000000e+00> : vector<8x384xf32>
    %282 = tpu.matmul %281, %7, %cst_68 {dimension_numbers = #tpu.dot_dimension_numbers<[1], [0], [0], [1], [0, 0, 1, 1], [], []>} : vector<8x128xbf16>, vector<128x384xbf16>, vector<8x384xf32> -> vector<8x384xf32>
    %283 = vector.extract_strided_slice %280 {offsets = [0, 0], sizes = [8, 128], strides = [1, 1]} : vector<8x384xf32> to vector<8x128xf32>
    %284 = vector.extract_strided_slice %282 {offsets = [0, 0], sizes = [8, 128], strides = [1, 1]} : vector<8x384xf32> to vector<8x128xf32>
    %285 = arith.addf %283, %284 : vector<8x128xf32>
    %286 = arith.negf %285 : vector<8x128xf32>
    %287 = math.exp %286 : vector<8x128xf32>
    %cst_69 = arith.constant 1.000000e+00 : f32
    %288 = vector.broadcast %cst_69 : f32 to vector<8x128xf32>
    %289 = arith.addf %288, %287 : vector<8x128xf32>
    %290 = arith.divf %288, %289 : vector<8x128xf32>
    %291 = vector.extract_strided_slice %280 {offsets = [0, 128], sizes = [8, 128], strides = [1, 1]} : vector<8x384xf32> to vector<8x128xf32>
    %292 = vector.extract_strided_slice %282 {offsets = [0, 128], sizes = [8, 128], strides = [1, 1]} : vector<8x384xf32> to vector<8x128xf32>
    %293 = arith.addf %291, %292 : vector<8x128xf32>
    %294 = arith.negf %293 : vector<8x128xf32>
    %295 = math.exp %294 : vector<8x128xf32>
    %cst_70 = arith.constant 1.000000e+00 : f32
    %296 = vector.broadcast %cst_70 : f32 to vector<8x128xf32>
    %297 = arith.addf %296, %295 : vector<8x128xf32>
    %298 = arith.divf %296, %297 : vector<8x128xf32>
    %299 = vector.extract_strided_slice %280 {offsets = [0, 256], sizes = [8, 128], strides = [1, 1]} : vector<8x384xf32> to vector<8x128xf32>
    %300 = vector.extract_strided_slice %282 {offsets = [0, 256], sizes = [8, 128], strides = [1, 1]} : vector<8x384xf32> to vector<8x128xf32>
    %301 = vector.broadcast %9 : vector<1x128xf32> to vector<8x128xf32>
    %302 = arith.addf %300, %301 : vector<8x128xf32>
    %303 = arith.mulf %290, %302 : vector<8x128xf32>
    %304 = arith.addf %299, %303 : vector<8x128xf32>
    %305 = math.tanh %304 : vector<8x128xf32>
    %cst_71 = arith.constant 1.000000e+00 : f32
    %306 = vector.broadcast %cst_71 : f32 to vector<8x128xf32>
    %307 = arith.subf %306, %298 : vector<8x128xf32>
    %308 = arith.mulf %307, %305 : vector<8x128xf32>
    %309 = arith.mulf %298, %251 : vector<8x128xf32>
    %310 = arith.addf %308, %309 : vector<8x128xf32>
    %311 = tpu.concatenate %251, %278 in 1 : vector<8x128xf32>, vector<8x128xf32> -> vector<8x256xf32>
    %312 = arith.truncf %311 : vector<8x256xf32> to vector<8x256xbf16>
    %cst_72 = arith.constant dense<0.000000e+00> : vector<8x512xf32>
    %313 = tpu.matmul %312, %8, %cst_72 {dimension_numbers = #tpu.dot_dimension_numbers<[1], [0], [0], [1], [0, 0, 1, 1], [], []>} : vector<8x256xbf16>, vector<256x512xbf16>, vector<8x512xf32> -> vector<8x512xf32>
    %314 = vector.broadcast %10 : vector<1x512xf32> to vector<8x512xf32>
    %315 = arith.addf %313, %314 : vector<8x512xf32>
    %316 = vector.extract_strided_slice %315 {offsets = [0, 0], sizes = [8, 128], strides = [1, 1]} : vector<8x512xf32> to vector<8x128xf32>
    %317 = arith.negf %316 : vector<8x128xf32>
    %318 = math.exp %317 : vector<8x128xf32>
    %cst_73 = arith.constant 1.000000e+00 : f32
    %319 = vector.broadcast %cst_73 : f32 to vector<8x128xf32>
    %320 = arith.addf %319, %318 : vector<8x128xf32>
    %321 = arith.divf %319, %320 : vector<8x128xf32>
    %322 = vector.extract_strided_slice %315 {offsets = [0, 128], sizes = [8, 128], strides = [1, 1]} : vector<8x512xf32> to vector<8x128xf32>
    %323 = arith.negf %322 : vector<8x128xf32>
    %324 = math.exp %323 : vector<8x128xf32>
    %cst_74 = arith.constant 1.000000e+00 : f32
    %325 = vector.broadcast %cst_74 : f32 to vector<8x128xf32>
    %326 = arith.addf %325, %324 : vector<8x128xf32>
    %327 = arith.divf %325, %326 : vector<8x128xf32>
    %328 = vector.extract_strided_slice %315 {offsets = [0, 256], sizes = [8, 128], strides = [1, 1]} : vector<8x512xf32> to vector<8x128xf32>
    %329 = vector.extract_strided_slice %315 {offsets = [0, 384], sizes = [8, 128], strides = [1, 1]} : vector<8x512xf32> to vector<8x128xf32>
    %330 = arith.mulf %321, %329 : vector<8x128xf32>
    %331 = arith.addf %328, %330 : vector<8x128xf32>
    %332 = math.tanh %331 : vector<8x128xf32>
    %cst_75 = arith.constant 1.000000e+00 : f32
    %333 = vector.broadcast %cst_75 : f32 to vector<8x128xf32>
    %334 = arith.subf %333, %327 : vector<8x128xf32>
    %335 = arith.mulf %334, %332 : vector<8x128xf32>
    %336 = arith.mulf %327, %278 : vector<8x128xf32>
    %337 = arith.addf %335, %336 : vector<8x128xf32>
    %c32_76 = arith.constant 32 : index
    %c0_77 = arith.constant 0 : index
    %338 = vector.load %arg11[%c32_76, %c0_77] : memref<64x128xf32, #tpu.memory_space<vmem>>, vector<8x128xf32>
    tpu.vector_store %arg11[%c32_76, %c0_77], %337 {strides = array<i32>} : memref<64x128xf32, #tpu.memory_space<vmem>>, vector<8x128xf32>,
    %c48 = arith.constant 48 : index
    %c0_78 = arith.constant 0 : index
    %339 = vector.load %arg10[%c48, %c0_78] : memref<64x384xf32, #tpu.memory_space<vmem>>, vector<8x384xf32>
    %340 = arith.truncf %310 : vector<8x128xf32> to vector<8x128xbf16>
    %cst_79 = arith.constant dense<0.000000e+00> : vector<8x384xf32>
    %341 = tpu.matmul %340, %7, %cst_79 {dimension_numbers = #tpu.dot_dimension_numbers<[1], [0], [0], [1], [0, 0, 1, 1], [], []>} : vector<8x128xbf16>, vector<128x384xbf16>, vector<8x384xf32> -> vector<8x384xf32>
    %342 = vector.extract_strided_slice %339 {offsets = [0, 0], sizes = [8, 128], strides = [1, 1]} : vector<8x384xf32> to vector<8x128xf32>
    %343 = vector.extract_strided_slice %341 {offsets = [0, 0], sizes = [8, 128], strides = [1, 1]} : vector<8x384xf32> to vector<8x128xf32>
    %344 = arith.addf %342, %343 : vector<8x128xf32>
    %345 = arith.negf %344 : vector<8x128xf32>
    %346 = math.exp %345 : vector<8x128xf32>
    %cst_80 = arith.constant 1.000000e+00 : f32
    %347 = vector.broadcast %cst_80 : f32 to vector<8x128xf32>
    %348 = arith.addf %347, %346 : vector<8x128xf32>
    %349 = arith.divf %347, %348 : vector<8x128xf32>
    %350 = vector.extract_strided_slice %339 {offsets = [0, 128], sizes = [8, 128], strides = [1, 1]} : vector<8x384xf32> to vector<8x128xf32>
    %351 = vector.extract_strided_slice %341 {offsets = [0, 128], sizes = [8, 128], strides = [1, 1]} : vector<8x384xf32> to vector<8x128xf32>
    %352 = arith.addf %350, %351 : vector<8x128xf32>
    %353 = arith.negf %352 : vector<8x128xf32>
    %354 = math.exp %353 : vector<8x128xf32>
    %cst_81 = arith.constant 1.000000e+00 : f32
    %355 = vector.broadcast %cst_81 : f32 to vector<8x128xf32>
    %356 = arith.addf %355, %354 : vector<8x128xf32>
    %357 = arith.divf %355, %356 : vector<8x128xf32>
    %358 = vector.extract_strided_slice %339 {offsets = [0, 256], sizes = [8, 128], strides = [1, 1]} : vector<8x384xf32> to vector<8x128xf32>
    %359 = vector.extract_strided_slice %341 {offsets = [0, 256], sizes = [8, 128], strides = [1, 1]} : vector<8x384xf32> to vector<8x128xf32>
    %360 = vector.broadcast %9 : vector<1x128xf32> to vector<8x128xf32>
    %361 = arith.addf %359, %360 : vector<8x128xf32>
    %362 = arith.mulf %349, %361 : vector<8x128xf32>
    %363 = arith.addf %358, %362 : vector<8x128xf32>
    %364 = math.tanh %363 : vector<8x128xf32>
    %cst_82 = arith.constant 1.000000e+00 : f32
    %365 = vector.broadcast %cst_82 : f32 to vector<8x128xf32>
    %366 = arith.subf %365, %357 : vector<8x128xf32>
    %367 = arith.mulf %366, %364 : vector<8x128xf32>
    %368 = arith.mulf %357, %310 : vector<8x128xf32>
    %369 = arith.addf %367, %368 : vector<8x128xf32>
    %370 = tpu.concatenate %310, %337 in 1 : vector<8x128xf32>, vector<8x128xf32> -> vector<8x256xf32>
    %371 = arith.truncf %370 : vector<8x256xf32> to vector<8x256xbf16>
    %cst_83 = arith.constant dense<0.000000e+00> : vector<8x512xf32>
    %372 = tpu.matmul %371, %8, %cst_83 {dimension_numbers = #tpu.dot_dimension_numbers<[1], [0], [0], [1], [0, 0, 1, 1], [], []>} : vector<8x256xbf16>, vector<256x512xbf16>, vector<8x512xf32> -> vector<8x512xf32>
    %373 = vector.broadcast %10 : vector<1x512xf32> to vector<8x512xf32>
    %374 = arith.addf %372, %373 : vector<8x512xf32>
    %375 = vector.extract_strided_slice %374 {offsets = [0, 0], sizes = [8, 128], strides = [1, 1]} : vector<8x512xf32> to vector<8x128xf32>
    %376 = arith.negf %375 : vector<8x128xf32>
    %377 = math.exp %376 : vector<8x128xf32>
    %cst_84 = arith.constant 1.000000e+00 : f32
    %378 = vector.broadcast %cst_84 : f32 to vector<8x128xf32>
    %379 = arith.addf %378, %377 : vector<8x128xf32>
    %380 = arith.divf %378, %379 : vector<8x128xf32>
    %381 = vector.extract_strided_slice %374 {offsets = [0, 128], sizes = [8, 128], strides = [1, 1]} : vector<8x512xf32> to vector<8x128xf32>
    %382 = arith.negf %381 : vector<8x128xf32>
    %383 = math.exp %382 : vector<8x128xf32>
    %cst_85 = arith.constant 1.000000e+00 : f32
    %384 = vector.broadcast %cst_85 : f32 to vector<8x128xf32>
    %385 = arith.addf %384, %383 : vector<8x128xf32>
    %386 = arith.divf %384, %385 : vector<8x128xf32>
    %387 = vector.extract_strided_slice %374 {offsets = [0, 256], sizes = [8, 128], strides = [1, 1]} : vector<8x512xf32> to vector<8x128xf32>
    %388 = vector.extract_strided_slice %374 {offsets = [0, 384], sizes = [8, 128], strides = [1, 1]} : vector<8x512xf32> to vector<8x128xf32>
    %389 = arith.mulf %380, %388 : vector<8x128xf32>
    %390 = arith.addf %387, %389 : vector<8x128xf32>
    %391 = math.tanh %390 : vector<8x128xf32>
    %cst_86 = arith.constant 1.000000e+00 : f32
    %392 = vector.broadcast %cst_86 : f32 to vector<8x128xf32>
    %393 = arith.subf %392, %386 : vector<8x128xf32>
    %394 = arith.mulf %393, %391 : vector<8x128xf32>
    %395 = arith.mulf %386, %337 : vector<8x128xf32>
    %396 = arith.addf %394, %395 : vector<8x128xf32>
    %c40_87 = arith.constant 40 : index
    %c0_88 = arith.constant 0 : index
    %397 = vector.load %arg11[%c40_87, %c0_88] : memref<64x128xf32, #tpu.memory_space<vmem>>, vector<8x128xf32>
    tpu.vector_store %arg11[%c40_87, %c0_88], %396 {strides = array<i32>} : memref<64x128xf32, #tpu.memory_space<vmem>>, vector<8x128xf32>,
    %c56 = arith.constant 56 : index
    %c0_89 = arith.constant 0 : index
    %398 = vector.load %arg10[%c56, %c0_89] : memref<64x384xf32, #tpu.memory_space<vmem>>, vector<8x384xf32>
    %399 = arith.truncf %369 : vector<8x128xf32> to vector<8x128xbf16>
    %cst_90 = arith.constant dense<0.000000e+00> : vector<8x384xf32>
    %400 = tpu.matmul %399, %7, %cst_90 {dimension_numbers = #tpu.dot_dimension_numbers<[1], [0], [0], [1], [0, 0, 1, 1], [], []>} : vector<8x128xbf16>, vector<128x384xbf16>, vector<8x384xf32> -> vector<8x384xf32>
    %401 = vector.extract_strided_slice %398 {offsets = [0, 0], sizes = [8, 128], strides = [1, 1]} : vector<8x384xf32> to vector<8x128xf32>
    %402 = vector.extract_strided_slice %400 {offsets = [0, 0], sizes = [8, 128], strides = [1, 1]} : vector<8x384xf32> to vector<8x128xf32>
    %403 = arith.addf %401, %402 : vector<8x128xf32>
    %404 = arith.negf %403 : vector<8x128xf32>
    %405 = math.exp %404 : vector<8x128xf32>
    %cst_91 = arith.constant 1.000000e+00 : f32
    %406 = vector.broadcast %cst_91 : f32 to vector<8x128xf32>
    %407 = arith.addf %406, %405 : vector<8x128xf32>
    %408 = arith.divf %406, %407 : vector<8x128xf32>
    %409 = vector.extract_strided_slice %398 {offsets = [0, 128], sizes = [8, 128], strides = [1, 1]} : vector<8x384xf32> to vector<8x128xf32>
    %410 = vector.extract_strided_slice %400 {offsets = [0, 128], sizes = [8, 128], strides = [1, 1]} : vector<8x384xf32> to vector<8x128xf32>
    %411 = arith.addf %409, %410 : vector<8x128xf32>
    %412 = arith.negf %411 : vector<8x128xf32>
    %413 = math.exp %412 : vector<8x128xf32>
    %cst_92 = arith.constant 1.000000e+00 : f32
    %414 = vector.broadcast %cst_92 : f32 to vector<8x128xf32>
    %415 = arith.addf %414, %413 : vector<8x128xf32>
    %416 = arith.divf %414, %415 : vector<8x128xf32>
    %417 = vector.extract_strided_slice %398 {offsets = [0, 256], sizes = [8, 128], strides = [1, 1]} : vector<8x384xf32> to vector<8x128xf32>
    %418 = vector.extract_strided_slice %400 {offsets = [0, 256], sizes = [8, 128], strides = [1, 1]} : vector<8x384xf32> to vector<8x128xf32>
    %419 = vector.broadcast %9 : vector<1x128xf32> to vector<8x128xf32>
    %420 = arith.addf %418, %419 : vector<8x128xf32>
    %421 = arith.mulf %408, %420 : vector<8x128xf32>
    %422 = arith.addf %417, %421 : vector<8x128xf32>
    %423 = math.tanh %422 : vector<8x128xf32>
    %cst_93 = arith.constant 1.000000e+00 : f32
    %424 = vector.broadcast %cst_93 : f32 to vector<8x128xf32>
    %425 = arith.subf %424, %416 : vector<8x128xf32>
    %426 = arith.mulf %425, %423 : vector<8x128xf32>
    %427 = arith.mulf %416, %369 : vector<8x128xf32>
    %428 = arith.addf %426, %427 : vector<8x128xf32>
    %429 = tpu.concatenate %369, %396 in 1 : vector<8x128xf32>, vector<8x128xf32> -> vector<8x256xf32>
    %430 = arith.truncf %429 : vector<8x256xf32> to vector<8x256xbf16>
    %cst_94 = arith.constant dense<0.000000e+00> : vector<8x512xf32>
    %431 = tpu.matmul %430, %8, %cst_94 {dimension_numbers = #tpu.dot_dimension_numbers<[1], [0], [0], [1], [0, 0, 1, 1], [], []>} : vector<8x256xbf16>, vector<256x512xbf16>, vector<8x512xf32> -> vector<8x512xf32>
    %432 = vector.broadcast %10 : vector<1x512xf32> to vector<8x512xf32>
    %433 = arith.addf %431, %432 : vector<8x512xf32>
    %434 = vector.extract_strided_slice %433 {offsets = [0, 0], sizes = [8, 128], strides = [1, 1]} : vector<8x512xf32> to vector<8x128xf32>
    %435 = arith.negf %434 : vector<8x128xf32>
    %436 = math.exp %435 : vector<8x128xf32>
    %cst_95 = arith.constant 1.000000e+00 : f32
    %437 = vector.broadcast %cst_95 : f32 to vector<8x128xf32>
    %438 = arith.addf %437, %436 : vector<8x128xf32>
    %439 = arith.divf %437, %438 : vector<8x128xf32>
    %440 = vector.extract_strided_slice %433 {offsets = [0, 128], sizes = [8, 128], strides = [1, 1]} : vector<8x512xf32> to vector<8x128xf32>
    %441 = arith.negf %440 : vector<8x128xf32>
    %442 = math.exp %441 : vector<8x128xf32>
    %cst_96 = arith.constant 1.000000e+00 : f32
    %443 = vector.broadcast %cst_96 : f32 to vector<8x128xf32>
    %444 = arith.addf %443, %442 : vector<8x128xf32>
    %445 = arith.divf %443, %444 : vector<8x128xf32>
    %446 = vector.extract_strided_slice %433 {offsets = [0, 256], sizes = [8, 128], strides = [1, 1]} : vector<8x512xf32> to vector<8x128xf32>
    %447 = vector.extract_strided_slice %433 {offsets = [0, 384], sizes = [8, 128], strides = [1, 1]} : vector<8x512xf32> to vector<8x128xf32>
    %448 = arith.mulf %439, %447 : vector<8x128xf32>
    %449 = arith.addf %446, %448 : vector<8x128xf32>
    %450 = math.tanh %449 : vector<8x128xf32>
    %cst_97 = arith.constant 1.000000e+00 : f32
    %451 = vector.broadcast %cst_97 : f32 to vector<8x128xf32>
    %452 = arith.subf %451, %445 : vector<8x128xf32>
    %453 = arith.mulf %452, %450 : vector<8x128xf32>
    %454 = arith.mulf %445, %396 : vector<8x128xf32>
    %455 = arith.addf %453, %454 : vector<8x128xf32>
    %c48_98 = arith.constant 48 : index
    %c0_99 = arith.constant 0 : index
    %456 = vector.load %arg11[%c48_98, %c0_99] : memref<64x128xf32, #tpu.memory_space<vmem>>, vector<8x128xf32>
    tpu.vector_store %arg11[%c48_98, %c0_99], %455 {strides = array<i32>} : memref<64x128xf32, #tpu.memory_space<vmem>>, vector<8x128xf32>,
    %457 = tpu.concatenate %428, %455 in 1 : vector<8x128xf32>, vector<8x128xf32> -> vector<8x256xf32>
    %458 = arith.truncf %457 : vector<8x256xf32> to vector<8x256xbf16>
    %cst_100 = arith.constant dense<0.000000e+00> : vector<8x512xf32>
    %459 = tpu.matmul %458, %8, %cst_100 {dimension_numbers = #tpu.dot_dimension_numbers<[1], [0], [0], [1], [0, 0, 1, 1], [], []>} : vector<8x256xbf16>, vector<256x512xbf16>, vector<8x512xf32> -> vector<8x512xf32>
    %460 = vector.broadcast %10 : vector<1x512xf32> to vector<8x512xf32>
    %461 = arith.addf %459, %460 : vector<8x512xf32>
    %462 = vector.extract_strided_slice %461 {offsets = [0, 0], sizes = [8, 128], strides = [1, 1]} : vector<8x512xf32> to vector<8x128xf32>
    %463 = arith.negf %462 : vector<8x128xf32>
    %464 = math.exp %463 : vector<8x128xf32>
    %cst_101 = arith.constant 1.000000e+00 : f32
    %465 = vector.broadcast %cst_101 : f32 to vector<8x128xf32>
    %466 = arith.addf %465, %464 : vector<8x128xf32>
    %467 = arith.divf %465, %466 : vector<8x128xf32>
    %468 = vector.extract_strided_slice %461 {offsets = [0, 128], sizes = [8, 128], strides = [1, 1]} : vector<8x512xf32> to vector<8x128xf32>
    %469 = arith.negf %468 : vector<8x128xf32>
    %470 = math.exp %469 : vector<8x128xf32>
    %cst_102 = arith.constant 1.000000e+00 : f32
    %471 = vector.broadcast %cst_102 : f32 to vector<8x128xf32>
    %472 = arith.addf %471, %470 : vector<8x128xf32>
    %473 = arith.divf %471, %472 : vector<8x128xf32>
    %474 = vector.extract_strided_slice %461 {offsets = [0, 256], sizes = [8, 128], strides = [1, 1]} : vector<8x512xf32> to vector<8x128xf32>
    %475 = vector.extract_strided_slice %461 {offsets = [0, 384], sizes = [8, 128], strides = [1, 1]} : vector<8x512xf32> to vector<8x128xf32>
    %476 = arith.mulf %467, %475 : vector<8x128xf32>
    %477 = arith.addf %474, %476 : vector<8x128xf32>
    %478 = math.tanh %477 : vector<8x128xf32>
    %cst_103 = arith.constant 1.000000e+00 : f32
    %479 = vector.broadcast %cst_103 : f32 to vector<8x128xf32>
    %480 = arith.subf %479, %473 : vector<8x128xf32>
    %481 = arith.mulf %480, %478 : vector<8x128xf32>
    %482 = arith.mulf %473, %455 : vector<8x128xf32>
    %483 = arith.addf %481, %482 : vector<8x128xf32>
    %c56_104 = arith.constant 56 : index
    %c0_105 = arith.constant 0 : index
    %484 = vector.load %arg11[%c56_104, %c0_105] : memref<64x128xf32, #tpu.memory_space<vmem>>, vector<8x128xf32>
    tpu.vector_store %arg11[%c56_104, %c0_105], %483 {strides = array<i32>} : memref<64x128xf32, #tpu.memory_space<vmem>>, vector<8x128xf32>,
    %c0_106 = arith.constant 0 : index
    %c0_107 = arith.constant 0 : index
    %485 = vector.load %arg11[%c0_106, %c0_107] : memref<64x128xf32, #tpu.memory_space<vmem>>, vector<8x128xf32>
    %c0_108 = arith.constant 0 : index
    %c0_109 = arith.constant 0 : index
    %486 = vector.load %arg1[%c0_108, %c0_109] : memref<64x128xf32, #tpu.memory_space<vmem>>, vector<8x128xf32>
    %487 = arith.mulf %485, %486 : vector<8x128xf32>
    %c8_110 = arith.constant 8 : index
    %c0_111 = arith.constant 0 : index
    %488 = vector.load %arg11[%c8_110, %c0_111] : memref<64x128xf32, #tpu.memory_space<vmem>>, vector<8x128xf32>
    %c8_112 = arith.constant 8 : index
    %c0_113 = arith.constant 0 : index
    %489 = vector.load %arg1[%c8_112, %c0_113] : memref<64x128xf32, #tpu.memory_space<vmem>>, vector<8x128xf32>
    %490 = arith.mulf %488, %489 : vector<8x128xf32>
    %491 = arith.addf %487, %490 : vector<8x128xf32>
    %c16_114 = arith.constant 16 : index
    %c0_115 = arith.constant 0 : index
    %492 = vector.load %arg11[%c16_114, %c0_115] : memref<64x128xf32, #tpu.memory_space<vmem>>, vector<8x128xf32>
    %c16_116 = arith.constant 16 : index
    %c0_117 = arith.constant 0 : index
    %493 = vector.load %arg1[%c16_116, %c0_117] : memref<64x128xf32, #tpu.memory_space<vmem>>, vector<8x128xf32>
    %494 = arith.mulf %492, %493 : vector<8x128xf32>
    %495 = arith.addf %491, %494 : vector<8x128xf32>
    %c24_118 = arith.constant 24 : index
    %c0_119 = arith.constant 0 : index
    %496 = vector.load %arg11[%c24_118, %c0_119] : memref<64x128xf32, #tpu.memory_space<vmem>>, vector<8x128xf32>
    %c24_120 = arith.constant 24 : index
    %c0_121 = arith.constant 0 : index
    %497 = vector.load %arg1[%c24_120, %c0_121] : memref<64x128xf32, #tpu.memory_space<vmem>>, vector<8x128xf32>
    %498 = arith.mulf %496, %497 : vector<8x128xf32>
    %499 = arith.addf %495, %498 : vector<8x128xf32>
    %c32_122 = arith.constant 32 : index
    %c0_123 = arith.constant 0 : index
    %500 = vector.load %arg11[%c32_122, %c0_123] : memref<64x128xf32, #tpu.memory_space<vmem>>, vector<8x128xf32>
    %c32_124 = arith.constant 32 : index
    %c0_125 = arith.constant 0 : index
    %501 = vector.load %arg1[%c32_124, %c0_125] : memref<64x128xf32, #tpu.memory_space<vmem>>, vector<8x128xf32>
    %502 = arith.mulf %500, %501 : vector<8x128xf32>
    %503 = arith.addf %499, %502 : vector<8x128xf32>
    %c40_126 = arith.constant 40 : index
    %c0_127 = arith.constant 0 : index
    %504 = vector.load %arg11[%c40_126, %c0_127] : memref<64x128xf32, #tpu.memory_space<vmem>>, vector<8x128xf32>
    %c40_128 = arith.constant 40 : index
    %c0_129 = arith.constant 0 : index
    %505 = vector.load %arg1[%c40_128, %c0_129] : memref<64x128xf32, #tpu.memory_space<vmem>>, vector<8x128xf32>
    %506 = arith.mulf %504, %505 : vector<8x128xf32>
    %507 = arith.addf %503, %506 : vector<8x128xf32>
    %c48_130 = arith.constant 48 : index
    %c0_131 = arith.constant 0 : index
    %508 = vector.load %arg11[%c48_130, %c0_131] : memref<64x128xf32, #tpu.memory_space<vmem>>, vector<8x128xf32>
    %c48_132 = arith.constant 48 : index
    %c0_133 = arith.constant 0 : index
    %509 = vector.load %arg1[%c48_132, %c0_133] : memref<64x128xf32, #tpu.memory_space<vmem>>, vector<8x128xf32>
    %510 = arith.mulf %508, %509 : vector<8x128xf32>
    %511 = arith.addf %507, %510 : vector<8x128xf32>
    %c56_134 = arith.constant 56 : index
    %c0_135 = arith.constant 0 : index
    %512 = vector.load %arg11[%c56_134, %c0_135] : memref<64x128xf32, #tpu.memory_space<vmem>>, vector<8x128xf32>
    %c56_136 = arith.constant 56 : index
    %c0_137 = arith.constant 0 : index
    %513 = vector.load %arg1[%c56_136, %c0_137] : memref<64x128xf32, #tpu.memory_space<vmem>>, vector<8x128xf32>
    %514 = arith.mulf %512, %513 : vector<8x128xf32>
    %515 = arith.addf %511, %514 : vector<8x128xf32>
    %c0_138 = arith.constant 0 : index
    %c0_139 = arith.constant 0 : index
    %516 = vector.load %arg9[%c0_138, %c0_139] : memref<8x128xf32, #tpu.memory_space<vmem>>, vector<8x128xf32>
    tpu.vector_store %arg9[%c0_138, %c0_139], %515 {strides = array<i32>} : memref<8x128xf32, #tpu.memory_space<vmem>>, vector<8x128xf32>,
    return
  }
  func.func @transform_0(%arg0: i32) -> (i32, i32) {
    %c0_i32 = arith.constant 0 : i32
    %c0_i32_0 = arith.constant 0 : i32
    %c0_i32_1 = arith.constant 0 : i32
    return %c0_i32, %c0_i32_0 : i32, i32
  }
  func.func @transform_1(%arg0: i32) -> (i32, i32) {
    %c0_i32 = arith.constant 0 : i32
    %c0_i32_0 = arith.constant 0 : i32
    %c0_i32_1 = arith.constant 0 : i32
    return %c0_i32, %c0_i32_0 : i32, i32
  }
  func.func @transform_2(%arg0: i32) -> (i32, i32) {
    %c0_i32 = arith.constant 0 : i32
    %c0_i32_0 = arith.constant 0 : i32
    %c0_i32_1 = arith.constant 0 : i32
    return %c0_i32, %c0_i32_0 : i32, i32
  }
  func.func @transform_3(%arg0: i32) -> (i32, i32) {
    %c0_i32 = arith.constant 0 : i32
    %c0_i32_0 = arith.constant 0 : i32
    %c0_i32_1 = arith.constant 0 : i32
    return %c0_i32, %c0_i32_0 : i32, i32
  }
  func.func @transform_4(%arg0: i32) -> (i32, i32) {
    %c0_i32 = arith.constant 0 : i32
    %c0_i32_0 = arith.constant 0 : i32
    %c0_i32_1 = arith.constant 0 : i32
    return %c0_i32, %c0_i32_0 : i32, i32
  }
  func.func @transform_5(%arg0: i32) -> (i32, i32) {
    %c0_i32 = arith.constant 0 : i32
    %c0_i32_0 = arith.constant 0 : i32
    %c0_i32_1 = arith.constant 0 : i32
    return %c0_i32, %c0_i32_0 : i32, i32
  }
  func.func @transform_6(%arg0: i32) -> (i32, i32) {
    %c0_i32 = arith.constant 0 : i32
    %c0_i32_0 = arith.constant 0 : i32
    %c0_i32_1 = arith.constant 0 : i32
    return %c0_i32, %c0_i32_0 : i32, i32
  }
  func.func @transform_7(%arg0: i32) -> (i32, i32) {
    %c0_i32 = arith.constant 0 : i32
    %c0_i32_0 = arith.constant 0 : i32
    %c0_i32_1 = arith.constant 0 : i32
    return %c0_i32, %c0_i32_0 : i32, i32
  }
  func.func @transform_8(%arg0: i32) -> (i32, i32) {
    %c0_i32 = arith.constant 0 : i32
    %c0_i32_0 = arith.constant 0 : i32
    %c0_i32_1 = arith.constant 0 : i32
    return %c0_i32, %c0_i32_0 : i32, i32
  }
}

</mosaic_0001>

<bundles_post_ra>
// kernel: tpu_custom_call.1
= control target key start
LH: loop header
LB: loop body
LE: loop exit
PB: predicated region body
PF: predicated region fallthrough
CT: control target
= control target key end

     0   :  { %13 = vsyncpa [#allocation5], 0  ;;  %s5325_s0 = inlined_call_operand.hbm [shape: f32[64,128], index: 0, kind: input, shape index: {}]   ;;  %s5326_s1 = inlined_call_operand.hbm [shape: bf16[64,128], index: 1, kind: input, shape index: {}]   ;;  %s5327_s2 = inlined_call_operand.hbm [shape: bf16[128,384], index: 2, kind: input, shape index: {}]   ;;  %s5328_s3 = inlined_call_operand.hbm [shape: bf16[128,384], index: 3, kind: input, shape index: {}]   ;;  %s5329_s4 = inlined_call_operand.hbm [shape: bf16[256,512], index: 4, kind: input, shape index: {}]   ;;  %s5330_s5 = inlined_call_operand.hbm [shape: f32[1,384], index: 5, kind: input, shape index: {}]   ;;  %s5331_s6 = inlined_call_operand.vmem [shape: f32[1,128], index: 6, kind: input, shape index: {}]   ;;  %s5332_s7 = inlined_call_operand.vmem [shape: f32[1,512], index: 7, kind: input, shape index: {}]   ;;  %s5333_s8 = inlined_call_operand.hbm [shape: f32[8,128], index: 8, kind: output, shape index: {}]  }
   0x1   :  { %14 = vsyncpa [#allocation8], 0 }
   0x2   :  { %15 = vsyncpa [#allocation11], 0 }
   0x3   :  { %16 = vsyncpa [#allocation14], 0  ;;  %s35_s29 = sshll.u32 %s5326_s1, 4  ;;  %s36_s29 = int_to_ptr.hbm [resolvable:$true] %s35_s29 }
   0x4   :  { %17 = vsyncpa [#allocation6], 0  ;;  %s3950_s30 = smov [#allocation7]   ;;  %s3951_s10 = smov 64  }
   0x5   :  { %s37_s9 = sshll.u32 %s3950_s30, 4  ;;  %s3952_s11 = smov 4   ;;  %s38_s9 = int_to_ptr.vmem [resolvable:$true] %s37_s9 }
   0x6   :  { %43 = dma.hbm_to_vmem [thread:$0]  %s36_s29, 512, %s38_s9, [#allocation8], %s3951_s10, %s3951_s10, %s3952_s11  }
   0x7   :  { %s61_s14 = sshll.u32 %s5328_s3, 4  ;;  %s3953_s15 = smov [#allocation10]   ;;  %s62_s14 = int_to_ptr.hbm [resolvable:$true] %s61_s14 }
   0x8   :  { %s63_s16 = sshll.u32 %s3953_s15, 4  ;;  %s22_s19 = sshll.u32 %s5325_s0, 4  ;;  %s64_s16 = int_to_ptr.vmem [resolvable:$true] %s63_s16  ;;  %s23_s19 = int_to_ptr.hbm [resolvable:$true] %s22_s19 }
   0x9   :  { %s3954_s1 = smov 192   ;;  %s3955_s20 = smov 12  }
   0xa   :  { %69 = dma.hbm_to_vmem [thread:$0]  %s62_s14, 3072, %s64_s16, [#allocation11], %s3954_s1, %s3954_s1, %s3955_s20  }
   0xb   :  { %s3956_s21 = smov [#allocation4]   ;;  %s48_s25 = sshll.u32 %s5327_s2, 4  ;;  %s49_s25 = int_to_ptr.hbm [resolvable:$true] %s48_s25 }
   0xc   :  { %s24_s22 = sshll.u32 %s3956_s21, 4  ;;  %s3957_s3 = smov 128   ;;  %s25_s22 = int_to_ptr.vmem [resolvable:$true] %s24_s22 }
   0xd   :  { %s3958_s26 = smov 8   ;;  %s3959_s27 = smov [#allocation9]  }
   0xe   :  { %30 = dma.hbm_to_vmem [thread:$0]  %s23_s19, 1024, %s25_s22, [#allocation5], %s3957_s3, %s3957_s3, %s3958_s26  }
   0xf   :  { %s50_s28 = sshll.u32 %s3959_s27, 4  ;;  %s74_s30 = sshll.u32 %s5329_s4, 4  ;;  %s51_s28 = int_to_ptr.vmem [resolvable:$true] %s50_s28  ;;  %s75_s30 = int_to_ptr.hbm [resolvable:$true] %s74_s30 }
  0x10   :  { %56 = dma.hbm_to_vmem [thread:$0]  %s49_s25, 3072, %s51_s28, [#allocation8], %s3954_s1, %s3954_s1, %s3955_s20  }
  0x11   :  { %s3960_s9 = smov [#allocation12]   ;;  %s88_s2 = sshll.u32 %s5330_s5, 4  ;;  %s89_s2 = int_to_ptr.hbm [resolvable:$true] %s88_s2 }
  0x12   :  { %s76_s10 = sshll.u32 %s3960_s9, 4  ;;  %s3961_s13 = smov 256   ;;  %s77_s10 = int_to_ptr.vmem [resolvable:$true] %s76_s10 }
  0x13   :  { %s3962_s14 = smov 16   ;;  %s3963_s15 = smov [#allocation13]  }
  0x14   :  { %82 = dma.hbm_to_vmem [thread:$0]  %s75_s30, 8192, %s77_s10, [#allocation11], %s3961_s13, %s3961_s13, %s3962_s14  }
  0x15   :  { %s90_s16 = sshll.u32 %s3963_s15, 4  ;;  %s91_s16 = int_to_ptr.vmem [resolvable:$true] %s90_s16 }
  0x16   :  { %93 = dma.hbm_to_vmem [thread:$0]  %s89_s2, 48, %s91_s16, [#allocation14]  }
  0x17   :  { %3940 = dma.done.wait [#allocation5], 1024  }
  0x18   :  { %3941 = vsyncadd [#allocation5], 4294966272 }
  0x19   :  { %3942 = dma.done.wait [#allocation8], 3584  }
  0x1a   :  { %3943 = vsyncadd [#allocation8], 4294963712 }
  0x1b   :  { %3944 = dma.done.wait [#allocation11], 11264  }
  0x1c   :  { %3945 = vsyncadd [#allocation11], 4294956032 }
  0x1d   :  { %3946 = dma.done.wait [#allocation14], 48  }
  0x1e   :  { %3947 = vsyncadd [#allocation14], 4294967248  ;;  %v3082_v0 = vld [vmem:[#allocation9 + $0xa8] sm:$0xf]  ;;  %v3502_v1 = vld [vmem:[#allocation9 + $0xb0] sm:$0xf0] }
  0x1f   :  { %v3178_v2 = vld [vmem:[#allocation10 + $0xa8] sm:$0xf]  ;;  %v3083_v3 = vor.u32 %v3502_v1, %v3082_v0  ;;  %v3526_v4 = vld [vmem:[#allocation10 + $0xb0] sm:$0xf0]  ;;  %v3070_v5 = vld [vmem:[#allocation9 + $0x90] sm:$0xf] }
  0x20   :  { %v3499_v6 = vld [vmem:[#allocation9 + $0x98] sm:$0xf0]  ;;  %v4030_v7 = vor.u32 %v3526_v4, %v3178_v2  ;;  %v3166_v8 = vld [vmem:[#allocation10 + $0x90] sm:$0xf]  ;;  %v3058_v12 = vld [vmem:[#allocation9 + $0x78] sm:$0xf] }
  0x21   :  { %v3523_v9 = vld [vmem:[#allocation10 + $0x98] sm:$0xf0]  ;;  %323 = vmatpush.bf16.msra.mxu0 %v3083_v3  ;;  %v3071_v10 = vor.u32 %v3499_v6, %v3070_v5  ;;  %v3496_v13 = vld [vmem:[#allocation9 + $0x80] sm:$0xf0]  ;;  %v3154_v14 = vld [vmem:[#allocation10 + $0x78] sm:$0xf] }
  0x22   :  { %5494 = vst [vmem:[#allocation21_spill] sm:$0xff] %v4030_v7  ;;  %663 = vmatpush.bf16.msra.mxu3 %v4030_v7  ;;  %v4033_v11 = vor.u32 %v3523_v9, %v3166_v8  ;;  %v3520_v15 = vld [vmem:[#allocation10 + $0x80] sm:$0xf0]  ;;  %v3059_v16 = vor.u32 %v3496_v13, %v3058_v12  ;;  %v3046_v18 = vld [vmem:[#allocation9 + $0x60] sm:$0xf]  ;;  %s2967_s24 = sshll.u32 %s5333_s8, 4  ;;  %s2968_s24 = int_to_ptr.hbm [resolvable:$true] %s2967_s24 }
  0x23   :  { %v4036_v17 = vor.u32 %v3520_v15, %v3154_v14  ;;  %v3493_v19 = vld [vmem:[#allocation9 + $0x68] sm:$0xf0]  ;;  %v3142_v20 = vld [vmem:[#allocation10 + $0x60] sm:$0xf]  ;;  %v3034_v23 = vld [vmem:[#allocation9 + $0x48] sm:$0xf] }
  0x24   :  { %5495 = vst [vmem:[#allocation22_spill] sm:$0xff] %v4033_v11  ;;  %v3517_v21 = vld [vmem:[#allocation10 + $0x68] sm:$0xf0]  ;;  %v3047_v22 = vor.u32 %v3493_v19, %v3046_v18  ;;  %v3490_v25 = vld [vmem:[#allocation9 + $0x50] sm:$0xf0] }
  0x25   :  { %324 = vmatpush.bf16.msra.mxu0 %v3071_v10  ;;  %5496 = vst [vmem:[#allocation23_spill] sm:$0xff] %v4036_v17  ;;  %v4039_v24 = vor.u32 %v3517_v21, %v3142_v20  ;;  %v3501_v26 = vld [vmem:[#allocation9 + $0xac] sm:$0xf]  ;;  %v3084_v27 = vld [vmem:[#allocation9 + $0xb4] sm:$0xf0]  ;;  %v3035_v33 = vor.u32 %v3490_v25, %v3034_v23  ;;  %v4057_v20 = vld [vmem:[#allocation7] sm:$0xff] }
  0x26   :  { %664 = vmatpush.bf16.msra.mxu3 %v4033_v11  ;;  %v3130_v28 = vld [vmem:[#allocation10 + $0x48] sm:$0xf]  ;;  %v3514_v29 = vld [vmem:[#allocation10 + $0x50] sm:$0xf0]  ;;  %v3087_v30 = vor.u32 %v3501_v26, %v3084_v27  ;;  %v3072_v32 = vld [vmem:[#allocation9 + $0x9c] sm:$0xf0] }
  0x27   :  { %5497 = vst [vmem:[#allocation24_spill] sm:$0xff] %v4039_v24  ;;  %v3498_v31 = vld [vmem:[#allocation9 + $0x94] sm:$0xf]  ;;  %v3022_v34 = vld [vmem:[#allocation9 + $0x30] sm:$0xf]  ;;  %v4042_v36 = vor.u32 %v3514_v29, %v3130_v28 }
  0x28   :  { %352 = vmatpush.bf16.msra.mxu1 %v3087_v30  ;;  %v3075_v35 = vor.u32 %v3498_v31, %v3072_v32  ;;  %v3487_v37 = vld [vmem:[#allocation9 + $0x38] sm:$0xf0]  ;;  %v3060_v39 = vld [vmem:[#allocation9 + $0x84] sm:$0xf0]  ;;  %v3118_v40 = vld [vmem:[#allocation10 + $0x30] sm:$0xf] }
  0x29   :  { %325 = vmatpush.bf16.msra.mxu0 %v3059_v16  ;;  %5498 = vst [vmem:[#allocation25_spill] sm:$0xff] %v4042_v36  ;;  %v3495_v38 = vld [vmem:[#allocation9 + $0x7c] sm:$0xf]  ;;  %v3023_v42 = vor.u32 %v3487_v37, %v3022_v34  ;;  %v3010_v43 = vld [vmem:[#allocation9 + $0x18] sm:$0xf] }
  0x2a   :  { %665 = vmatpush.bf16.msra.mxu3 %v4036_v17  ;;  %v3511_v41 = vld [vmem:[#allocation10 + $0x38] sm:$0xf0]  ;;  %v3484_v44 = vld [vmem:[#allocation9 + $0x20] sm:$0xf0]  ;;  %v3106_v45 = vld [vmem:[#allocation10 + $0x18] sm:$0xf]  ;;  %v3063_v46 = vor.u32 %v3495_v38, %v3060_v39 }
  0x2b   :  { %v4045_v47 = vor.u32 %v3511_v41, %v3118_v40  ;;  %v3492_v48 = vld [vmem:[#allocation9 + $0x64] sm:$0xf]  ;;  %v3048_v49 = vld [vmem:[#allocation9 + $0x6c] sm:$0xf0]  ;;  %v3503_v52 = vld [vmem:[#allocation9 + $0xb8] sm:$0xf0]  ;;  %v3011_v54 = vor.u32 %v3484_v44, %v3010_v43 }
  0x2c   :  { %353 = vmatpush.bf16.msra.mxu1 %v3075_v35  ;;  %v3508_v50 = vld [vmem:[#allocation10 + $0x20] sm:$0xf0]  ;;  %v3090_v51 = vld [vmem:[#allocation9 + $0xb0] sm:$0xf]  ;;  %v2998_v55 = vld [vmem:[#allocation9] sm:$0xf]  ;;  %v3051_v58 = vor.u32 %v3492_v48, %v3048_v49 }
  0x2d   :  { %326 = vmatpush.bf16.msra.mxu0 %v3047_v22  ;;  %v3091_v53 = vor.u32 %v3503_v52, %v3090_v51  ;;  %v3481_v56 = vld [vmem:[#allocation9 + $0x8] sm:$0xf0]  ;;  %v3094_v57 = vld [vmem:[#allocation10] sm:$0xf]  ;;  %v4048_v59 = vor.u32 %v3508_v50, %v3106_v45  ;;  %v3036_v62 = vld [vmem:[#allocation9 + $0x54] sm:$0xf0] }
  0x2e   :  { %666 = vmatpush.bf16.msra.mxu3 %v4039_v24  ;;  %v3505_v60 = vld [vmem:[#allocation10 + $0x8] sm:$0xf0]  ;;  %v3186_v63 = vld [vmem:[#allocation10 + $0xb0] sm:$0xf]  ;;  %v3527_v0 = vld [vmem:[#allocation10 + $0xb8] sm:$0xf0]  ;;  %v2999_v5 = vor.u32 %v3481_v56, %v2998_v55 }
  0x2f   :  { %v3489_v61 = vld [vmem:[#allocation9 + $0x4c] sm:$0xf]  ;;  %381 = vmatpush.bf16.msra.mxu2 %v3091_v53  ;;  %v3078_v1 = vld [vmem:[#allocation9 + $0x98] sm:$0xf]  ;;  %v3500_v4 = vld [vmem:[#allocation9 + $0xa0] sm:$0xf0]  ;;  %v4051_v9 = vor.u32 %v3505_v60, %v3094_v57  ;;  %v4053_v10 = vor.u32 %v3527_v0, %v3186_v63 }
  0x30   :  { %354 = vmatpush.bf16.msra.mxu1 %v3063_v46  ;;  %v3525_v2 = vld [vmem:[#allocation10 + $0xac] sm:$0xf]  ;;  %v3180_v3 = vld [vmem:[#allocation10 + $0xb4] sm:$0xf0]  ;;  %v3039_v6 = vor.u32 %v3489_v61, %v3036_v62  ;;  %v3079_v8 = vor.u32 %v3500_v4, %v3078_v1  ;;  %v3486_v13 = vld [vmem:[#allocation9 + $0x34] sm:$0xf] }
  0x31   :  { %327 = vmatpush.bf16.msra.mxu0 %v3035_v33  ;;  %5499 = vst [vmem:[#allocation26_spill] sm:$0xff] %v4051_v9  ;;  %v3174_v12 = vld [vmem:[#allocation10 + $0x98] sm:$0xf]  ;;  %v3024_v14 = vld [vmem:[#allocation9 + $0x3c] sm:$0xf0]  ;;  %v4055_v15 = vor.u32 %v3525_v2, %v3180_v3  ;;  %v3964_v39 = vmov 0  }
  0x32   :  { %667 = vmatpush.bf16.msra.mxu3 %v4042_v36  ;;  %v3524_v16 = vld [vmem:[#allocation10 + $0xa0] sm:$0xf0]  ;;  %v3066_v18 = vld [vmem:[#allocation9 + $0x80] sm:$0xf]  ;;  %v3497_v19 = vld [vmem:[#allocation9 + $0x88] sm:$0xf0]  ;;  %v3027_v25 = vor.u32 %v3486_v13, %v3024_v14 }
  0x33   :  { %382 = vmatpush.bf16.msra.mxu2 %v3079_v8  ;;  %v3522_v21 = vld [vmem:[#allocation10 + $0x94] sm:$0xf]  ;;  %v3168_v22 = vld [vmem:[#allocation10 + $0x9c] sm:$0xf0]  ;;  %v3067_v23 = vor.u32 %v3497_v19, %v3066_v18  ;;  %v4061_v26 = vor.u32 %v3524_v16, %v3174_v12  ;;  %v3483_v28 = vld [vmem:[#allocation9 + $0x1c] sm:$0xf] }
  0x34   :  { %355 = vmatpush.bf16.msra.mxu1 %v3051_v58  ;;  %v3162_v27 = vld [vmem:[#allocation10 + $0x80] sm:$0xf]  ;;  %v3012_v29 = vld [vmem:[#allocation9 + $0x24] sm:$0xf0]  ;;  %v4064_v30 = vor.u32 %v3522_v21, %v3168_v22  ;;  %v3521_v31 = vld [vmem:[#allocation10 + $0x88] sm:$0xf0] }
  0x35   :  { %328 = vmatpush.bf16.msra.mxu0 %v3023_v42  ;;  %5500 = vst [vmem:[#allocation27_spill] sm:$0xff] %v4061_v26  ;;  %v3054_v32 = vld [vmem:[#allocation9 + $0x68] sm:$0xf]  ;;  %v3494_v33 = vld [vmem:[#allocation9 + $0x70] sm:$0xf0]  ;;  %v3015_v40 = vor.u32 %v3483_v28, %v3012_v29  ;;  %v4069_v42 = vor.u32 %v3521_v31, %v3162_v27 }
  0x36   :  { %668 = vmatpush.bf16.msra.mxu3 %v4045_v47  ;;  %5501 = vst [vmem:[#allocation28_spill] sm:$0xff] %v4064_v30  ;;  %v3519_v34 = vld [vmem:[#allocation10 + $0x7c] sm:$0xf]  ;;  %v3156_v35 = vld [vmem:[#allocation10 + $0x84] sm:$0xf0]  ;;  %v3055_v37 = vor.u32 %v3494_v33, %v3054_v32 }
  0x37   :  { %383 = vmatpush.bf16.msra.mxu2 %v3067_v23  ;;  %v3042_v38 = vld [vmem:[#allocation9 + $0x50] sm:$0xf]  ;;  %v3491_v41 = vld [vmem:[#allocation9 + $0x58] sm:$0xf0]  ;;  %5502 = vst [vmem:[#allocation29_spill] sm:$0xff] %v4069_v42  ;;  %v4072_v45 = vor.u32 %v3519_v34, %v3156_v35 }
  0x38   :  { %356 = vmatpush.bf16.msra.mxu1 %v3039_v6  ;;  %v3480_v43 = vld [vmem:[#allocation9 + $0x4] sm:$0xf]  ;;  %v3000_v44 = vld [vmem:[#allocation9 + $0xc] sm:$0xf0]  ;;  %v3150_v48 = vld [vmem:[#allocation10 + $0x68] sm:$0xf]  ;;  %v3043_v50 = vor.u32 %v3491_v41, %v3042_v38 }
  0x39   :  { %329 = vmatpush.bf16.msra.mxu0 %v3011_v54  ;;  %5503 = vst [vmem:[#allocation30_spill] sm:$0xff] %v4072_v45  ;;  %v3516_v46 = vld [vmem:[#allocation10 + $0x64] sm:$0xf]  ;;  %v3518_v49 = vld [vmem:[#allocation10 + $0x70] sm:$0xf0]  ;;  %v3003_v54 = vor.u32 %v3480_v43, %v3000_v44  ;;  %v3477_v6 = vld [vmem:[#allocation7 + $0x8] sm:$0xff] }
  0x3a   :  { %669 = vmatpush.bf16.msra.mxu3 %v4048_v59  ;;  %v3144_v51 = vld [vmem:[#allocation10 + $0x6c] sm:$0xf0]  ;;  %v3030_v52 = vld [vmem:[#allocation9 + $0x38] sm:$0xf]  ;;  %v3488_v53 = vld [vmem:[#allocation9 + $0x40] sm:$0xf0]  ;;  %v4075_v55 = vor.u32 %v3518_v49, %v3150_v48 }
  0x3b   :  { %384 = vmatpush.bf16.msra.mxu2 %v3055_v37  ;;  %v4078_v56 = vor.u32 %v3516_v46, %v3144_v51  ;;  %v3513_v57 = vld [vmem:[#allocation10 + $0x4c] sm:$0xf]  ;;  %v3138_v58 = vld [vmem:[#allocation10 + $0x50] sm:$0xf]  ;;  %v3515_v60 = vld [vmem:[#allocation10 + $0x58] sm:$0xf0]  ;;  %v3031_v61 = vor.u32 %v3488_v53, %v3030_v52 }
  0x3c   :  { %357 = vmatpush.bf16.msra.mxu1 %v3027_v25  ;;  %5504 = vst [vmem:[#allocation31_spill] sm:$0xff] %v4075_v55  ;;  %v3132_v62 = vld [vmem:[#allocation10 + $0x54] sm:$0xf0]  ;;  %v3018_v63 = vld [vmem:[#allocation9 + $0x20] sm:$0xf]  ;;  %v4081_v1 = vor.u32 %v3515_v60, %v3138_v58  ;;  %v3478_v37 = vld [vmem:[#allocation7 + $0x10] sm:$0xff] }
  0x3d   :  { %330 = vmatpush.bf16.msra.mxu0 %v2999_v5  ;;  %5505 = vst [vmem:[#allocation32_spill] sm:$0xff] %v4078_v56  ;;  %v3485_v0 = vld [vmem:[#allocation9 + $0x28] sm:$0xf0]  ;;  %v4085_v2 = vor.u32 %v3513_v57, %v3132_v62  ;;  %v3126_v3 = vld [vmem:[#allocation10 + $0x38] sm:$0xf] }
  0x3e   :  { %670 = vmatpush.bf16.msra.mxu3 %v4051_v9  ;;  %5506 = vst [vmem:[#allocation33_spill] sm:$0xff] %v4081_v1  ;;  %v3512_v4 = vld [vmem:[#allocation10 + $0x40] sm:$0xf0]  ;;  %v3019_v5 = vor.u32 %v3485_v0, %v3018_v63  ;;  %v3510_v8 = vld [vmem:[#allocation10 + $0x34] sm:$0xf] }
  0x3f   :  { %385 = vmatpush.bf16.msra.mxu2 %v3043_v50  ;;  %5507 = vst [vmem:[#allocation34_spill] sm:$0xff] %v4085_v2  ;;  %v3120_v12 = vld [vmem:[#allocation10 + $0x3c] sm:$0xf0]  ;;  %v4089_v13 = vor.u32 %v3512_v4, %v3126_v3  ;;  %v3507_v16 = vld [vmem:[#allocation10 + $0x1c] sm:$0xf] }
  0x40   :  { %331 = vmatmul.bf16.vlgmr.msra.gmra.mxu0 %v4057_v20  ;;  %358 = vmatpush.bf16.msra.mxu1 %v3015_v40  ;;  %v4093_v14 = vor.u32 %v3510_v8, %v3120_v12  ;;  %v3006_v18 = vld [vmem:[#allocation9 + $0x8] sm:$0xf]  ;;  %v3482_v19 = vld [vmem:[#allocation9 + $0x10] sm:$0xf0]  ;;  %v3114_v22 = vld [vmem:[#allocation10 + $0x20] sm:$0xf] }
  0x41   :  { %689 = vmatpush.bf16.msrb.mxu0 %v4053_v10  ;;  %671 = vmatmul.bf16.vlgmr.msra.gmra.mxu3 %v3964_v39  ;;  %5508 = vst [vmem:[#allocation35_spill] sm:$0xff] %v4089_v13  ;;  %v3108_v21 = vld [vmem:[#allocation10 + $0x24] sm:$0xf0]  ;;  %v3509_v23 = vld [vmem:[#allocation10 + $0x28] sm:$0xf0]  ;;  %v3007_v25 = vor.u32 %v3482_v19, %v3006_v18 }
  0x42   :  { %676 = vmatpush.bf16.msrb.mxu3 %v4055_v15  ;;  %5509 = vst [vmem:[#allocation36_spill] sm:$0xff] %v4093_v14  ;;  %v4096_v27 = vor.u32 %v3509_v23, %v3114_v22  ;;  %v4100_v28 = vor.u32 %v3507_v16, %v3108_v21  ;;  %v3102_v29 = vld [vmem:[#allocation10 + $0x8] sm:$0xf]  ;;  %v3506_v31 = vld [vmem:[#allocation10 + $0x10] sm:$0xf0] }
  0x43   :  { %386 = vmatpush.bf16.msra.mxu2 %v3031_v61  ;;  %v3504_v32 = vld [vmem:[#allocation10 + $0x4] sm:$0xf]  ;;  %v3096_v33 = vld [vmem:[#allocation10 + $0xc] sm:$0xf0]  ;;  %v4105_v34 = vor.u32 %v3506_v31, %v3102_v29  ;;  %v3306_v40 = vld [vmem:[#allocation12 + $0xe0] sm:$0xf] }
  0x44   :  { %359 = vmatpush.bf16.msra.mxu1 %v3003_v54  ;;  %5510 = vst [vmem:[#allocation37_spill] sm:$0xff] %v4096_v27  ;;  %v4108_v35 = vor.u32 %v3504_v32, %v3096_v33  ;;  %v3558_v41 = vld [vmem:[#allocation12 + $0xec] sm:$0xf0]  ;;  %v4134_v43 = vld [vmem:[#allocation13] sm:$0x7] }
  0x45   :  { %690 = vmatpush.bf16.msrb.mxu0 %v4061_v26  ;;  %5511 = vst [vmem:[#allocation38_spill] sm:$0xff] %v4100_v28  ;;  %v4136_v46 = vor.u32 %v3558_v41, %v3306_v40  ;;  %v4142_v49 = vperm.slane %v4134_v43, 0  ;;  %v3290_v50 = vld [vmem:[#allocation12 + $0xc0] sm:$0xf]  ;;  %v3554_v51 = vld [vmem:[#allocation12 + $0xcc] sm:$0xf0] }
  0x46   :  { %677 = vmatpush.bf16.msrb.mxu3 %v4064_v30  ;;  %5512 = vst [vmem:[#allocation39_spill] sm:$0xff] %v4105_v34  ;;  %v4144_v52 = vor.u32 %v3554_v51, %v3290_v50  ;;  %v3274_v53 = vld [vmem:[#allocation12 + $0xa0] sm:$0xf]  ;;  %v3550_v54 = vld [vmem:[#allocation12 + $0xac] sm:$0xf0] }
  0x47   :  { %360 = vmatmul.bf16.vlgmr.msra.gmra.mxu1 %v4057_v20  ;;  %387 = vmatpush.bf16.msra.mxu2 %v3019_v5  ;;  %5513 = vst [vmem:[#allocation40_spill] sm:$0xff] %v4108_v35  ;;  %v4148_v58 = vor.u32 %v3550_v54, %v3274_v53  ;;  %v3258_v63 = vld [vmem:[#allocation12 + $0x80] sm:$0xf]  ;;  %v3546_v0 = vld [vmem:[#allocation12 + $0x8c] sm:$0xf0]  ;;  %v4178_v53 = vperm.slane %v4134_v43, 1 }
  0x48   :  { %757 = vmatpush.bf16.msrb.mxu1 %v4030_v7  ;;  %5514 = vst [vmem:[#allocation41_spill] sm:$0xff] %v4136_v46  ;;  %v4154_v3 = vor.u32 %v3546_v0, %v3258_v63  ;;  %v3242_v5 = vld [vmem:[#allocation12 + $0x60] sm:$0xf]  ;;  %v3590_v16 = vld [vmem:[#allocation12 + $0x1ec] sm:$0xf0] }
  0x49   :  { %691 = vmatpush.bf16.msrb.mxu0 %v4069_v42  ;;  %5516 = vst [vmem:[#allocation43_spill] sm:$0xff] %v4142_v49  ;;  %v3434_v8 = vld [vmem:[#allocation12 + $0x1e0] sm:$0xf]  ;;  %v3556_v18 = vld [vmem:[#allocation12 + $0xe4] sm:$0xf] }
  0x4a   :  { %678 = vmatpush.bf16.msrb.mxu3 %v4072_v45  ;;  %5517 = vst [vmem:[#allocation44_spill] sm:$0xff] %v4144_v52  ;;  %v3308_v19 = vld [vmem:[#allocation12 + $0xf0] sm:$0xf0]  ;;  %v4161_v22 = vor.u32 %v3590_v16, %v3434_v8  ;;  %v3226_v32 = vld [vmem:[#allocation12 + $0x40] sm:$0xf] }
  0x4b   :  { %388 = vmatpush.bf16.msra.mxu2 %v3007_v25  ;;  %5518 = vst [vmem:[#allocation45_spill] sm:$0xff] %v4148_v58  ;;  %v4163_v23 = vor.u32 %v3556_v18, %v3308_v19  ;;  %v3588_v25 = vld [vmem:[#allocation12 + $0x1e4] sm:$0xf]  ;;  %v3436_v29 = vld [vmem:[#allocation12 + $0x1f0] sm:$0xf0] }
  0x4c   :  { %758 = vmatpush.bf16.msrb.mxu1 %v4033_v11  ;;  %5520 = vst [vmem:[#allocation47_spill] sm:$0xff] %v4154_v3  ;;  %v4166_v31 = vor.u32 %v3588_v25, %v3436_v29  ;;  %v3538_v33 = vld [vmem:[#allocation12 + $0x4c] sm:$0xf0]  ;;  %v3552_v40 = vld [vmem:[#allocation12 + $0xc4] sm:$0xf] }
  0x4d   :  { %692 = vmatpush.bf16.msrb.mxu0 %v4075_v55  ;;  %5523 = vst [vmem:[#allocation50_spill] sm:$0xff] %v4161_v22  ;;  %v3292_v41 = vld [vmem:[#allocation12 + $0xd0] sm:$0xf0]  ;;  %v3584_v51 = vld [vmem:[#allocation12 + $0x1c4] sm:$0xf] }
  0x4e   :  { %679 = vmatpush.bf16.msrb.mxu3 %v4078_v56  ;;  %389 = vmatmul.bf16.vlgmr.msra.gmra.mxu2 %v4057_v20  ;;  %v3479_v20 = vld [vmem:[#allocation7 + $0x18] sm:$0xff]  ;;  %5524 = vst [vmem:[#allocation51_spill] sm:$0xff] %v4163_v23  ;;  %v4175_v50 = vor.u32 %v3552_v40, %v3292_v41  ;;  %v3534_v8 = vld [vmem:[#allocation12 + $0x2c] sm:$0xf0]  ;;  %v3402_v16 = vld [vmem:[#allocation12 + $0x1a0] sm:$0xf] }
  0x4f   :  { %770 = vmatpush.bf16.msrb.mxu2 %v4055_v15  ;;  %5525 = vst [vmem:[#allocation52_spill] sm:$0xff] %v4166_v31  ;;  %v3582_v25 = vld [vmem:[#allocation12 + $0x1ac] sm:$0xf0]  ;;  %v3548_v29 = vld [vmem:[#allocation12 + $0xa4] sm:$0xf] }
  0x50   :  { %336 = vmatmul.bf16.gmra.mxu0 %v3477_v6  ;;  %759 = vmatpush.bf16.msrb.mxu1 %v4036_v17  ;;  %5528 = vst [vmem:[#allocation55_spill] sm:$0xff] %v4175_v50  ;;  %v3404_v40 = vld [vmem:[#allocation12 + $0x1b0] sm:$0xf0] }
  0x51   :  { %693 = vmatpush.bf16.msrb.mxu0 %v4081_v1  ;;  %5529 = vst [vmem:[#allocation56_spill] sm:$0xff] %v4178_v53 }
  0x52   :  { %680 = vmatpush.bf16.msrb.mxu3 %v4085_v2 }
  0x53   :  { %771 = vmatpush.bf16.msrb.mxu2 %v4064_v30 }
  0x54   :  { %760 = vmatpush.bf16.msrb.mxu1 %v4039_v24 }
  0x55   :  { %694 = vmatpush.bf16.msrb.mxu0 %v4089_v13 }
  0x56   :  { %681 = vmatpush.bf16.msrb.mxu3 %v4093_v14 }
  0x57   :  { %365 = vmatmul.bf16.gmra.mxu1 %v3477_v6  ;;  %772 = vmatpush.bf16.msrb.mxu2 %v4072_v45 }
  0x58   :  { %761 = vmatpush.bf16.msrb.mxu1 %v4042_v36 }
  0x59   :  { %695 = vmatpush.bf16.msrb.mxu0 %v4096_v27 }
  0x5a   :  { %682 = vmatpush.bf16.msrb.mxu3 %v4100_v28 }
  0x5b   :  { %773 = vmatpush.bf16.msrb.mxu2 %v4078_v56 }
  0x5c   :  { %762 = vmatpush.bf16.msrb.mxu1 %v4045_v47 }
  0x5d   :  { %696 = vmatpush.bf16.msrb.mxu0 %v4105_v34 }
  0x5e   :  { %683 = vmatpush.bf16.msrb.mxu3 %v4108_v35  ;;  %394 = vmatmul.bf16.gmra.mxu2 %v3477_v6  ;;  %v3542_v6 = vld [vmem:[#allocation12 + $0x6c] sm:$0xf0] }
  0x5f   :  { %774 = vmatpush.bf16.msrb.mxu2 %v4085_v2  ;;  %v4157_v12 = vor.u32 %v3542_v6, %v3242_v5  ;;  %v3210_v6 = vld [vmem:[#allocation12 + $0x20] sm:$0xf] }
  0x60   :  { %341 = vmatmul.bf16.gmra.mxu0 %v3478_v37  ;;  %763 = vmatpush.bf16.msrb.mxu1 %v4048_v59  ;;  %v4193_v19 = vor.u32 %v3534_v8, %v3210_v6  ;;  %v3544_v6 = vld [vmem:[#allocation12 + $0x84] sm:$0xf]  ;;  %v3260_v8 = vld [vmem:[#allocation12 + $0x90] sm:$0xf0] }
  0x61   :  { %684 = vmatmul.bf16.vlgmr.msrb.gmra.mxu3 %v3964_v39  ;;  %1174 = vmatpush.bf16.msra.mxu0 %v4136_v46  ;;  %5521 = vst [vmem:[#allocation48_spill] sm:$0xff] %v4157_v12 }
  0x62   :  { %783 = vmatpush.bf16.msra.mxu3 %v4053_v10  ;;  %5532 = vst [vmem:[#allocation59_spill] sm:$0xff] %v4193_v19 }
  0x63   :  { %775 = vmatpush.bf16.msrb.mxu2 %v4093_v14 }
  0x64   :  { %764 = vmatpush.bf16.msrb.mxu1 %v4051_v9 }
  0x65   :  { %1175 = vmatpush.bf16.msra.mxu0 %v4144_v52 }
  0x66   :  { %784 = vmatpush.bf16.msra.mxu3 %v4061_v26 }
  0x67   :  { %370 = vmatmul.bf16.gmra.mxu1 %v3478_v37  ;;  %776 = vmatpush.bf16.msrb.mxu2 %v4100_v28 }
  0x68   :  { %1187 = vmatpush.bf16.msra.mxu1 %v4161_v22 }
  0x69   :  { %1176 = vmatpush.bf16.msra.mxu0 %v4148_v58 }
  0x6a   :  { %785 = vmatpush.bf16.msra.mxu3 %v4069_v42 }
  0x6b   :  { %777 = vmatpush.bf16.msrb.mxu2 %v4108_v35 }
  0x6d   :  { %1177 = vmatpush.bf16.msra.mxu0 %v4154_v3 }
  0x6e   :  { %786 = vmatpush.bf16.msra.mxu3 %v4075_v55  ;;  %399 = vmatmul.bf16.gmra.mxu2 %v3478_v37  ;;  %v3418_v37 = vld [vmem:[#allocation12 + $0x1c0] sm:$0xf] }
  0x6f   :  { %1200 = vmatpush.bf16.msra.mxu2 %v4163_v23 }
  0x70   :  { %346 = vmatmul.bf16.gmra.mxu0 %v3479_v20 }
  0x71   :  { %1178 = vmatpush.bf16.msra.mxu0 %v4157_v12 }
  0x72   :  { %787 = vmatpush.bf16.msra.mxu3 %v4081_v1 }
  0x73   :  { %1201 = vmatpush.bf16.msra.mxu2 %v4175_v50 }
  0x76   :  { %788 = vmatpush.bf16.msra.mxu3 %v4089_v13 }
  0x77   :  { %375 = vmatmul.bf16.gmra.mxu1 %v3479_v20 }
  0x7a   :  { %789 = vmatpush.bf16.msra.mxu3 %v4096_v27 }
  0x7e   :  { %790 = vmatpush.bf16.msra.mxu3 %v4105_v34  ;;  %404 = vmatmul.bf16.gmra.mxu2 %v3479_v20  ;;  %v4171_v20 = vor.u32 %v3538_v33, %v3226_v32  ;;  %v3276_v32 = vld [vmem:[#allocation12 + $0xb0] sm:$0xf0]  ;;  %v4195_v33 = vor.u32 %v3582_v25, %v3402_v16  ;;  %v3576_v25 = vld [vmem:[#allocation12 + $0x184] sm:$0xf] }
  0x80   :  { %697 = vmatmul.bf16.vlgmr.msrb.gmra.mxu0 %v3964_v39  ;;  %5526 = vst [vmem:[#allocation53_spill] sm:$0xff] %v4171_v20 }
  0x81   :  { %1179 = vmatpush.bf16.msra.mxu0 %v4171_v20  ;;  %5533 = vst [vmem:[#allocation60_spill] sm:$0xff] %v4195_v33 }
  0x82   :  { %1213 = vmatpush.bf16.msrb.mxu3 %v4166_v31 }
  0x85   :  { %1180 = vmatpush.bf16.msra.mxu0 %v4193_v19 }
  0xbd   :  { %v332_v38 = vpop.f32.mrf.mxu0 }
  0xbe   :  { %v333_v39 = vadd.f32 %v332_v38, %v4142_v49  ;;  %v3586_v38 = vld [vmem:[#allocation12 + $0x1cc] sm:$0xf0] }
  0xc4   :  { %v672_v44 = vpop.f32.mrf.mxu3 }
  0xc5   :  { %v4138_v48 = vpop.f32.mrf.mxu0  ;;  %v702_v60 = vadd.f32 %v672_v44, %v333_v39  ;;  %v4173_v44 = vor.u32 %v3586_v38, %v3418_v37  ;;  %v3420_v39 = vld [vmem:[#allocation12 + $0x1d0] sm:$0xf0]  ;;  %v4197_v37 = vor.u32 %v3548_v29, %v3276_v32  ;;  %v3580_v38 = vld [vmem:[#allocation12 + $0x1a4] sm:$0xf]  ;;  %v3314_v32 = vld [vmem:[#allocation12 + $0xe8] sm:$0xf] }
  0xc6   :  { %5515 = vst [vmem:[#allocation42_spill] sm:$0xff] %v4138_v48  ;;  %v4181_v54 = vor.u32 %v3584_v51, %v3420_v39  ;;  %v4200_v51 = vor.u32 %v3580_v38, %v3404_v40  ;;  %v3388_v29 = vld [vmem:[#allocation12 + $0x190] sm:$0xf0] }
  0xc7   :  { %v3188_v4 = vmul.f32 -1.442695, %v702_v60  ;;  %5527 = vst [vmem:[#allocation54_spill] sm:$0xff] %v4173_v44  ;;  %v361_v60 = vpop.f32.mrf.mxu1  ;;  %1188 = vmatpush.bf16.msra.mxu1 %v4173_v44  ;;  %1202 = vmatpush.bf16.msra.mxu2 %v4197_v37  ;;  %v4216_v40 = vor.u32 %v3576_v25, %v3388_v29 }
  0xc8   :  { %5530 = vst [vmem:[#allocation57_spill] sm:$0xff] %v4181_v54  ;;  %1214 = vmatpush.bf16.msrb.mxu3 %v4181_v54 }
  0xc9   :  { %3610 = vpow2.f32 %v3188_v4  ;;  %v362_v4 = vadd.f32 %v361_v60, %v4178_v53  ;;  %5534 = vst [vmem:[#allocation61_spill] sm:$0xff] %v4197_v37  ;;  %v3530_v60 = vld [vmem:[#allocation12 + $0xc] sm:$0xf0] }
  0xca   :  { %5535 = vst [vmem:[#allocation62_spill] sm:$0xff] %v4200_v51 }
  0xcb   :  { %1189 = vmatpush.bf16.msra.mxu1 %v4195_v33  ;;  %5540 = vst [vmem:[#allocation67_spill] sm:$0xff] %v4216_v40 }
  0xcc   :  { %v674_v57 = vpop.f32.mrf.mxu3  ;;  %1215 = vmatpush.bf16.msrb.mxu3 %v4200_v51  ;;  %v3282_v51 = vld [vmem:[#allocation12 + $0xa8] sm:$0xf] }
  0xcd   :  { %v337_v61 = vpop.f32.mrf.mxu0 }
  0xce   :  { %v4151_v62 = vadd.f32 %v337_v61, %v4142_v49 }
  0xcf   :  { %v3611_v57 = vpop.eup %3610 }
  0xd0   :  { %5519 = vst [vmem:[#allocation46_spill] sm:$0xff] %v4151_v62  ;;  %v4186_v63 = vadd.f32 1.0, %v3611_v57  ;;  %v3194_v57 = vld [vmem:[#allocation12] sm:$0xf]  ;;  %1216 = vmatpush.bf16.msrb.mxu3 %v4216_v40  ;;  %v3570_v40 = vld [vmem:[#allocation12 + $0x14c] sm:$0xf0] }
  0xd2   :  { %3612 = vrcp.f32 %v4186_v63  ;;  %vm712_vm1 = vweird.f32 %v4186_v63 }
  0xd5   :  { %v4159_v21 = vpop.f32.mrf.mxu0 }
  0xd6   :  { %5522 = vst [vmem:[#allocation49_spill] sm:$0xff] %v4159_v21  ;;  %v3372_v21 = vld [vmem:[#allocation12 + $0x170] sm:$0xf0] }
  0xd8   :  { %v4213_v38 = vpop.eup %3612 }
  0xd9   :  { %v708_v25 = vmul.f32 %v4213_v38, %v4186_v63  ;;  %vm713_vm0 = vweird.f32 %v4213_v38 }
  0xda   :  { %vm4292_vm2 = vmor %vm712_vm1, %vm713_vm0 }
  0xdd   :  { %v342_v61 = vpop.f32.mrf.mxu0 }
  0xde   :  { %v4189_v0 = vadd.f32 %v342_v61, %v4142_v49  ;;  %v3386_v61 = vld [vmem:[#allocation12 + $0x180] sm:$0xf] }
  0xe0   :  { %5531 = vst [vmem:[#allocation58_spill] sm:$0xff] %v4189_v0  ;;  %v3572_v0 = vld [vmem:[#allocation12 + $0x164] sm:$0xf] }
  0xe1   :  { %v4230_v29 = vor.u32 %v3572_v0, %v3372_v21  ;;  %v3536_v0 = vld [vmem:[#allocation12 + $0x44] sm:$0xf] }
  0xe3   :  { %5544 = vst [vmem:[#allocation71_spill] sm:$0xff] %v4230_v29  ;;  %1217 = vmatpush.bf16.msrb.mxu3 %v4230_v29  ;;  %v3212_v29 = vld [vmem:[#allocation12 + $0x30] sm:$0xf0] }
  0xe4   :  { %v685_v5 = vpop.f32.mrf.mxu3 }
  0xe5   :  { %v722_v18 = vadd.f32 %v685_v5, %v362_v4  ;;  %v4202_v39 = vpop.f32.mrf.mxu0  ;;  %v4207_v4 = vor.u32 %v3530_v60, %v3194_v57  ;;  %v3578_v5 = vld [vmem:[#allocation12 + $0x18c] sm:$0xf0]  ;;  %v3370_v60 = vld [vmem:[#allocation12 + $0x160] sm:$0xf] }
  0xe6   :  { %5536 = vst [vmem:[#allocation63_spill] sm:$0xff] %v4202_v39  ;;  %v4209_v16 = vor.u32 %v3578_v5, %v3386_v61  ;;  %v3574_v61 = vld [vmem:[#allocation12 + $0x16c] sm:$0xf0]  ;;  %v3540_v5 = vld [vmem:[#allocation12 + $0x64] sm:$0xf] }
  0xe7   :  { %v3189_v41 = vmul.f32 -1.442695, %v722_v18  ;;  %5537 = vst [vmem:[#allocation64_spill] sm:$0xff] %v4207_v4  ;;  %v4211_v18 = vor.u32 %v3544_v6, %v3260_v8  ;;  %1181 = vmatpush.bf16.msra.mxu0 %v4207_v4  ;;  %v4223_v6 = vor.u32 %v3574_v61, %v3370_v60  ;;  %v3244_v8 = vld [vmem:[#allocation12 + $0x70] sm:$0xf0] }
  0xe8   :  { %5538 = vst [vmem:[#allocation65_spill] sm:$0xff] %v4209_v16  ;;  %1190 = vmatpush.bf16.msra.mxu1 %v4209_v16  ;;  %v3354_v61 = vld [vmem:[#allocation12 + $0x140] sm:$0xf] }
  0xe9   :  { %3614 = vpow2.f32 %v3189_v41  ;;  %5539 = vst [vmem:[#allocation66_spill] sm:$0xff] %v4211_v18  ;;  %v3559_v41 = vld [vmem:[#allocation12 + $0xf4] sm:$0xf0]  ;;  %1203 = vmatpush.bf16.msra.mxu2 %v4211_v18  ;;  %v4242_v21 = vor.u32 %v3570_v40, %v3354_v61  ;;  %v3566_v61 = vld [vmem:[#allocation12 + $0x12c] sm:$0xf0] }
  0xea   :  { %v4220_v57 = vor.u32 %v3559_v41, %v3314_v32  ;;  %5542 = vst [vmem:[#allocation69_spill] sm:$0xff] %v4223_v6  ;;  %v3298_v32 = vld [vmem:[#allocation12 + $0xc8] sm:$0xf]  ;;  %v3555_v41 = vld [vmem:[#allocation12 + $0xd4] sm:$0xf0] }
  0xeb   :  { %v4232_v53 = vor.u32 %v3555_v41, %v3298_v32  ;;  %5547 = vst [vmem:[#allocation74_spill] sm:$0xff] %v4242_v21  ;;  %v3356_v32 = vld [vmem:[#allocation12 + $0x150] sm:$0xf0] }
  0xec   :  { %v687_v39 = vpop.f32.mrf.mxu3  ;;  %5541 = vst [vmem:[#allocation68_spill] sm:$0xff] %v4220_v57  ;;  %1226 = vmatpush.bf16.msrb.mxu0 %v4220_v57  ;;  %1191 = vmatpush.bf16.msra.mxu1 %v4223_v6  ;;  %v718_v57 = vand.u32 2147483648, %v4186_v63 }
  0xed   :  { %v4228_v39 = vor.u32 %v3540_v5, %v3244_v8  ;;  %5545 = vst [vmem:[#allocation72_spill] sm:$0xff] %v4232_v53  ;;  %v347_v60 = vpop.f32.mrf.mxu0  ;;  %v3228_v5 = vld [vmem:[#allocation12 + $0x50] sm:$0xf0]  ;;  %v3568_v8 = vld [vmem:[#allocation12 + $0x144] sm:$0xf] }
  0xee   :  { %v4239_v18 = vadd.f32 %v347_v60, %v4142_v49  ;;  %v4246_v41 = vor.u32 %v3536_v0, %v3228_v5  ;;  %v3551_v60 = vld [vmem:[#allocation12 + $0xb4] sm:$0xf0]  ;;  %v3532_v49 = vld [vmem:[#allocation12 + $0x24] sm:$0xf]  ;;  %v3340_v5 = vld [vmem:[#allocation12 + $0x130] sm:$0xf0] }
  0xef   :  { %5543 = vst [vmem:[#allocation70_spill] sm:$0xff] %v4228_v39  ;;  %v3615_v62 = vpop.eup %3614  ;;  %1204 = vmatpush.bf16.msra.mxu2 %v4228_v39  ;;  %v4248_v39 = vor.u32 %v3568_v8, %v3356_v32  ;;  %v4251_v40 = vor.u32 %v3551_v60, %v3282_v51  ;;  %v3564_v0 = vld [vmem:[#allocation12 + $0x124] sm:$0xf]  ;;  %v4259_v32 = vor.u32 %v3532_v49, %v3212_v29  ;;  %v3266_v51 = vld [vmem:[#allocation12 + $0x88] sm:$0xf] }
  0xf0   :  { %v4234_v48 = vadd.f32 1.0, %v3615_v62  ;;  %5546 = vst [vmem:[#allocation73_spill] sm:$0xff] %v4239_v18  ;;  %v709_v62 = vsub.f32 1.0, %v708_v25  ;;  %1227 = vmatpush.bf16.msrb.mxu0 %v4232_v53  ;;  %v3338_v18 = vld [vmem:[#allocation12 + $0x120] sm:$0xf]  ;;  %1192 = vmatpush.bf16.msra.mxu1 %v4242_v21  ;;  %v4261_v37 = vor.u32 %v3564_v0, %v3340_v5 }
  0xf1   :  { %5548 = vst [vmem:[#allocation75_spill] sm:$0xff] %v4246_v41  ;;  %1218 = vmatpush.bf16.msrb.mxu3 %v4248_v39  ;;  %v4255_v25 = vor.u32 %v3566_v61, %v3338_v18  ;;  %v3547_v60 = vld [vmem:[#allocation12 + $0x94] sm:$0xf0]  ;;  %v3322_v53 = vld [vmem:[#allocation12 + $0x100] sm:$0xf] }
  0xf2   :  { %3616 = vrcp.f32 %v4234_v48  ;;  %5549 = vst [vmem:[#allocation76_spill] sm:$0xff] %v4248_v39  ;;  %v710_v8 = vmul.f32 %v4213_v38, %v709_v62  ;;  %v4263_v54 = vor.u32 %v3547_v60, %v3266_v51  ;;  %v3528_v39 = vld [vmem:[#allocation12 + $0x4] sm:$0xf]  ;;  %v3196_v18 = vld [vmem:[#allocation12 + $0x10] sm:$0xf0]  ;;  %vm732_vm4 = vweird.f32 %v4234_v48 }
  0xf3   :  { %5550 = vst [vmem:[#allocation77_spill] sm:$0xff] %v4251_v40  ;;  %1205 = vmatpush.bf16.msra.mxu2 %v4246_v41  ;;  %v3562_v41 = vld [vmem:[#allocation12 + $0x10c] sm:$0xf0]  ;;  %v3560_v49 = vld [vmem:[#allocation12 + $0x104] sm:$0xf]  ;;  %v4276_v51 = vor.u32 %v3528_v39, %v3196_v18 }
  0xf4   :  { %5551 = vst [vmem:[#allocation78_spill] sm:$0xff] %v4255_v25  ;;  %1228 = vmatpush.bf16.msrb.mxu0 %v4251_v40  ;;  %1193 = vmatpush.bf16.msra.mxu1 %v4255_v25  ;;  %v4270_v62 = vor.u32 %v3562_v41, %v3322_v53  ;;  %v3324_v29 = vld [vmem:[#allocation12 + $0x110] sm:$0xf0]  ;;  %v3250_v0 = vld [vmem:[#allocation12 + $0x68] sm:$0xf] }
  0xf5   :  { %5552 = vst [vmem:[#allocation79_spill] sm:$0xff] %v4259_v32  ;;  %v4267_v50 = vpop.f32.mrf.mxu0  ;;  %1219 = vmatpush.bf16.msrb.mxu3 %v4261_v37  ;;  %v4278_v60 = vor.u32 %v3560_v49, %v3324_v29  ;;  %v3543_v40 = vld [vmem:[#allocation12 + $0x74] sm:$0xf0]  ;;  %v3234_v39 = vld [vmem:[#allocation12 + $0x48] sm:$0xf]  ;;  %v4290_v49 = vperm.slane %v4134_v43, 2 }
  0xf6   :  { %5553 = vst [vmem:[#allocation80_spill] sm:$0xff] %v4261_v37  ;;  %v4283_v53 = vor.u32 %v3543_v40, %v3250_v0  ;;  %v716_v37 = vand.u32 2147483647, %v4186_v63  ;;  %v3539_v18 = vld [vmem:[#allocation12 + $0x54] sm:$0xf0]  ;;  %v719_v0 = vor.u32 1.1754944e-38, %v718_v57 }
  0xf7   :  { %5554 = vst [vmem:[#allocation81_spill] sm:$0xff] %v4263_v54  ;;  %1206 = vmatpush.bf16.msra.mxu2 %v4259_v32  ;;  %v4299_v40 = vld [vmem:[%s5331_s6] ss:$0 sm:$0xff]  ;;  %v4308_v29 = vor.u32 %v3539_v18, %v3234_v39  ;;  %v3535_v32 = vld [vmem:[#allocation12 + $0x34] sm:$0xf0] }
  0xf8   :  { %v4265_v61 = vpop.eup %3616  ;;  %5555 = vst [vmem:[#allocation82_spill] sm:$0xff] %v4267_v50  ;;  %v711_v50 = vadd.f32 %v4213_v38, %v710_v8  ;;  %1229 = vmatpush.bf16.msrb.mxu0 %v4263_v54  ;;  %1194 = vmatpush.bf16.msra.mxu1 %v4270_v62  ;;  %v390_v54 = vpop.f32.mrf.mxu2  ;;  %vm717_vm3 = vcmp.eq.f32.partialorder %v716_v37, 8.507059e+37  ;;  %v3202_v39 = vld [vmem:[#allocation12 + $0x8] sm:$0xf]  ;;  %v3531_v37 = vld [vmem:[#allocation12 + $0x14] sm:$0xf0] }
  0xf9   :  { %5556 = vst [vmem:[#allocation83_spill] sm:$0xff] %v4270_v62  ;;  %v728_v5 = vmul.f32 %v4265_v61, %v4234_v48  ;;  %1220 = vmatpush.bf16.msrb.mxu3 %v4278_v60  ;;  %vm733_vm5 = vweird.f32 %v4265_v61  ;;  %v4322_v8 = vor.u32 %v3531_v37, %v3202_v39  ;;  %v3444_v39 = vld [vmem:[#allocation12 + $0x1f8] sm:$0xf0] }
  0xfa   :  { %5557 = vst [vmem:[#allocation84_spill] sm:$0xff] %v4276_v51  ;;  %v715_v43 = vsel %vm4292_vm2, %v4213_v38, %v711_v50  ;;  %v738_v38 = vand.u32 2147483648, %v4234_v48  ;;  %vm734_vm6 = vmor %vm732_vm4, %vm733_vm5 }
  0xfb   :  { %5558 = vst [vmem:[#allocation85_spill] sm:$0xff] %v4278_v60  ;;  %v729_v41 = vsub.f32 1.0, %v728_v5  ;;  %1207 = vmatpush.bf16.msra.mxu2 %v4276_v51  ;;  %v3218_v5 = vld [vmem:[#allocation12 + $0x28] sm:$0xf]  ;;  %v391_v51 = vadd.f32 %v390_v54, %v4290_v49  ;;  %v720_v4 = vsel %vm717_vm3, %v719_v0, %v715_v43  ;;  %v736_v54 = vand.u32 2147483647, %v4234_v48 }
  0xfc   :  { %5559 = vst [vmem:[#allocation86_spill] sm:$0xff] %v4283_v53  ;;  %1230 = vmatpush.bf16.msrb.mxu0 %v4283_v53  ;;  %v4316_v50 = vor.u32 %v3535_v32, %v3218_v5  ;;  %v3442_v48 = vld [vmem:[#allocation12 + $0x1e8] sm:$0xf] }
  0xfd   :  { %5560 = vst [vmem:[#allocation87_spill] sm:$0xff] %v4290_v49  ;;  %v730_v63 = vmul.f32 %v4265_v61, %v729_v41  ;;  %v698_v62 = vpop.f32.mrf.mxu0  ;;  %vm737_vm7 = vcmp.eq.f32.partialorder %v736_v54, 8.507059e+37  ;;  %v3591_v49 = vld [vmem:[#allocation12 + $0x1f4] sm:$0xf0] }
  0xfe   :  { %5563 = vst [vmem:[#allocation88_spill] sm:$0xff] %v4308_v29  ;;  %v745_v60 = vadd.f32 %v4299_v40, %v698_v62  ;;  %v4331_v37 = vor.u32 %v3591_v49, %v3442_v48 }
  0xff   :  { %v731_v41 = vadd.f32 %v4265_v61, %v730_v63  ;;  %5564 = vst [vmem:[#allocation89_spill] sm:$0xff] %v4316_v50  ;;  %v739_v63 = vor.u32 1.1754944e-38, %v738_v38 }
 0x100   :  { %1231 = vmatpush.bf16.msrb.mxu0 %v4308_v29  ;;  %v746_v57 = vmul.f32 %v745_v60, %v720_v4  ;;  %5565 = vst [vmem:[#allocation90_spill] sm:$0xff] %v4322_v8 }
 0x101   :  { %v735_v62 = vsel %vm734_vm6, %v4265_v61, %v731_v41  ;;  %v3589_v41 = vld [vmem:[#allocation12 + $0x1ec] sm:$0xf] }
 0x102   :  { %v747_v18 = vadd.f32 %v746_v57, %v391_v51  ;;  %v740_v43 = vsel %vm737_vm7, %v739_v63, %v735_v62  ;;  %v3557_v51 = vld [vmem:[#allocation12 + $0xec] sm:$0xf]  ;;  %v3316_v57 = vld [vmem:[#allocation12 + $0xf8] sm:$0xf0]  ;;  %v4335_v62 = vor.u32 %v3589_v41, %v3444_v39  ;;  %v3587_v63 = vld [vmem:[#allocation12 + $0x1d4] sm:$0xf0] }
 0x103   :  { %v749_v4 = vsub.f32 1.0, %v740_v43  ;;  %v751_v5 = vmul.f32 0.0, %v740_v43  ;;  %v4333_v54 = vor.u32 %v3557_v51, %v3316_v57  ;;  %v3300_v43 = vld [vmem:[#allocation12 + $0xd8] sm:$0xf0]  ;;  %v3583_v51 = vld [vmem:[#allocation12 + $0x1b4] sm:$0xf0] }
 0x104   :  { %1232 = vmatpush.bf16.msrb.mxu0 %v4316_v50  ;;  %3618 = vtanh.f32 %v747_v18  ;;  %v3426_v18 = vld [vmem:[#allocation12 + $0x1c8] sm:$0xf]  ;;  %5568 = vst [vmem:[#allocation93_spill] sm:$0xff] %v4335_v62  ;;  %v3549_v57 = vld [vmem:[#allocation12 + $0xac] sm:$0xf] }
 0x105   :  { %v700_v32 = vpop.f32.mrf.mxu0  ;;  %5567 = vst [vmem:[#allocation92_spill] sm:$0xff] %v4333_v54  ;;  %v4343_v49 = vor.u32 %v3587_v63, %v3426_v18  ;;  %v3284_v41 = vld [vmem:[#allocation12 + $0xb8] sm:$0xf0]  ;;  %v3581_v39 = vld [vmem:[#allocation12 + $0x1ac] sm:$0xf] }
 0x106   :  { %v3553_v32 = vld [vmem:[#allocation12 + $0xcc] sm:$0xf]  ;;  %v4355_v63 = vor.u32 %v3549_v57, %v3284_v41  ;;  %v3378_v57 = vld [vmem:[#allocation12 + $0x168] sm:$0xf]  ;;  %v3575_v41 = vld [vmem:[#allocation12 + $0x174] sm:$0xf0] }
 0x108   :  { %1233 = vmatpush.bf16.msrb.mxu0 %v4322_v8  ;;  %5571 = vst [vmem:[#allocation96_spill] sm:$0xff] %v4355_v63 }
 0x10a   :  { %v3619_v60 = vpop.eup %3618 }
 0x10b   :  { %v750_v0 = vmul.f32 %v3619_v60, %v749_v4  ;;  %v3585_v4 = vld [vmem:[#allocation12 + $0x1cc] sm:$0xf]  ;;  %v3428_v60 = vld [vmem:[#allocation12 + $0x1d8] sm:$0xf0] }
 0x10c   :  { %v4348_v48 = vor.u32 %v3585_v4, %v3428_v60  ;;  %v3579_v4 = vld [vmem:[#allocation12 + $0x194] sm:$0xf0]  ;;  %v3545_v60 = vld [vmem:[#allocation12 + $0x8c] sm:$0xf] }
 0x10d   :  { %v4325_v61 = vadd.f32 %v751_v5, %v750_v0  ;;  %v4345_v0 = vor.u32 %v3553_v32, %v3300_v43  ;;  %v3410_v5 = vld [vmem:[#allocation12 + $0x1a8] sm:$0xf] }
 0x10e   :  { %5570 = vst [vmem:[#allocation95_spill] sm:$0xff] %v4348_v48  ;;  %v4353_v18 = vor.u32 %v3583_v51, %v3410_v5  ;;  %v3394_v32 = vld [vmem:[#allocation12 + $0x188] sm:$0xf] }
 0x10f   :  { %5566 = vst [vmem:[#allocation91_spill] sm:$0xff] %v4325_v61  ;;  %v4329_v38 = vpack.c.bf16 %v4325_v61, %v4325_v61  ;;  %v3412_v61 = vld [vmem:[#allocation12 + $0x1b8] sm:$0xf0]  ;;  %v4363_v5 = vor.u32 %v3579_v4, %v3394_v32  ;;  %v4373_v32 = vor.u32 %v3575_v41, %v3378_v57  ;;  %v3362_v4 = vld [vmem:[#allocation12 + $0x148] sm:$0xf] }
 0x110   :  { %5569 = vst [vmem:[#allocation94_spill] sm:$0xff] %v4345_v0  ;;  %v4358_v43 = vor.u32 %v3581_v39, %v3412_v61  ;;  %v3541_v39 = vld [vmem:[#allocation12 + $0x6c] sm:$0xf]  ;;  %v3567_v41 = vld [vmem:[#allocation12 + $0x134] sm:$0xf0] }
 0x111   :  { %765 = vmatmul.bf16.vlgmr.msrb.gmra.mxu1 %v4329_v38  ;;  %778 = vmatmul.bf16.vlgmr.msrb.gmra.mxu2 %v4329_v38  ;;  %5573 = vst [vmem:[#allocation98_spill] sm:$0xff] %v4363_v5 }
 0x112   :  { %791 = vmatmul.bf16.vlgmr.msra.gmra.mxu3 %v4329_v38  ;;  %1182 = vmatmul.bf16.vlgmr.msra.gmra.mxu0 %v4329_v38  ;;  %5572 = vst [vmem:[#allocation97_spill] sm:$0xff] %v4358_v43 }
 0x113   :  { %1239 = vmatpush.bf16.msrb.mxu1 %v4331_v37  ;;  %1252 = vmatpush.bf16.msrb.mxu2 %v4333_v54  ;;  %v3396_v54 = vld [vmem:[#allocation12 + $0x198] sm:$0xf0] }
 0x114   :  { %1265 = vmatpush.bf16.msra.mxu3 %v4335_v62  ;;  %1328 = vmatpush.bf16.msra.mxu0 %v4030_v7  ;;  %v3268_v62 = vld [vmem:[#allocation12 + $0x98] sm:$0xf0]  ;;  %v3577_v7 = vld [vmem:[#allocation12 + $0x18c] sm:$0xf] }
 0x115   :  { %v4365_v51 = vor.u32 %v3545_v60, %v3268_v62  ;;  %v4368_v61 = vor.u32 %v3577_v7, %v3396_v54  ;;  %v3571_v54 = vld [vmem:[#allocation12 + $0x154] sm:$0xf0]  ;;  %v3537_v60 = vld [vmem:[#allocation12 + $0x4c] sm:$0xf] }
 0x117   :  { %1240 = vmatpush.bf16.msrb.mxu1 %v4343_v49  ;;  %1253 = vmatpush.bf16.msrb.mxu2 %v4345_v0  ;;  %5574 = vst [vmem:[#allocation99_spill] sm:$0xff] %v4365_v51  ;;  %v3380_v0 = vld [vmem:[#allocation12 + $0x178] sm:$0xf0] }
 0x118   :  { %1266 = vmatpush.bf16.msra.mxu3 %v4348_v48  ;;  %1329 = vmatpush.bf16.msra.mxu0 %v4033_v11  ;;  %5575 = vst [vmem:[#allocation100_spill] sm:$0xff] %v4368_v61  ;;  %v3252_v48 = vld [vmem:[#allocation12 + $0x78] sm:$0xf0]  ;;  %v3573_v11 = vld [vmem:[#allocation12 + $0x16c] sm:$0xf] }
 0x119   :  { %v4375_v62 = vor.u32 %v3541_v39, %v3252_v48  ;;  %v4378_v7 = vor.u32 %v3573_v11, %v3380_v0  ;;  %v4385_v11 = vor.u32 %v3571_v54, %v3362_v4  ;;  %v3346_v48 = vld [vmem:[#allocation12 + $0x128] sm:$0xf]  ;;  %v3533_v39 = vld [vmem:[#allocation12 + $0x2c] sm:$0xf] }
 0x11a   :  { %v4395_v4 = vor.u32 %v3567_v41, %v3346_v48  ;;  %v3330_v54 = vld [vmem:[#allocation12 + $0x108] sm:$0xf] }
 0x11b   :  { %1241 = vmatpush.bf16.msrb.mxu1 %v4353_v18  ;;  %1254 = vmatpush.bf16.msrb.mxu2 %v4355_v63  ;;  %5576 = vst [vmem:[#allocation101_spill] sm:$0xff] %v4375_v62  ;;  %v3348_v63 = vld [vmem:[#allocation12 + $0x138] sm:$0xf0] }
 0x11c   :  { %1267 = vmatpush.bf16.msra.mxu3 %v4358_v43  ;;  %1330 = vmatpush.bf16.msra.mxu0 %v4036_v17  ;;  %5577 = vst [vmem:[#allocation102_spill] sm:$0xff] %v4378_v7  ;;  %v3236_v43 = vld [vmem:[#allocation12 + $0x58] sm:$0xf0]  ;;  %v3965_v17 = vmov 0.0|0.0  }
 0x11d   :  { %v4387_v0 = vor.u32 %v3537_v60, %v3236_v43  ;;  %v3529_v60 = vld [vmem:[#allocation12 + $0xc] sm:$0xf] }
 0x11f   :  { %1242 = vmatpush.bf16.msrb.mxu1 %v4363_v5  ;;  %1255 = vmatpush.bf16.msrb.mxu2 %v4365_v51  ;;  %v3569_v5 = vld [vmem:[#allocation12 + $0x14c] sm:$0xf]  ;;  %v3364_v51 = vld [vmem:[#allocation12 + $0x158] sm:$0xf0] }
 0x120   :  { %1268 = vmatpush.bf16.msra.mxu3 %v4368_v61  ;;  %1331 = vmatpush.bf16.msra.mxu0 %v4039_v24  ;;  %v4390_v57 = vor.u32 %v3569_v5, %v3364_v51  ;;  %v3220_v24 = vld [vmem:[#allocation12 + $0x38] sm:$0xf0]  ;;  %v3565_v61 = vld [vmem:[#allocation12 + $0x12c] sm:$0xf]  ;;  %v3563_v51 = vld [vmem:[#allocation12 + $0x114] sm:$0xf0] }
 0x121   :  { %1195 = vmatmul.bf16.vlgmr.msra.gmra.mxu1 %v3965_v17  ;;  %1208 = vmatmul.bf16.vlgmr.msra.gmra.mxu2 %v4329_v38  ;;  %v4397_v43 = vor.u32 %v3533_v39, %v3220_v24  ;;  %v4400_v5 = vor.u32 %v3565_v61, %v3348_v63  ;;  %v4405_v48 = vor.u32 %v3563_v51, %v3330_v54  ;;  %v5580_v63 = vld [vmem:[#allocation83_spill] sm:$0xff]  ;;  %v5583_v39 = vld [vmem:[#allocation72_spill] sm:$0xff]  ;;  %v5585_v51 = vld [vmem:[#allocation61_spill] sm:$0xff] }
 0x122   :  { %1221 = vmatmul.bf16.vlgmr.msrb.gmra.mxu3 %v3965_v17  ;;  %1234 = vmatmul.bf16.vlgmr.msrb.gmra.mxu0 %v4329_v38  ;;  %v5581_v61 = vld [vmem:[#allocation55_spill] sm:$0xff] }
 0x123   :  { %1243 = vmatpush.bf16.msrb.mxu1 %v4373_v32  ;;  %1256 = vmatpush.bf16.msrb.mxu2 %v4375_v62  ;;  %v3332_v62 = vld [vmem:[#allocation12 + $0x118] sm:$0xf0] }
 0x124   :  { %1269 = vmatpush.bf16.msra.mxu3 %v4378_v7  ;;  %1332 = vmatpush.bf16.msra.mxu0 %v4042_v36  ;;  %v3204_v7 = vld [vmem:[#allocation12 + $0x18] sm:$0xf0]  ;;  %v3561_v36 = vld [vmem:[#allocation12 + $0x10c] sm:$0xf] }
 0x125   :  { %v4407_v24 = vor.u32 %v3529_v60, %v3204_v7  ;;  %v4410_v41 = vor.u32 %v3561_v36, %v3332_v62  ;;  %v5578_v36 = vld [vmem:[#allocation64_spill] sm:$0xff]  ;;  %v4454_v62 = vpop.f32.mrf.mxu2  ;;  %v5582_v7 = vld [vmem:[#allocation57_spill] sm:$0xff]  ;;  %v5586_v60 = vld [vmem:[#allocation62_spill] sm:$0xff] }
 0x127   :  { %1244 = vmatpush.bf16.msrb.mxu1 %v4385_v11  ;;  %1257 = vmatpush.bf16.msrb.mxu2 %v4387_v0 }
 0x128   :  { %1270 = vmatpush.bf16.msra.mxu3 %v4390_v57  ;;  %1333 = vmatpush.bf16.msra.mxu0 %v4045_v47 }
 0x12b   :  { %1245 = vmatpush.bf16.msrb.mxu1 %v4395_v4  ;;  %1258 = vmatpush.bf16.msrb.mxu2 %v4397_v43 }
 0x12c   :  { %1271 = vmatpush.bf16.msra.mxu3 %v4400_v5  ;;  %1334 = vmatpush.bf16.msra.mxu0 %v4048_v59 }
 0x12f   :  { %1246 = vmatpush.bf16.msrb.mxu1 %v4405_v48  ;;  %1259 = vmatpush.bf16.msrb.mxu2 %v4407_v24 }
 0x130   :  { %1272 = vmatpush.bf16.msra.mxu3 %v4410_v41  ;;  %1335 = vmatpush.bf16.msra.mxu0 %v4051_v9 }
 0x132   :  { %1247 = vmatmul.bf16.vlgmr.msrb.gmra.mxu1 %v3965_v17  ;;  %1260 = vmatmul.bf16.vlgmr.msrb.gmra.mxu2 %v4329_v38  ;;  %v5579_v38 = vld [vmem:[#allocation68_spill] sm:$0xff] }
 0x133   :  { %1341 = vmatpush.bf16.msra.mxu1 %v4055_v15  ;;  %1354 = vmatpush.bf16.msra.mxu2 %v4053_v10 }
 0x134   :  { %1416 = vmatpush.bf16.msrb.mxu3 %v4136_v46  ;;  %1429 = vmatpush.bf16.msrb.mxu0 %v4161_v22 }
 0x135   :  { %1273 = vmatmul.bf16.vlgmr.msra.gmra.mxu3 %v3965_v17  ;;  %v363_v17 = vpop.f32.mrf.mxu1 }
 0x137   :  { %1342 = vmatpush.bf16.msra.mxu1 %v4064_v30  ;;  %1355 = vmatpush.bf16.msra.mxu2 %v4061_v26 }
 0x138   :  { %1417 = vmatpush.bf16.msrb.mxu3 %v4144_v52  ;;  %1430 = vmatpush.bf16.msrb.mxu0 %v4173_v44 }
 0x13b   :  { %1343 = vmatpush.bf16.msra.mxu1 %v4072_v45  ;;  %1356 = vmatpush.bf16.msra.mxu2 %v4069_v42 }
 0x13c   :  { %1418 = vmatpush.bf16.msrb.mxu3 %v4148_v58  ;;  %1431 = vmatpush.bf16.msrb.mxu0 %v4195_v33 }
 0x13d   :  { %v4458_v54 = vpop.f32.mrf.mxu1 }
 0x13e   :  { %5584 = vst [vmem:[#allocation103_spill] sm:$0xff] %v4458_v54  ;;  %v5595_v54 = vld [vmem:[#allocation75_spill] sm:$0xff] }
 0x13f   :  { %1344 = vmatpush.bf16.msra.mxu1 %v4078_v56  ;;  %1357 = vmatpush.bf16.msra.mxu2 %v4075_v55 }
 0x140   :  { %1419 = vmatpush.bf16.msrb.mxu3 %v4154_v3  ;;  %1432 = vmatpush.bf16.msrb.mxu0 %v4209_v16 }
 0x143   :  { %1345 = vmatpush.bf16.msra.mxu1 %v4085_v2  ;;  %1358 = vmatpush.bf16.msra.mxu2 %v4081_v1 }
 0x144   :  { %1420 = vmatpush.bf16.msrb.mxu3 %v4157_v12  ;;  %1433 = vmatpush.bf16.msrb.mxu0 %v4223_v6 }
 0x147   :  { %1346 = vmatpush.bf16.msra.mxu1 %v4093_v14  ;;  %1359 = vmatpush.bf16.msra.mxu2 %v4089_v13 }
 0x148   :  { %1421 = vmatpush.bf16.msrb.mxu3 %v4171_v20  ;;  %1434 = vmatpush.bf16.msrb.mxu0 %v4242_v21 }
 0x14b   :  { %1347 = vmatpush.bf16.msra.mxu1 %v4100_v28  ;;  %1360 = vmatpush.bf16.msra.mxu2 %v4096_v27 }
 0x14c   :  { %1422 = vmatpush.bf16.msrb.mxu3 %v4193_v19  ;;  %1435 = vmatpush.bf16.msrb.mxu0 %v4255_v25 }
 0x14f   :  { %1348 = vmatpush.bf16.msra.mxu1 %v4108_v35  ;;  %1361 = vmatpush.bf16.msra.mxu2 %v4105_v34 }
 0x150   :  { %1423 = vmatpush.bf16.msrb.mxu3 %v5578_v36  ;;  %1436 = vmatpush.bf16.msrb.mxu0 %v5580_v63  ;;  %v5588_v36 = vld [vmem:[#allocation66_spill] sm:$0xff]  ;;  %v5590_v63 = vld [vmem:[#allocation67_spill] sm:$0xff] }
 0x153   :  { %1442 = vmatpush.bf16.msrb.mxu1 %v4163_v23  ;;  %1455 = vmatpush.bf16.msrb.mxu2 %v4166_v31  ;;  %v5587_v31 = vld [vmem:[#allocation77_spill] sm:$0xff]  ;;  %v5592_v23 = vld [vmem:[#allocation70_spill] sm:$0xff] }
 0x154   :  { %1468 = vmatpush.bf16.msra.mxu3 %v5579_v38  ;;  %v4464_v38 = vpop.f32.mrf.mxu2 }
 0x155   :  { %5589 = vst [vmem:[#allocation104_spill] sm:$0xff] %v4464_v38  ;;  %v5598_v38 = vld [vmem:[#allocation79_spill] sm:$0xff] }
 0x157   :  { %1443 = vmatpush.bf16.msrb.mxu1 %v5581_v61  ;;  %1456 = vmatpush.bf16.msrb.mxu2 %v5582_v7  ;;  %v5591_v61 = vld [vmem:[#allocation81_spill] sm:$0xff]  ;;  %v4469_v7 = vpop.f32.mrf.mxu1 }
 0x158   :  { %1469 = vmatpush.bf16.msra.mxu3 %v5583_v39  ;;  %5593 = vst [vmem:[#allocation105_spill] sm:$0xff] %v4469_v7  ;;  %v5594_v39 = vld [vmem:[#allocation71_spill] sm:$0xff]  ;;  %v5601_v7 = vld [vmem:[#allocation84_spill] sm:$0xff] }
 0x15b   :  { %1444 = vmatpush.bf16.msrb.mxu1 %v5585_v51  ;;  %1457 = vmatpush.bf16.msrb.mxu2 %v5586_v60  ;;  %v5596_v60 = vld [vmem:[#allocation76_spill] sm:$0xff] }
 0x15c   :  { %1470 = vmatpush.bf16.msra.mxu3 %v5587_v31 }
 0x15f   :  { %1445 = vmatpush.bf16.msrb.mxu1 %v5588_v36  ;;  %1458 = vmatpush.bf16.msrb.mxu2 %v5590_v63  ;;  %v4476_v36 = vpop.f32.mrf.mxu2  ;;  %v5599_v63 = vld [vmem:[#allocation80_spill] sm:$0xff] }
 0x160   :  { %1471 = vmatpush.bf16.msra.mxu3 %v5591_v61  ;;  %5597 = vst [vmem:[#allocation106_spill] sm:$0xff] %v4476_v36 }
 0x163   :  { %1446 = vmatpush.bf16.msrb.mxu1 %v5592_v23  ;;  %1459 = vmatpush.bf16.msrb.mxu2 %v5594_v39  ;;  %v4481_v23 = vpop.f32.mrf.mxu1  ;;  %v5602_v39 = vld [vmem:[#allocation85_spill] sm:$0xff] }
 0x164   :  { %1472 = vmatpush.bf16.msra.mxu3 %v4283_v53  ;;  %5600 = vst [vmem:[#allocation107_spill] sm:$0xff] %v4481_v23  ;;  %v5610_v23 = vld [vmem:[#allocation43_spill] sm:$0xff] }
 0x167   :  { %1447 = vmatpush.bf16.msrb.mxu1 %v5595_v54  ;;  %1460 = vmatpush.bf16.msrb.mxu2 %v5596_v60  ;;  %v4486_v54 = vpop.f32.mrf.mxu2 }
 0x168   :  { %1473 = vmatpush.bf16.msra.mxu3 %v4308_v29  ;;  %5603 = vst [vmem:[#allocation108_spill] sm:$0xff] %v4486_v54  ;;  %v5612_v54 = vld [vmem:[#allocation56_spill] sm:$0xff] }
 0x169   :  { %v364_v51 = vadd.f32 %v363_v17, %v5612_v54 }
 0x16b   :  { %1448 = vmatpush.bf16.msrb.mxu1 %v5598_v38  ;;  %1461 = vmatpush.bf16.msrb.mxu2 %v5599_v63  ;;  %v4488_v60 = vpop.f32.mrf.mxu1 }
 0x16c   :  { %1474 = vmatpush.bf16.msra.mxu3 %v4316_v50  ;;  %5604 = vst [vmem:[#allocation109_spill] sm:$0xff] %v4488_v60 }
 0x16f   :  { %1449 = vmatpush.bf16.msrb.mxu1 %v5601_v7  ;;  %1462 = vmatpush.bf16.msrb.mxu2 %v5602_v39  ;;  %v4490_v29 = vpop.f32.mrf.mxu2  ;;  %v5611_v7 = vld [vmem:[#allocation42_spill] sm:$0xff] }
 0x170   :  { %1475 = vmatpush.bf16.msra.mxu3 %v4322_v8  ;;  %5605 = vst [vmem:[#allocation110_spill] sm:$0xff] %v4490_v29  ;;  %v335_v53 = vadd.f32 %v5611_v7, %v5610_v23 }
 0x173   :  { %v4492_v36 = vpop.f32.mrf.mxu1 }
 0x174   :  { %5606 = vst [vmem:[#allocation111_spill] sm:$0xff] %v4492_v36 }
 0x177   :  { %v4494_v38 = vpop.f32.mrf.mxu2 }
 0x178   :  { %5607 = vst [vmem:[#allocation112_spill] sm:$0xff] %v4494_v38  ;;  %v4506_v38 = vld [vmem:[%s5332_s7] sm:$0xf] }
 0x179   :  { %v4509_v7 = vperm.slane %v4506_v38, 0 }
 0x17b   :  { %v4496_v63 = vpop.f32.mrf.mxu1  ;;  %5613 = vst [vmem:[#allocation42_spill] sm:$0xff] %v4509_v7 }
 0x17c   :  { %5608 = vst [vmem:[#allocation113_spill] sm:$0xff] %v4496_v63 }
 0x17f   :  { %v4498_v50 = vpop.f32.mrf.mxu2 }
 0x180   :  { %5609 = vst [vmem:[#allocation114_spill] sm:$0xff] %v4498_v50 }
 0x18e   :  { %v766_v39 = vpop.f32.mrf.mxu1 }
 0x18f   :  { %v796_v61 = vadd.f32 %v766_v39, %v335_v53  ;;  %v1183_v8 = vpop.f32.mrf.mxu0 }
 0x191   :  { %v3190_v31 = vmul.f32 -1.442695, %v796_v61 }
 0x193   :  { %3620 = vpow2.f32 %v3190_v31  ;;  %v1184_v31 = vadd.f32 %v1183_v8, %v4509_v7 }
 0x194   :  { %v779_v60 = vpop.f32.mrf.mxu2 }
 0x195   :  { %v816_v29 = vadd.f32 %v779_v60, %v364_v51  ;;  %v792_v34 = vpop.f32.mrf.mxu3 }
 0x196   :  { %v768_v63 = vpop.f32.mrf.mxu1 }
 0x197   :  { %v3191_v50 = vmul.f32 -1.442695, %v816_v29  ;;  %v1185_v36 = vpop.f32.mrf.mxu0  ;;  %v4515_v29 = vperm.slane %v4506_v38, 1 }
 0x199   :  { %v3621_v25 = vpop.eup %3620  ;;  %3622 = vpow2.f32 %v3191_v50  ;;  %5614 = vst [vmem:[#allocation115_spill] sm:$0xff] %v4515_v29 }
 0x19a   :  { %v800_v53 = vadd.f32 1.0, %v3621_v25 }
 0x19c   :  { %3624 = vrcp.f32 %v800_v53  ;;  %v781_v17 = vpop.f32.mrf.mxu2  ;;  %vm806_vm9 = vweird.f32 %v800_v53 }
 0x19d   :  { %v794_v61 = vpop.f32.mrf.mxu3 }
 0x19e   :  { %v1196_v39 = vpop.f32.mrf.mxu1  ;;  %v812_v61 = vand.u32 2147483648, %v800_v53 }
 0x19f   :  { %v3623_v51 = vpop.eup %3622  ;;  %v1197_v60 = vadd.f32 %v1196_v39, %v1184_v31  ;;  %v4512_v23 = vpop.f32.mrf.mxu0  ;;  %v810_v31 = vand.u32 2147483647, %v800_v53 }
 0x1a0   :  { %v820_v54 = vadd.f32 1.0, %v3623_v51 }
 0x1a1   :  { %v3448_v63 = vmul.f32 -1.442695, %v1197_v60  ;;  %vm811_vm11 = vcmp.eq.f32.partialorder %v810_v31, 8.507059e+37 }
 0x1a2   :  { %v3625_v36 = vpop.eup %3624  ;;  %3626 = vrcp.f32 %v820_v54  ;;  %v830_v6 = vand.u32 2147483647, %v820_v54  ;;  %vm826_vm13 = vweird.f32 %v820_v54 }
 0x1a3   :  { %v802_v35 = vmul.f32 %v3625_v36, %v800_v53  ;;  %3628 = vpow2.f32 %v3448_v63  ;;  %vm807_vm8 = vweird.f32 %v3625_v36  ;;  %v813_v63 = vor.u32 1.1754944e-38, %v812_v61 }
 0x1a4   :  { %v1209_v25 = vpop.f32.mrf.mxu2  ;;  %vm808_vm10 = vmor %vm806_vm9, %vm807_vm8  ;;  %vm831_vm15 = vcmp.eq.f32.partialorder %v830_v6, 8.507059e+37 }
 0x1a5   :  { %v803_v50 = vsub.f32 1.0, %v802_v35  ;;  %v1210_v17 = vadd.f32 %v1209_v25, %v4515_v29  ;;  %v1222_v8 = vpop.f32.mrf.mxu3  ;;  %v836_v35 = vadd.f32 %v4299_v40, %v792_v34 }
 0x1a6   :  { %v1198_v7 = vpop.f32.mrf.mxu1 }
 0x1a7   :  { %v804_v19 = vmul.f32 %v3625_v36, %v803_v50  ;;  %v1223_v39 = vadd.f32 %v1222_v8, %v1210_v17  ;;  %v1237_v51 = vpop.f32.mrf.mxu0  ;;  %v5615_v7 = vld [vmem:[#allocation87_spill] sm:$0xff] }
 0x1a8   :  { %v3627_v60 = vpop.eup %3626  ;;  %v393_v50 = vadd.f32 %v4454_v62, %v5615_v7 }
 0x1a9   :  { %v3629_v27 = vpop.eup %3628  ;;  %v822_v21 = vmul.f32 %v3627_v60, %v820_v54  ;;  %v805_v28 = vadd.f32 %v3625_v36, %v804_v19  ;;  %v3449_v20 = vmul.f32 -1.442695, %v1223_v39  ;;  %vm827_vm12 = vweird.f32 %v3627_v60 }
 0x1aa   :  { %v1281_v13 = vadd.f32 1.0, %v3629_v27  ;;  %v832_v19 = vand.u32 2147483648, %v820_v54  ;;  %vm828_vm14 = vmor %vm826_vm13, %vm827_vm12  ;;  %v4525_v54 = vperm.slane %v4506_v38, 2 }
 0x1ab   :  { %v823_v25 = vsub.f32 1.0, %v822_v21  ;;  %v809_v29 = vsel %vm808_vm10, %v3625_v36, %v805_v28  ;;  %3630 = vpow2.f32 %v3449_v20  ;;  %v4522_v36 = vperm.slane %v4506_v38, 3 }
 0x1ac   :  { %v814_v17 = vsel %vm811_vm11, %v813_v63, %v809_v29  ;;  %3632 = vrcp.f32 %v1281_v13  ;;  %v1211_v8 = vpop.f32.mrf.mxu2  ;;  %v833_v21 = vor.u32 1.1754944e-38, %v832_v19  ;;  %v1291_v6 = vand.u32 2147483647, %v1281_v13 }
 0x1ad   :  { %v824_v51 = vmul.f32 %v3627_v60, %v823_v25  ;;  %v837_v53 = vmul.f32 %v836_v35, %v814_v17  ;;  %v1224_v39 = vpop.f32.mrf.mxu3  ;;  %v1293_v17 = vand.u32 2147483648, %v1281_v13  ;;  %vm1287_vm1 = vweird.f32 %v1281_v13 }
 0x1ae   :  { %v5616_v39 = vld [vmem:[#allocation91_spill] sm:$0xff]  ;;  %v1236_v38 = vadd.f32 %v4512_v23, %v4525_v54  ;;  %vm1292_vm3 = vcmp.eq.f32.partialorder %v1291_v6, 8.507059e+37 }
 0x1af   :  { %v825_v61 = vadd.f32 %v3627_v60, %v824_v51  ;;  %v838_v34 = vadd.f32 %v837_v53, %v393_v50  ;;  %v1248_v27 = vpop.f32.mrf.mxu1 }
 0x1b1   :  { %v3631_v28 = vpop.eup %3630  ;;  %v829_v20 = vsel %vm828_vm14, %v3627_v60, %v825_v61  ;;  %3634 = vtanh.f32 %v838_v34 }
 0x1b2   :  { %v3633_v40 = vpop.eup %3632  ;;  %v1300_v62 = vadd.f32 1.0, %v3631_v28  ;;  %v834_v29 = vsel %vm831_vm15, %v833_v21, %v829_v20  ;;  %v1294_v20 = vor.u32 1.1754944e-38, %v1293_v17  ;;  %v5617_v17 = vld [vmem:[#allocation92_spill] sm:$0xff] }
 0x1b3   :  { %v1283_v31 = vmul.f32 %v3633_v40, %v1281_v13  ;;  %v840_v25 = vsub.f32 1.0, %v834_v29  ;;  %vm1288_vm0 = vweird.f32 %v3633_v40  ;;  %v842_v61 = vmul.f32 %v834_v29, %v5616_v39 }
 0x1b4   :  { %3636 = vrcp.f32 %v1300_v62  ;;  %vm1289_vm2 = vmor %vm1287_vm1, %vm1288_vm0  ;;  %vm1306_vm5 = vweird.f32 %v1300_v62 }
 0x1b5   :  { %v1261_v63 = vpop.f32.mrf.mxu2  ;;  %v1284_v35 = vsub.f32 1.0, %v1283_v31 }
 0x1b6   :  { %v1262_v60 = vadd.f32 %v1261_v63, %v4522_v36 }
 0x1b7   :  { %v3635_v8 = vpop.eup %3634  ;;  %v1285_v51 = vmul.f32 %v3633_v40, %v1284_v35  ;;  %v1250_v19 = vpop.f32.mrf.mxu1 }
 0x1b8   :  { %v1274_v50 = vpop.f32.mrf.mxu3  ;;  %v841_v53 = vmul.f32 %v3635_v8, %v840_v25  ;;  %v1249_v8 = vadd.f32 %v1248_v27, %v1236_v38  ;;  %v1312_v19 = vand.u32 2147483648, %v1300_v62  ;;  %v5618_v27 = vld [vmem:[#allocation93_spill] sm:$0xff] }
 0x1b9   :  { %v1286_v34 = vadd.f32 %v3633_v40, %v1285_v51  ;;  %v1275_v7 = vadd.f32 %v1274_v50, %v1262_v60  ;;  %v1310_v50 = vand.u32 2147483647, %v1300_v62  ;;  %v5619_v60 = vld [vmem:[#allocation21_spill] sm:$0xff] }
 0x1ba   :  { %v3637_v28 = vpop.eup %3636  ;;  %v4529_v21 = vadd.f32 %v842_v61, %v841_v53  ;;  %v1313_v6 = vor.u32 1.1754944e-38, %v1312_v19  ;;  %v5628_v19 = vld [vmem:[#allocation99_spill] sm:$0xff] }
 0x1bb   :  { %v1302_v31 = vmul.f32 %v3637_v28, %v1300_v62  ;;  %v1290_v63 = vsel %vm1289_vm2, %v3633_v40, %v1286_v34  ;;  %vm1307_vm4 = vweird.f32 %v3637_v28  ;;  %vm1311_vm7 = vcmp.eq.f32.partialorder %v1310_v50, 8.507059e+37  ;;  %v5620_v34 = vld [vmem:[#allocation94_spill] sm:$0xff]  ;;  %v5630_v50 = vld [vmem:[#allocation24_spill] sm:$0xff] }
 0x1bc   :  { %v4535_v35 = vpack.c.bf16 %v4529_v21, %v4529_v21  ;;  %v1295_v25 = vsel %vm1292_vm3, %v1294_v20, %v1290_v63  ;;  %vm1308_vm6 = vmor %vm1306_vm5, %vm1307_vm4  ;;  %v5621_v20 = vld [vmem:[#allocation95_spill] sm:$0xff] }
 0x1bd   :  { %v1303_v29 = vsub.f32 1.0, %v1302_v31  ;;  %v1316_v13 = vmul.f32 %v1295_v25, %v1275_v7  ;;  %v1263_v51 = vpop.f32.mrf.mxu2  ;;  %v5622_v31 = vld [vmem:[#allocation22_spill] sm:$0xff]  ;;  %v5623_v25 = vld [vmem:[#allocation96_spill] sm:$0xff] }
 0x1be   :  { %1336 = vmatmul.bf16.vlgmr.msra.gmra.mxu0 %v4535_v35  ;;  %1349 = vmatmul.bf16.vlgmr.msra.gmra.mxu1 %v4535_v35  ;;  %v5627_v51 = vld [vmem:[#allocation98_spill] sm:$0xff] }
 0x1bf   :  { %v1304_v23 = vmul.f32 %v3637_v28, %v1303_v29  ;;  %v1317_v40 = vadd.f32 %v1316_v13, %v1249_v8  ;;  %1362 = vmatmul.bf16.vlgmr.msra.gmra.mxu2 %v4535_v35  ;;  %1424 = vmatmul.bf16.vlgmr.msrb.gmra.mxu3 %v4535_v35  ;;  %v5624_v8 = vld [vmem:[#allocation97_spill] sm:$0xff] }
 0x1c0   :  { %v1276_v53 = vpop.f32.mrf.mxu3  ;;  %1481 = vmatpush.bf16.msra.mxu0 %v4331_v37  ;;  %1494 = vmatpush.bf16.msra.mxu1 %v5617_v17 }
 0x1c1   :  { %v1305_v7 = vadd.f32 %v3637_v28, %v1304_v23  ;;  %3638 = vtanh.f32 %v1317_v40  ;;  %1507 = vmatpush.bf16.msra.mxu2 %v5618_v27  ;;  %1570 = vmatpush.bf16.msrb.mxu3 %v5619_v60  ;;  %v5629_v23 = vld [vmem:[#allocation100_spill] sm:$0xff]  ;;  %v5631_v40 = vld [vmem:[#allocation101_spill] sm:$0xff] }
 0x1c3   :  { %v1309_v39 = vsel %vm1308_vm6, %v3637_v28, %v1305_v7  ;;  %v5625_v28 = vld [vmem:[#allocation23_spill] sm:$0xff]  ;;  %v5632_v7 = vld [vmem:[#allocation102_spill] sm:$0xff] }
 0x1c4   :  { %v1314_v61 = vsel %vm1311_vm7, %v1313_v6, %v1309_v39  ;;  %1482 = vmatpush.bf16.msra.mxu0 %v4343_v49  ;;  %1495 = vmatpush.bf16.msra.mxu1 %v5620_v34  ;;  %v5633_v6 = vld [vmem:[#allocation25_spill] sm:$0xff]  ;;  %v5635_v39 = vld [vmem:[#allocation35_spill] sm:$0xff] }
 0x1c5   :  { %v1319_v38 = vsub.f32 1.0, %v1314_v61  ;;  %1508 = vmatpush.bf16.msra.mxu2 %v5621_v20  ;;  %1571 = vmatpush.bf16.msrb.mxu3 %v5622_v31  ;;  %v1321_v29 = vmul.f32 0.0, %v1314_v61  ;;  %v5636_v61 = vld [vmem:[#allocation53_spill] sm:$0xff] }
 0x1c7   :  { %v3639_v62 = vpop.eup %3638 }
 0x1c8   :  { %v1320_v63 = vmul.f32 %v3639_v62, %v1319_v38  ;;  %1483 = vmatpush.bf16.msra.mxu0 %v4353_v18  ;;  %1496 = vmatpush.bf16.msra.mxu1 %v5623_v25  ;;  %v5637_v38 = vld [vmem:[#allocation38_spill] sm:$0xff] }
 0x1c9   :  { %1509 = vmatpush.bf16.msra.mxu2 %v5624_v8  ;;  %1572 = vmatpush.bf16.msrb.mxu3 %v5625_v28  ;;  %v5638_v62 = vld [vmem:[#allocation74_spill] sm:$0xff] }
 0x1ca   :  { %v4553_v13 = vadd.f32 %v1321_v29, %v1320_v63  ;;  %v5639_v63 = vld [vmem:[#allocation37_spill] sm:$0xff]  ;;  %v5640_v29 = vld [vmem:[#allocation59_spill] sm:$0xff] }
 0x1cc   :  { %5626 = vst [vmem:[#allocation91_spill] sm:$0xff] %v4553_v13  ;;  %1484 = vmatpush.bf16.msra.mxu0 %v5627_v51  ;;  %1497 = vmatpush.bf16.msra.mxu1 %v5628_v19  ;;  %v1415_v53 = vpack.c.bf16 %v4553_v13, %v4553_v13 }
 0x1cd   :  { %1510 = vmatpush.bf16.msra.mxu2 %v5629_v23  ;;  %1573 = vmatpush.bf16.msrb.mxu3 %v5630_v50 }
 0x1ce   :  { %1437 = vmatmul.bf16.vlgmr.msrb.gmra.mxu0 %v1415_v53  ;;  %1450 = vmatmul.bf16.vlgmr.msrb.gmra.mxu1 %v4535_v35 }
 0x1cf   :  { %1463 = vmatmul.bf16.vlgmr.msrb.gmra.mxu2 %v1415_v53  ;;  %1476 = vmatmul.bf16.vlgmr.msra.gmra.mxu3 %v4535_v35 }
 0x1d0   :  { %1485 = vmatpush.bf16.msra.mxu0 %v4373_v32  ;;  %1498 = vmatpush.bf16.msra.mxu1 %v5631_v40 }
 0x1d1   :  { %1511 = vmatpush.bf16.msra.mxu2 %v5632_v7  ;;  %1574 = vmatpush.bf16.msrb.mxu3 %v5633_v6 }
 0x1d4   :  { %1486 = vmatpush.bf16.msra.mxu0 %v4385_v11  ;;  %1499 = vmatpush.bf16.msra.mxu1 %v4387_v0 }
 0x1d5   :  { %1512 = vmatpush.bf16.msra.mxu2 %v4390_v57  ;;  %1575 = vmatpush.bf16.msrb.mxu3 %v4045_v47 }
 0x1d8   :  { %1487 = vmatpush.bf16.msra.mxu0 %v4395_v4  ;;  %1500 = vmatpush.bf16.msra.mxu1 %v4397_v43 }
 0x1d9   :  { %1513 = vmatpush.bf16.msra.mxu2 %v4400_v5  ;;  %1576 = vmatpush.bf16.msrb.mxu3 %v4048_v59 }
 0x1dc   :  { %1488 = vmatpush.bf16.msra.mxu0 %v4405_v48  ;;  %1501 = vmatpush.bf16.msra.mxu1 %v4407_v24 }
 0x1dd   :  { %1514 = vmatpush.bf16.msra.mxu2 %v4410_v41  ;;  %1577 = vmatpush.bf16.msrb.mxu3 %v4051_v9 }
 0x1df   :  { %1489 = vmatmul.bf16.vlgmr.msra.gmra.mxu0 %v1415_v53  ;;  %1502 = vmatmul.bf16.vlgmr.msra.gmra.mxu1 %v4535_v35  ;;  %v5634_v35 = vld [vmem:[#allocation69_spill] sm:$0xff] }
 0x1e0   :  { %1583 = vmatpush.bf16.msrb.mxu0 %v4055_v15  ;;  %1596 = vmatpush.bf16.msrb.mxu1 %v4053_v10 }
 0x1e1   :  { %1658 = vmatpush.bf16.msrb.mxu2 %v4136_v46  ;;  %1671 = vmatpush.bf16.msra.mxu3 %v4161_v22 }
 0x1e2   :  { %1515 = vmatmul.bf16.vlgmr.msra.gmra.mxu2 %v1415_v53  ;;  %v5641_v53 = vld [vmem:[#allocation40_spill] sm:$0xff] }
 0x1e4   :  { %1584 = vmatpush.bf16.msrb.mxu0 %v4064_v30  ;;  %1597 = vmatpush.bf16.msrb.mxu1 %v4061_v26 }
 0x1e5   :  { %1659 = vmatpush.bf16.msrb.mxu2 %v4144_v52  ;;  %1672 = vmatpush.bf16.msra.mxu3 %v4173_v44 }
 0x1e8   :  { %1585 = vmatpush.bf16.msrb.mxu0 %v4072_v45  ;;  %1598 = vmatpush.bf16.msrb.mxu1 %v4069_v42 }
 0x1e9   :  { %1660 = vmatpush.bf16.msrb.mxu2 %v4148_v58  ;;  %1673 = vmatpush.bf16.msra.mxu3 %v4195_v33 }
 0x1ec   :  { %1586 = vmatpush.bf16.msrb.mxu0 %v4078_v56  ;;  %1599 = vmatpush.bf16.msrb.mxu1 %v4075_v55 }
 0x1ed   :  { %1661 = vmatpush.bf16.msrb.mxu2 %v4154_v3  ;;  %1674 = vmatpush.bf16.msra.mxu3 %v4209_v16  ;;  %v5642_v16 = vld [vmem:[#allocation78_spill] sm:$0xff] }
 0x1f0   :  { %1587 = vmatpush.bf16.msrb.mxu0 %v4085_v2  ;;  %1600 = vmatpush.bf16.msrb.mxu1 %v4081_v1 }
 0x1f1   :  { %1662 = vmatpush.bf16.msrb.mxu2 %v4157_v12  ;;  %1675 = vmatpush.bf16.msra.mxu3 %v5634_v35  ;;  %v5643_v12 = vld [vmem:[#allocation39_spill] sm:$0xff]  ;;  %v5645_v35 = vld [vmem:[#allocation52_spill] sm:$0xff] }
 0x1f4   :  { %1588 = vmatpush.bf16.msrb.mxu0 %v4093_v14  ;;  %1601 = vmatpush.bf16.msrb.mxu1 %v5635_v39  ;;  %v5644_v14 = vld [vmem:[#allocation51_spill] sm:$0xff]  ;;  %v5646_v39 = vld [vmem:[#allocation64_spill] sm:$0xff] }
 0x1f5   :  { %1663 = vmatpush.bf16.msrb.mxu2 %v5636_v61  ;;  %1676 = vmatpush.bf16.msra.mxu3 %v5638_v62  ;;  %v5647_v61 = vld [vmem:[#allocation68_spill] sm:$0xff]  ;;  %v5649_v62 = vld [vmem:[#allocation55_spill] sm:$0xff] }
 0x1f8   :  { %1589 = vmatpush.bf16.msrb.mxu0 %v5637_v38  ;;  %1602 = vmatpush.bf16.msrb.mxu1 %v5639_v63  ;;  %v5648_v38 = vld [vmem:[#allocation83_spill] sm:$0xff]  ;;  %v5650_v63 = vld [vmem:[#allocation57_spill] sm:$0xff] }
 0x1f9   :  { %1664 = vmatpush.bf16.msrb.mxu2 %v5640_v29  ;;  %1677 = vmatpush.bf16.msra.mxu3 %v5642_v16  ;;  %v5651_v29 = vld [vmem:[#allocation72_spill] sm:$0xff]  ;;  %v5653_v16 = vld [vmem:[#allocation62_spill] sm:$0xff] }
 0x1fc   :  { %1590 = vmatpush.bf16.msrb.mxu0 %v5641_v53  ;;  %1603 = vmatpush.bf16.msrb.mxu1 %v5643_v12  ;;  %v5652_v53 = vld [vmem:[#allocation61_spill] sm:$0xff] }
 0x1fd   :  { %1665 = vmatpush.bf16.msrb.mxu2 %v5646_v39  ;;  %1678 = vmatpush.bf16.msra.mxu3 %v5648_v38  ;;  %v5654_v12 = vld [vmem:[#allocation77_spill] sm:$0xff]  ;;  %v5659_v38 = vld [vmem:[#allocation71_spill] sm:$0xff] }
 0x1fe   :  { %v5657_v39 = vld [vmem:[#allocation81_spill] sm:$0xff] }
 0x200   :  { %1684 = vmatpush.bf16.msra.mxu0 %v5644_v14  ;;  %1697 = vmatpush.bf16.msra.mxu1 %v5645_v35  ;;  %v5655_v14 = vld [vmem:[#allocation66_spill] sm:$0xff]  ;;  %v5656_v35 = vld [vmem:[#allocation67_spill] sm:$0xff] }
 0x201   :  { %1710 = vmatpush.bf16.msra.mxu2 %v5647_v61  ;;  %v5658_v61 = vld [vmem:[#allocation70_spill] sm:$0xff] }
 0x204   :  { %1685 = vmatpush.bf16.msra.mxu0 %v5649_v62  ;;  %1698 = vmatpush.bf16.msra.mxu1 %v5650_v63  ;;  %v5660_v62 = vld [vmem:[#allocation86_spill] sm:$0xff]  ;;  %v5661_v63 = vld [vmem:[#allocation75_spill] sm:$0xff] }
 0x205   :  { %1711 = vmatpush.bf16.msra.mxu2 %v5651_v29  ;;  %v5662_v29 = vld [vmem:[#allocation76_spill] sm:$0xff] }
 0x208   :  { %1686 = vmatpush.bf16.msra.mxu0 %v5652_v53  ;;  %1699 = vmatpush.bf16.msra.mxu1 %v5653_v16  ;;  %v5663_v53 = vld [vmem:[#allocation88_spill] sm:$0xff]  ;;  %v5664_v16 = vld [vmem:[#allocation79_spill] sm:$0xff] }
 0x209   :  { %1712 = vmatpush.bf16.msra.mxu2 %v5654_v12  ;;  %v5665_v12 = vld [vmem:[#allocation80_spill] sm:$0xff] }
 0x20c   :  { %1687 = vmatpush.bf16.msra.mxu0 %v5655_v14  ;;  %1700 = vmatpush.bf16.msra.mxu1 %v5656_v35  ;;  %v5666_v14 = vld [vmem:[#allocation89_spill] sm:$0xff]  ;;  %v5667_v35 = vld [vmem:[#allocation84_spill] sm:$0xff] }
 0x20d   :  { %1713 = vmatpush.bf16.msra.mxu2 %v5657_v39  ;;  %v5668_v39 = vld [vmem:[#allocation85_spill] sm:$0xff] }
 0x210   :  { %1688 = vmatpush.bf16.msra.mxu0 %v5658_v61  ;;  %1701 = vmatpush.bf16.msra.mxu1 %v5659_v38  ;;  %v5669_v61 = vld [vmem:[#allocation90_spill] sm:$0xff]  ;;  %v5670_v38 = vld [vmem:[#allocation56_spill] sm:$0xff] }
 0x211   :  { %1714 = vmatpush.bf16.msra.mxu2 %v5660_v62  ;;  %v5671_v62 = vld [vmem:[#allocation103_spill] sm:$0xff] }
 0x212   :  { %v367_v1 = vadd.f32 %v5671_v62, %v5670_v38  ;;  %v5673_v62 = vld [vmem:[#allocation42_spill] sm:$0xff] }
 0x214   :  { %1689 = vmatpush.bf16.msra.mxu0 %v5661_v63  ;;  %1702 = vmatpush.bf16.msra.mxu1 %v5662_v29  ;;  %v5672_v29 = vld [vmem:[#allocation46_spill] sm:$0xff] }
 0x215   :  { %1715 = vmatpush.bf16.msra.mxu2 %v5663_v53 }
 0x218   :  { %1690 = vmatpush.bf16.msra.mxu0 %v5664_v16  ;;  %1703 = vmatpush.bf16.msra.mxu1 %v5665_v12 }
 0x219   :  { %1716 = vmatpush.bf16.msra.mxu2 %v5666_v14 }
 0x21c   :  { %1691 = vmatpush.bf16.msra.mxu0 %v5667_v35  ;;  %1704 = vmatpush.bf16.msra.mxu1 %v5668_v39 }
 0x21d   :  { %1717 = vmatpush.bf16.msra.mxu2 %v5669_v61 }
 0x23b   :  { %v1337_v63 = vpop.f32.mrf.mxu0  ;;  %v1350_v2 = vpop.f32.mrf.mxu1 }
 0x23c   :  { %v1367_v33 = vadd.f32 %v1337_v63, %v5672_v29  ;;  %v1387_v53 = vadd.f32 %v1350_v2, %v367_v1 }
 0x23e   :  { %v3450_v3 = vmul.f32 -1.442695, %v1367_v33  ;;  %v3451_v16 = vmul.f32 -1.442695, %v1387_v53 }
 0x240   :  { %3640 = vpow2.f32 %v3450_v3 }
 0x241   :  { %3642 = vpow2.f32 %v3451_v16 }
 0x242   :  { %v1363_v12 = vpop.f32.mrf.mxu2  ;;  %v1425_v14 = vpop.f32.mrf.mxu3 }
 0x243   :  { %v1339_v55 = vpop.f32.mrf.mxu0  ;;  %v1352_v35 = vpop.f32.mrf.mxu1  ;;  %v1426_v38 = vadd.f32 %v1425_v14, %v5673_v62 }
 0x244   :  { %v5674_v35 = vld [vmem:[#allocation115_spill] sm:$0xff] }
 0x246   :  { %v3641_v56 = vpop.eup %3640 }
 0x247   :  { %v3643_v39 = vpop.eup %3642  ;;  %v1371_v44 = vadd.f32 1.0, %v3641_v56 }
 0x248   :  { %v1391_v61 = vadd.f32 1.0, %v3643_v39 }
 0x249   :  { %3644 = vrcp.f32 %v1371_v44  ;;  %v1383_v52 = vand.u32 2147483648, %v1371_v44  ;;  %vm1377_vm9 = vweird.f32 %v1371_v44 }
 0x24a   :  { %3646 = vrcp.f32 %v1391_v61  ;;  %v1365_v58 = vpop.f32.mrf.mxu2  ;;  %v1427_v42 = vpop.f32.mrf.mxu3  ;;  %vm1397_vm13 = vweird.f32 %v1391_v61 }
 0x24b   :  { %v1438_v63 = vpop.f32.mrf.mxu0  ;;  %v1451_v1 = vpop.f32.mrf.mxu1 }
 0x24c   :  { %v1439_v2 = vadd.f32 %v1438_v63, %v1426_v38  ;;  %v1452_v53 = vadd.f32 %v1451_v1, %v5674_v35  ;;  %v1381_v38 = vand.u32 2147483647, %v1371_v44 }
 0x24e   :  { %v3452_v33 = vmul.f32 -1.442695, %v1439_v2  ;;  %vm1382_vm11 = vcmp.eq.f32.partialorder %v1381_v38, 8.507059e+37 }
 0x24f   :  { %v3645_v3 = vpop.eup %3644 }
 0x250   :  { %v3647_v16 = vpop.eup %3646  ;;  %v1373_v29 = vmul.f32 %v3645_v3, %v1371_v44  ;;  %3648 = vpow2.f32 %v3452_v33  ;;  %vm1378_vm8 = vweird.f32 %v3645_v3  ;;  %v1384_v33 = vor.u32 1.1754944e-38, %v1383_v52 }
 0x251   :  { %v1393_v55 = vmul.f32 %v3647_v16, %v1391_v61  ;;  %vm1379_vm10 = vmor %vm1377_vm9, %vm1378_vm8  ;;  %vm1398_vm12 = vweird.f32 %v3647_v16 }
 0x252   :  { %v1374_v45 = vsub.f32 1.0, %v1373_v29  ;;  %v1464_v56 = vpop.f32.mrf.mxu2  ;;  %v4641_v39 = vpop.f32.mrf.mxu3  ;;  %vm1399_vm14 = vmor %vm1397_vm13, %vm1398_vm12 }
 0x253   :  { %v1394_v22 = vsub.f32 1.0, %v1393_v55  ;;  %v1465_v14 = vadd.f32 %v1464_v56, %v1452_v53  ;;  %v1440_v58 = vpop.f32.mrf.mxu0  ;;  %v1453_v42 = vpop.f32.mrf.mxu1  ;;  %v4646_v55 = vld [vmem:[%s5331_s6] ss:$0 sm:$0xff] }
 0x254   :  { %v1375_v62 = vmul.f32 %v3645_v3, %v1374_v45  ;;  %5675 = vst [vmem:[#allocation92_spill] sm:$0xff] %v4646_v55  ;;  %v1407_v45 = vadd.f32 %v4646_v55, %v1363_v12  ;;  %v5676_v56 = vld [vmem:[#allocation87_spill] sm:$0xff] }
 0x255   :  { %v1395_v63 = vmul.f32 %v3647_v16, %v1394_v22  ;;  %v3453_v2 = vmul.f32 -1.442695, %v1465_v14  ;;  %v1403_v14 = vand.u32 2147483648, %v1391_v61 }
 0x256   :  { %v3649_v26 = vpop.eup %3648  ;;  %v1376_v30 = vadd.f32 %v3645_v3, %v1375_v62  ;;  %v5677_v62 = vld [vmem:[#allocation104_spill] sm:$0xff] }
 0x257   :  { %v1523_v1 = vadd.f32 1.0, %v3649_v26  ;;  %3650 = vpow2.f32 %v3453_v2  ;;  %v1396_v53 = vadd.f32 %v3647_v16, %v1395_v63  ;;  %v396_v44 = vadd.f32 %v5677_v62, %v5676_v56 }
 0x258   :  { %v1380_v29 = vsel %vm1379_vm10, %v3645_v3, %v1376_v30  ;;  %v1401_v30 = vand.u32 2147483647, %v1391_v61  ;;  %v1404_v12 = vor.u32 1.1754944e-38, %v1403_v14 }
 0x259   :  { %v1385_v22 = vsel %vm1382_vm11, %v1384_v33, %v1380_v29  ;;  %3652 = vrcp.f32 %v1523_v1  ;;  %v1400_v35 = vsel %vm1399_vm14, %v3647_v16, %v1396_v53  ;;  %v1535_v61 = vand.u32 2147483648, %v1523_v1 }
 0x25a   :  { %v1408_v52 = vmul.f32 %v1407_v45, %v1385_v22  ;;  %v1466_v26 = vpop.f32.mrf.mxu2  ;;  %v1479_v58 = vpop.f32.mrf.mxu3  ;;  %vm1402_vm15 = vcmp.eq.f32.partialorder %v1401_v30, 8.507059e+37  ;;  %vm1529_vm1 = vweird.f32 %v1523_v1 }
 0x25b   :  { %v1405_v29 = vsel %vm1402_vm15, %v1404_v12, %v1400_v35  ;;  %v1533_v58 = vand.u32 2147483647, %v1523_v1 }
 0x25c   :  { %v1409_v3 = vadd.f32 %v1408_v52, %v396_v44  ;;  %v1490_v42 = vpop.f32.mrf.mxu0  ;;  %v1503_v38 = vpop.f32.mrf.mxu1  ;;  %v1411_v56 = vsub.f32 1.0, %v1405_v29  ;;  %v1413_v9 = vmul.f32 %v1405_v29, %v4529_v21 }
 0x25d   :  { %v3651_v2 = vpop.eup %3650  ;;  %v1504_v30 = vadd.f32 %v1503_v38, %v4522_v36  ;;  %vm1534_vm3 = vcmp.eq.f32.partialorder %v1533_v58, 8.507059e+37 }
 0x25e   :  { %3654 = vtanh.f32 %v1409_v3  ;;  %v1542_v63 = vadd.f32 1.0, %v3651_v2  ;;  %v1478_v2 = vadd.f32 %v4641_v39, %v4525_v54 }
 0x25f   :  { %v3653_v33 = vpop.eup %3652 }
 0x260   :  { %3656 = vrcp.f32 %v1542_v63  ;;  %v1525_v62 = vmul.f32 %v3653_v33, %v1523_v1  ;;  %vm1530_vm0 = vweird.f32 %v3653_v33  ;;  %v1491_v1 = vadd.f32 %v1490_v42, %v1478_v2  ;;  %v5681_v2 = vld [vmem:[#allocation27_spill] sm:$0xff] }
 0x261   :  { %vm1531_vm2 = vmor %vm1529_vm1, %vm1530_vm0  ;;  %v1552_v39 = vand.u32 2147483647, %v1542_v63  ;;  %vm1548_vm5 = vweird.f32 %v1542_v63 }
 0x262   :  { %v1526_v22 = vsub.f32 1.0, %v1525_v62 }
 0x263   :  { %vm1553_vm7 = vcmp.eq.f32.partialorder %v1552_v39, 8.507059e+37  ;;  %v5693_v39 = vld [vmem:[#allocation33_spill] sm:$0xff] }
 0x264   :  { %v3655_v26 = vpop.eup %3654  ;;  %v1492_v55 = vpop.f32.mrf.mxu0  ;;  %v1527_v16 = vmul.f32 %v3653_v33, %v1526_v22  ;;  %v1554_v22 = vand.u32 2147483648, %v1542_v63 }
 0x265   :  { %v1516_v45 = vpop.f32.mrf.mxu2  ;;  %v1505_v44 = vpop.f32.mrf.mxu1  ;;  %v1412_v52 = vmul.f32 %v3655_v26, %v1411_v56  ;;  %v1536_v55 = vor.u32 1.1754944e-38, %v1535_v61 }
 0x266   :  { %v3657_v53 = vpop.eup %3656  ;;  %v1528_v3 = vadd.f32 %v3653_v33, %v1527_v16  ;;  %v1517_v12 = vadd.f32 %v1516_v45, %v1504_v30  ;;  %v1555_v42 = vor.u32 1.1754944e-38, %v1554_v22  ;;  %v5679_v30 = vld [vmem:[#allocation26_spill] sm:$0xff]  ;;  %v5690_v22 = vld [vmem:[#allocation47_spill] sm:$0xff] }
 0x267   :  { %v4652_v14 = vadd.f32 %v1413_v9, %v1412_v52  ;;  %v1544_v35 = vmul.f32 %v3657_v53, %v1542_v63  ;;  %vm1549_vm4 = vweird.f32 %v3657_v53 }
 0x268   :  { %v1532_v29 = vsel %vm1531_vm2, %v3653_v33, %v1528_v3  ;;  %vm1550_vm6 = vmor %vm1548_vm5, %vm1549_vm4  ;;  %v5680_v3 = vld [vmem:[#allocation28_spill] sm:$0xff] }
 0x269   :  { %v4659_v56 = vpack.c.bf16 %v4652_v14, %v4652_v14  ;;  %v1545_v21 = vsub.f32 1.0, %v1544_v35  ;;  %v1537_v9 = vsel %vm1534_vm3, %v1536_v55, %v1532_v29  ;;  %v5682_v55 = vld [vmem:[#allocation44_spill] sm:$0xff]  ;;  %v5685_v29 = vld [vmem:[#allocation29_spill] sm:$0xff] }
 0x26a   :  { %v1558_v38 = vmul.f32 %v1537_v9, %v1517_v12  ;;  %v5684_v12 = vld [vmem:[#allocation30_spill] sm:$0xff] }
 0x26b   :  { %v1546_v62 = vmul.f32 %v3657_v53, %v1545_v21  ;;  %1578 = vmatmul.bf16.vlgmr.msrb.gmra.mxu3 %v4659_v56  ;;  %1591 = vmatmul.bf16.vlgmr.msrb.gmra.mxu0 %v4659_v56  ;;  %v5683_v21 = vld [vmem:[#allocation50_spill] sm:$0xff] }
 0x26c   :  { %1604 = vmatmul.bf16.vlgmr.msrb.gmra.mxu1 %v4659_v56  ;;  %1666 = vmatmul.bf16.vlgmr.msrb.gmra.mxu2 %v4659_v56  ;;  %v1559_v45 = vadd.f32 %v1558_v38, %v1491_v1  ;;  %v5686_v1 = vld [vmem:[#allocation45_spill] sm:$0xff]  ;;  %v5687_v9 = vld [vmem:[#allocation54_spill] sm:$0xff]  ;;  %v5691_v38 = vld [vmem:[#allocation60_spill] sm:$0xff] }
 0x26d   :  { %v1518_v26 = vpop.f32.mrf.mxu2  ;;  %v1547_v58 = vadd.f32 %v3657_v53, %v1546_v62  ;;  %1723 = vmatpush.bf16.msrb.mxu3 %v4331_v37  ;;  %1736 = vmatpush.bf16.msrb.mxu0 %v5617_v17  ;;  %v5689_v62 = vld [vmem:[#allocation31_spill] sm:$0xff] }
 0x26e   :  { %1749 = vmatpush.bf16.msrb.mxu1 %v5618_v27  ;;  %1812 = vmatpush.bf16.msrb.mxu2 %v5619_v60  ;;  %3658 = vtanh.f32 %v1559_v45  ;;  %v5692_v26 = vld [vmem:[#allocation34_spill] sm:$0xff]  ;;  %v5695_v45 = vld [vmem:[#allocation65_spill] sm:$0xff] }
 0x26f   :  { %v1551_v33 = vsel %vm1550_vm6, %v3657_v53, %v1547_v58  ;;  %v5694_v58 = vld [vmem:[#allocation48_spill] sm:$0xff] }
 0x270   :  { %v1556_v61 = vsel %vm1553_vm7, %v1555_v42, %v1551_v33  ;;  %v5696_v42 = vld [vmem:[#allocation36_spill] sm:$0xff]  ;;  %v5697_v33 = vld [vmem:[#allocation35_spill] sm:$0xff] }
 0x271   :  { %1724 = vmatpush.bf16.msrb.mxu3 %v4343_v49  ;;  %1737 = vmatpush.bf16.msrb.mxu0 %v5620_v34  ;;  %v1561_v63 = vsub.f32 1.0, %v1556_v61  ;;  %v1563_v16 = vmul.f32 %v1556_v61, %v4553_v13  ;;  %v5698_v61 = vld [vmem:[#allocation53_spill] sm:$0xff]  ;;  %v5704_v13 = vld [vmem:[#allocation40_spill] sm:$0xff] }
 0x272   :  { %1750 = vmatpush.bf16.msrb.mxu1 %v5621_v20  ;;  %1813 = vmatpush.bf16.msrb.mxu2 %v5622_v31 }
 0x274   :  { %v3659_v44 = vpop.eup %3658 }
 0x275   :  { %1725 = vmatpush.bf16.msrb.mxu3 %v4353_v18  ;;  %1738 = vmatpush.bf16.msrb.mxu0 %v5623_v25  ;;  %v1562_v52 = vmul.f32 %v3659_v44, %v1561_v63  ;;  %v5699_v63 = vld [vmem:[#allocation69_spill] sm:$0xff]  ;;  %v5700_v44 = vld [vmem:[#allocation38_spill] sm:$0xff] }
 0x276   :  { %1751 = vmatpush.bf16.msrb.mxu1 %v5624_v8  ;;  %1814 = vmatpush.bf16.msrb.mxu2 %v5625_v28 }
 0x277   :  { %v4678_v53 = vadd.f32 %v1563_v16, %v1562_v52  ;;  %v5701_v52 = vld [vmem:[#allocation37_spill] sm:$0xff]  ;;  %v5702_v16 = vld [vmem:[#allocation59_spill] sm:$0xff] }
 0x279   :  { %5678 = vst [vmem:[#allocation93_spill] sm:$0xff] %v4678_v53  ;;  %1726 = vmatpush.bf16.msrb.mxu3 %v5627_v51  ;;  %1739 = vmatpush.bf16.msrb.mxu0 %v5628_v19  ;;  %v1657_v35 = vpack.c.bf16 %v4678_v53, %v4678_v53 }
 0x27a   :  { %1752 = vmatpush.bf16.msrb.mxu1 %v5629_v23  ;;  %1815 = vmatpush.bf16.msrb.mxu2 %v5630_v50 }
 0x27b   :  { %1692 = vmatmul.bf16.vlgmr.msra.gmra.mxu0 %v4659_v56  ;;  %1679 = vmatmul.bf16.vlgmr.msra.gmra.mxu3 %v1657_v35 }
 0x27c   :  { %1705 = vmatmul.bf16.vlgmr.msra.gmra.mxu1 %v1657_v35  ;;  %1718 = vmatmul.bf16.vlgmr.msra.gmra.mxu2 %v4659_v56 }
 0x27d   :  { %1727 = vmatpush.bf16.msrb.mxu3 %v4373_v32  ;;  %1740 = vmatpush.bf16.msrb.mxu0 %v5631_v40 }
 0x27e   :  { %1753 = vmatpush.bf16.msrb.mxu1 %v5632_v7  ;;  %1816 = vmatpush.bf16.msrb.mxu2 %v5633_v6 }
 0x281   :  { %1728 = vmatpush.bf16.msrb.mxu3 %v4385_v11  ;;  %1741 = vmatpush.bf16.msrb.mxu0 %v4387_v0 }
 0x282   :  { %1754 = vmatpush.bf16.msrb.mxu1 %v4390_v57  ;;  %1817 = vmatpush.bf16.msrb.mxu2 %v4045_v47 }
 0x285   :  { %1729 = vmatpush.bf16.msrb.mxu3 %v4395_v4  ;;  %1742 = vmatpush.bf16.msrb.mxu0 %v4397_v43 }
 0x286   :  { %1755 = vmatpush.bf16.msrb.mxu1 %v4400_v5  ;;  %1818 = vmatpush.bf16.msrb.mxu2 %v4048_v59 }
 0x289   :  { %1730 = vmatpush.bf16.msrb.mxu3 %v4405_v48  ;;  %1743 = vmatpush.bf16.msrb.mxu0 %v4407_v24 }
 0x28a   :  { %1756 = vmatpush.bf16.msrb.mxu1 %v4410_v41  ;;  %1819 = vmatpush.bf16.msrb.mxu2 %v5679_v30 }
 0x28c   :  { %1731 = vmatmul.bf16.vlgmr.msrb.gmra.mxu3 %v1657_v35  ;;  %1744 = vmatmul.bf16.vlgmr.msrb.gmra.mxu0 %v4659_v56  ;;  %v5688_v56 = vld [vmem:[#allocation32_spill] sm:$0xff] }
 0x28d   :  { %1825 = vmatpush.bf16.msra.mxu3 %v4055_v15  ;;  %1838 = vmatpush.bf16.msra.mxu0 %v4053_v10 }
 0x28e   :  { %1900 = vmatpush.bf16.msra.mxu1 %v4136_v46  ;;  %1913 = vmatpush.bf16.msra.mxu2 %v5683_v21 }
 0x28f   :  { %1757 = vmatmul.bf16.vlgmr.msrb.gmra.mxu1 %v1657_v35  ;;  %v5703_v35 = vld [vmem:[#allocation74_spill] sm:$0xff] }
 0x291   :  { %1826 = vmatpush.bf16.msra.mxu3 %v5680_v3  ;;  %1839 = vmatpush.bf16.msra.mxu0 %v5681_v2 }
 0x292   :  { %1901 = vmatpush.bf16.msra.mxu1 %v5682_v55  ;;  %1914 = vmatpush.bf16.msra.mxu2 %v5687_v9 }
 0x295   :  { %1827 = vmatpush.bf16.msra.mxu3 %v5684_v12  ;;  %1840 = vmatpush.bf16.msra.mxu0 %v5685_v29 }
 0x296   :  { %1902 = vmatpush.bf16.msra.mxu1 %v5686_v1  ;;  %1915 = vmatpush.bf16.msra.mxu2 %v5691_v38 }
 0x299   :  { %1828 = vmatpush.bf16.msra.mxu3 %v5688_v56  ;;  %1841 = vmatpush.bf16.msra.mxu0 %v5689_v62 }
 0x29a   :  { %1903 = vmatpush.bf16.msra.mxu1 %v5690_v22  ;;  %1916 = vmatpush.bf16.msra.mxu2 %v5695_v45  ;;  %v5706_v45 = vld [vmem:[#allocation51_spill] sm:$0xff]  ;;  %v5736_v22 = vld [vmem:[#allocation49_spill] sm:$0xff] }
 0x29d   :  { %1829 = vmatpush.bf16.msra.mxu3 %v5692_v26  ;;  %1842 = vmatpush.bf16.msra.mxu0 %v5693_v39 }
 0x29e   :  { %1904 = vmatpush.bf16.msra.mxu1 %v5694_v58  ;;  %1917 = vmatpush.bf16.msra.mxu2 %v5699_v63  ;;  %v5705_v58 = vld [vmem:[#allocation39_spill] sm:$0xff]  ;;  %v5710_v63 = vld [vmem:[#allocation68_spill] sm:$0xff] }
 0x2a1   :  { %1830 = vmatpush.bf16.msra.mxu3 %v5696_v42  ;;  %1843 = vmatpush.bf16.msra.mxu0 %v5697_v33  ;;  %v5707_v42 = vld [vmem:[#allocation52_spill] sm:$0xff] }
 0x2a2   :  { %1905 = vmatpush.bf16.msra.mxu1 %v5698_v61  ;;  %1918 = vmatpush.bf16.msra.mxu2 %v5703_v35  ;;  %v5708_v33 = vld [vmem:[#allocation64_spill] sm:$0xff]  ;;  %v5709_v61 = vld [vmem:[#allocation78_spill] sm:$0xff] }
 0x2a3   :  { %v5714_v35 = vld [vmem:[#allocation72_spill] sm:$0xff] }
 0x2a5   :  { %1831 = vmatpush.bf16.msra.mxu3 %v5700_v44  ;;  %1844 = vmatpush.bf16.msra.mxu0 %v5701_v52  ;;  %v5711_v44 = vld [vmem:[#allocation55_spill] sm:$0xff]  ;;  %v5712_v52 = vld [vmem:[#allocation57_spill] sm:$0xff] }
 0x2a6   :  { %1906 = vmatpush.bf16.msra.mxu1 %v5702_v16  ;;  %1919 = vmatpush.bf16.msra.mxu2 %v5709_v61  ;;  %v5713_v16 = vld [vmem:[#allocation83_spill] sm:$0xff]  ;;  %v5720_v61 = vld [vmem:[#allocation81_spill] sm:$0xff] }
 0x2a9   :  { %1832 = vmatpush.bf16.msra.mxu3 %v5704_v13  ;;  %1845 = vmatpush.bf16.msra.mxu0 %v5705_v58  ;;  %v5715_v13 = vld [vmem:[#allocation61_spill] sm:$0xff]  ;;  %v5716_v58 = vld [vmem:[#allocation62_spill] sm:$0xff] }
 0x2aa   :  { %1907 = vmatpush.bf16.msra.mxu1 %v5708_v33  ;;  %1920 = vmatpush.bf16.msra.mxu2 %v5713_v16  ;;  %v5719_v33 = vld [vmem:[#allocation67_spill] sm:$0xff] }
 0x2ab   :  { %v5724_v16 = vld [vmem:[#allocation75_spill] sm:$0xff] }
 0x2ad   :  { %1926 = vmatpush.bf16.msrb.mxu3 %v5706_v45  ;;  %1939 = vmatpush.bf16.msrb.mxu0 %v5707_v42  ;;  %v5717_v45 = vld [vmem:[#allocation77_spill] sm:$0xff]  ;;  %v5718_v42 = vld [vmem:[#allocation66_spill] sm:$0xff] }
 0x2ae   :  { %1952 = vmatpush.bf16.msrb.mxu1 %v5710_v63  ;;  %v5721_v63 = vld [vmem:[#allocation70_spill] sm:$0xff] }
 0x2b1   :  { %1927 = vmatpush.bf16.msrb.mxu3 %v5711_v44  ;;  %1940 = vmatpush.bf16.msrb.mxu0 %v5712_v52  ;;  %v5722_v44 = vld [vmem:[#allocation71_spill] sm:$0xff]  ;;  %v5723_v52 = vld [vmem:[#allocation86_spill] sm:$0xff] }
 0x2b2   :  { %1953 = vmatpush.bf16.msrb.mxu1 %v5714_v35  ;;  %v5725_v35 = vld [vmem:[#allocation76_spill] sm:$0xff] }
 0x2b5   :  { %1928 = vmatpush.bf16.msrb.mxu3 %v5715_v13  ;;  %1941 = vmatpush.bf16.msrb.mxu0 %v5716_v58  ;;  %v5726_v13 = vld [vmem:[#allocation88_spill] sm:$0xff]  ;;  %v5727_v58 = vld [vmem:[#allocation79_spill] sm:$0xff] }
 0x2b6   :  { %1954 = vmatpush.bf16.msrb.mxu1 %v5717_v45  ;;  %v5728_v45 = vld [vmem:[#allocation80_spill] sm:$0xff] }
 0x2b9   :  { %1929 = vmatpush.bf16.msrb.mxu3 %v5718_v42  ;;  %1942 = vmatpush.bf16.msrb.mxu0 %v5719_v33  ;;  %v5729_v42 = vld [vmem:[#allocation89_spill] sm:$0xff]  ;;  %v5730_v33 = vld [vmem:[#allocation84_spill] sm:$0xff] }
 0x2ba   :  { %1955 = vmatpush.bf16.msrb.mxu1 %v5720_v61  ;;  %v5731_v61 = vld [vmem:[#allocation85_spill] sm:$0xff] }
 0x2bd   :  { %1930 = vmatpush.bf16.msrb.mxu3 %v5721_v63  ;;  %1943 = vmatpush.bf16.msrb.mxu0 %v5722_v44  ;;  %v5732_v63 = vld [vmem:[#allocation90_spill] sm:$0xff]  ;;  %v5733_v44 = vld [vmem:[#allocation56_spill] sm:$0xff] }
 0x2be   :  { %1956 = vmatpush.bf16.msrb.mxu1 %v5723_v52  ;;  %v5734_v52 = vld [vmem:[#allocation105_spill] sm:$0xff] }
 0x2bf   :  { %v369_v39 = vadd.f32 %v5734_v52, %v5733_v44 }
 0x2c1   :  { %1931 = vmatpush.bf16.msrb.mxu3 %v5724_v16  ;;  %1944 = vmatpush.bf16.msrb.mxu0 %v5725_v35 }
 0x2c2   :  { %1957 = vmatpush.bf16.msrb.mxu1 %v5726_v13  ;;  %v5735_v13 = vld [vmem:[#allocation43_spill] sm:$0xff] }
 0x2c5   :  { %1932 = vmatpush.bf16.msrb.mxu3 %v5727_v58  ;;  %1945 = vmatpush.bf16.msrb.mxu0 %v5728_v45  ;;  %v340_v58 = vadd.f32 %v5736_v22, %v5735_v13 }
 0x2c6   :  { %1958 = vmatpush.bf16.msrb.mxu1 %v5729_v42 }
 0x2c9   :  { %1933 = vmatpush.bf16.msrb.mxu3 %v5730_v33  ;;  %1946 = vmatpush.bf16.msrb.mxu0 %v5731_v61 }
 0x2ca   :  { %1959 = vmatpush.bf16.msrb.mxu1 %v5732_v63 }
 0x2e8   :  { %v1592_v16 = vpop.f32.mrf.mxu0 }
 0x2e9   :  { %v1629_v26 = vadd.f32 %v1592_v16, %v369_v39  ;;  %v1605_v35 = vpop.f32.mrf.mxu1  ;;  %v5737_v16 = vld [vmem:[#allocation115_spill] sm:$0xff] }
 0x2eb   :  { %v3455_v38 = vmul.f32 -1.442695, %v1629_v26 }
 0x2ed   :  { %3660 = vpow2.f32 %v3455_v38 }
 0x2ee   :  { %v1579_v45 = vpop.f32.mrf.mxu3 }
 0x2ef   :  { %v1609_v62 = vadd.f32 %v1579_v45, %v340_v58  ;;  %v1667_v42 = vpop.f32.mrf.mxu2 }
 0x2f0   :  { %v1594_v56 = vpop.f32.mrf.mxu0 }
 0x2f1   :  { %v3454_v33 = vmul.f32 -1.442695, %v1609_v62  ;;  %v1607_v9 = vpop.f32.mrf.mxu1  ;;  %v5738_v62 = vld [vmem:[#allocation42_spill] sm:$0xff] }
 0x2f2   :  { %v1668_v9 = vadd.f32 %v1667_v42, %v5738_v62 }
 0x2f3   :  { %v3661_v61 = vpop.eup %3660  ;;  %3662 = vpow2.f32 %v3454_v33 }
 0x2f4   :  { %v4765_v63 = vadd.f32 1.0, %v3661_v61 }
 0x2f6   :  { %v1581_v1 = vpop.f32.mrf.mxu3  ;;  %3664 = vrcp.f32 %v4765_v63  ;;  %vm1639_vm13 = vweird.f32 %v4765_v63 }
 0x2f7   :  { %v1669_v39 = vpop.f32.mrf.mxu2 }
 0x2f8   :  { %v1693_v52 = vpop.f32.mrf.mxu0 }
 0x2f9   :  { %v3663_v26 = vpop.eup %3662  ;;  %v1694_v44 = vadd.f32 %v1693_v52, %v5737_v16  ;;  %v1706_v22 = vpop.f32.mrf.mxu1 }
 0x2fa   :  { %v1613_v38 = vadd.f32 1.0, %v3663_v26 }
 0x2fb   :  { %v1707_v13 = vadd.f32 %v1706_v22, %v1694_v44 }
 0x2fc   :  { %3666 = vrcp.f32 %v1613_v38  ;;  %v3665_v58 = vpop.eup %3664  ;;  %v1625_v22 = vand.u32 2147483648, %v1613_v38  ;;  %vm1619_vm9 = vweird.f32 %v1613_v38 }
 0x2fd   :  { %v3457_v56 = vmul.f32 -1.442695, %v1707_v13  ;;  %v1635_v33 = vmul.f32 %v3665_v58, %v4765_v63  ;;  %vm1640_vm12 = vweird.f32 %v3665_v58 }
 0x2fe   :  { %v1680_v45 = vpop.f32.mrf.mxu3  ;;  %vm1641_vm14 = vmor %vm1639_vm13, %vm1640_vm12 }
 0x2ff   :  { %3668 = vpow2.f32 %v3457_v56  ;;  %v1681_v1 = vadd.f32 %v1680_v45, %v1668_v9  ;;  %v4771_v61 = vpop.f32.mrf.mxu2  ;;  %v1636_v16 = vsub.f32 1.0, %v1635_v33  ;;  %v1623_v56 = vand.u32 2147483647, %v1613_v38 }
 0x300   :  { %v1695_v39 = vpop.f32.mrf.mxu0 }
 0x301   :  { %v1708_v29 = vpop.f32.mrf.mxu1  ;;  %v3456_v21 = vmul.f32 -1.442695, %v1681_v1  ;;  %v1637_v55 = vmul.f32 %v3665_v58, %v1636_v16  ;;  %v1626_v1 = vor.u32 1.1754944e-38, %v1625_v22  ;;  %v5739_v39 = vld [vmem:[#allocation92_spill] sm:$0xff]  ;;  %vm1624_vm11 = vcmp.eq.f32.partialorder %v1623_v56, 8.507059e+37  ;;  %v5741_v16 = vld [vmem:[#allocation106_spill] sm:$0xff] }
 0x302   :  { %v3667_v12 = vpop.eup %3666  ;;  %v1643_v22 = vand.u32 2147483647, %v4765_v63 }
 0x303   :  { %v1615_v52 = vmul.f32 %v3667_v12, %v1613_v38  ;;  %3670 = vpow2.f32 %v3456_v21  ;;  %vm1620_vm8 = vweird.f32 %v3667_v12 }
 0x304   :  { %vm1621_vm10 = vmor %vm1619_vm9, %vm1620_vm8  ;;  %vm1644_vm15 = vcmp.eq.f32.partialorder %v1643_v22, 8.507059e+37 }
 0x305   :  { %v3669_v44 = vpop.eup %3668  ;;  %v1616_v26 = vsub.f32 1.0, %v1615_v52  ;;  %v1649_v52 = vadd.f32 %v5739_v39, %v1605_v35 }
 0x306   :  { %v4773_v13 = vadd.f32 1.0, %v3669_v44  ;;  %v1682_v62 = vpop.f32.mrf.mxu3 }
 0x307   :  { %v1617_v42 = vmul.f32 %v3667_v12, %v1616_v26  ;;  %v1721_v9 = vpop.f32.mrf.mxu2  ;;  %v1638_v26 = vadd.f32 %v3665_v58, %v1637_v55  ;;  %v5740_v62 = vld [vmem:[#allocation87_spill] sm:$0xff] }
 0x308   :  { %3672 = vrcp.f32 %v4773_v13  ;;  %v398_v30 = vadd.f32 %v5741_v16, %v5740_v62  ;;  %v1645_v9 = vand.u32 2147483648, %v4765_v63  ;;  %vm1790_vm5 = vweird.f32 %v4773_v13 }
 0x309   :  { %v1618_v45 = vadd.f32 %v3667_v12, %v1617_v42  ;;  %v3671_v29 = vpop.eup %3670  ;;  %v1745_v33 = vpop.f32.mrf.mxu0  ;;  %v1642_v56 = vsel %vm1641_vm14, %v3665_v58, %v1638_v26 }
 0x30a   :  { %v1765_v44 = vadd.f32 1.0, %v3671_v29  ;;  %v1646_v55 = vor.u32 1.1754944e-38, %v1645_v9 }
 0x30b   :  { %v1622_v2 = vsel %vm1621_vm10, %v3667_v12, %v1618_v45 }
 0x30c   :  { %v1758_v21 = vpop.f32.mrf.mxu1  ;;  %v1627_v3 = vsel %vm1624_vm11, %v1626_v1, %v1622_v2  ;;  %3674 = vrcp.f32 %v1765_v44  ;;  %v1647_v1 = vsel %vm1644_vm15, %v1646_v55, %v1642_v56  ;;  %v1777_v58 = vand.u32 2147483648, %v1765_v44 }
 0x30d   :  { %v1650_v42 = vmul.f32 %v1649_v52, %v1627_v3  ;;  %v1653_v62 = vsub.f32 1.0, %v1647_v1  ;;  %v1655_v63 = vmul.f32 %v1647_v1, %v4652_v14  ;;  %vm1771_vm1 = vweird.f32 %v1765_v44 }
 0x30e   :  { %v4780_v38 = vpop.eup %3672  ;;  %v1720_v55 = vadd.f32 %v4771_v61, %v4525_v54  ;;  %v1794_v61 = vand.u32 2147483647, %v4773_v13 }
 0x30f   :  { %v1651_v12 = vadd.f32 %v1650_v42, %v398_v30  ;;  %v1732_v35 = vpop.f32.mrf.mxu3  ;;  %v1786_v2 = vmul.f32 %v4780_v38, %v4773_v13  ;;  %v1746_v30 = vadd.f32 %v1745_v33, %v4522_v36  ;;  %v1775_v42 = vand.u32 2147483647, %v1765_v44 }
 0x310   :  { %vm1791_vm4 = vweird.f32 %v4780_v38  ;;  %v1733_v1 = vadd.f32 %v1732_v35, %v1720_v55  ;;  %vm1795_vm7 = vcmp.eq.f32.partialorder %v1794_v61, 8.507059e+37  ;;  %v5749_v55 = vld [vmem:[#allocation30_spill] sm:$0xff]  ;;  %v5759_v61 = vld [vmem:[#allocation48_spill] sm:$0xff] }
 0x311   :  { %3676 = vtanh.f32 %v1651_v12  ;;  %v1747_v45 = vpop.f32.mrf.mxu0  ;;  %v1787_v16 = vsub.f32 1.0, %v1786_v2  ;;  %v1778_v2 = vor.u32 1.1754944e-38, %v1777_v58  ;;  %v1759_v14 = vadd.f32 %v1758_v21, %v1746_v30  ;;  %vm1792_vm6 = vmor %vm1790_vm5, %vm1791_vm4 }
 0x312   :  { %v3675_v3 = vpop.eup %3674  ;;  %vm1776_vm3 = vcmp.eq.f32.partialorder %v1775_v42, 8.507059e+37  ;;  %v5745_v42 = vld [vmem:[#allocation28_spill] sm:$0xff] }
 0x313   :  { %v1767_v52 = vmul.f32 %v3675_v3, %v1765_v44  ;;  %vm1772_vm0 = vweird.f32 %v3675_v3  ;;  %v1788_v22 = vmul.f32 %v4780_v38, %v1787_v16  ;;  %v1796_v44 = vand.u32 2147483648, %v4773_v13 }
 0x314   :  { %v1760_v29 = vpop.f32.mrf.mxu1  ;;  %vm1773_vm2 = vmor %vm1771_vm1, %vm1772_vm0 }
 0x315   :  { %v1768_v39 = vsub.f32 1.0, %v1767_v52 }
 0x317   :  { %v3677_v46 = vpop.eup %3676  ;;  %v1734_v26 = vpop.f32.mrf.mxu3  ;;  %v1769_v9 = vmul.f32 %v3675_v3, %v1768_v39  ;;  %v1789_v39 = vadd.f32 %v4780_v38, %v1788_v22  ;;  %v5747_v22 = vld [vmem:[#allocation44_spill] sm:$0xff] }
 0x318   :  { %v1654_v12 = vmul.f32 %v3677_v46, %v1653_v62  ;;  %v5743_v26 = vld [vmem:[#allocation41_spill] sm:$0xff] }
 0x319   :  { %v1770_v45 = vadd.f32 %v3675_v3, %v1769_v9  ;;  %v1793_v35 = vsel %vm1792_vm6, %v4780_v38, %v1789_v39  ;;  %v5744_v9 = vld [vmem:[#allocation26_spill] sm:$0xff]  ;;  %v5755_v39 = vld [vmem:[#allocation47_spill] sm:$0xff] }
 0x31a   :  { %v4789_v56 = vadd.f32 %v1655_v63, %v1654_v12  ;;  %v5746_v12 = vld [vmem:[#allocation27_spill] sm:$0xff] }
 0x31b   :  { %v1774_v29 = vsel %vm1773_vm2, %v3675_v3, %v1770_v45  ;;  %v1797_v3 = vor.u32 1.1754944e-38, %v1796_v44  ;;  %v5748_v45 = vld [vmem:[#allocation50_spill] sm:$0xff]  ;;  %v5756_v44 = vld [vmem:[#allocation60_spill] sm:$0xff] }
 0x31c   :  { %v4795_v33 = vpack.c.bf16 %v4789_v56, %v4789_v56  ;;  %v1779_v46 = vsel %vm1776_vm3, %v1778_v2, %v1774_v29  ;;  %v5750_v2 = vld [vmem:[#allocation29_spill] sm:$0xff]  ;;  %v5752_v29 = vld [vmem:[#allocation54_spill] sm:$0xff] }
 0x31d   :  { %v1800_v62 = vmul.f32 %v1779_v46, %v1759_v14  ;;  %v1798_v13 = vsel %vm1795_vm7, %v1797_v3, %v1793_v35  ;;  %v5751_v14 = vld [vmem:[#allocation45_spill] sm:$0xff]  ;;  %v5754_v46 = vld [vmem:[#allocation31_spill] sm:$0xff]  ;;  %v5761_v35 = vld [vmem:[#allocation36_spill] sm:$0xff] }
 0x31e   :  { %1820 = vmatmul.bf16.vlgmr.msrb.gmra.mxu2 %v4795_v33  ;;  %1833 = vmatmul.bf16.vlgmr.msra.gmra.mxu3 %v4795_v33  ;;  %v1803_v52 = vsub.f32 1.0, %v1798_v13  ;;  %v1805_v63 = vmul.f32 %v1798_v13, %v4678_v53  ;;  %v5762_v3 = vld [vmem:[#allocation35_spill] sm:$0xff]  ;;  %v5763_v13 = vld [vmem:[#allocation53_spill] sm:$0xff]  ;;  %v5769_v53 = vld [vmem:[#allocation40_spill] sm:$0xff] }
 0x31f   :  { %1846 = vmatmul.bf16.vlgmr.msra.gmra.mxu0 %v4795_v33  ;;  %1908 = vmatmul.bf16.vlgmr.msra.gmra.mxu1 %v4795_v33  ;;  %v1801_v21 = vadd.f32 %v1800_v62, %v1733_v1  ;;  %v5757_v62 = vld [vmem:[#allocation34_spill] sm:$0xff]  ;;  %v5758_v1 = vld [vmem:[#allocation33_spill] sm:$0xff] }
 0x320   :  { %1965 = vmatpush.bf16.msrb.mxu2 %v4331_v37  ;;  %1978 = vmatpush.bf16.msra.mxu3 %v5617_v17 }
 0x321   :  { %1991 = vmatpush.bf16.msra.mxu0 %v5618_v27  ;;  %2054 = vmatpush.bf16.msra.mxu1 %v5619_v60  ;;  %3678 = vtanh.f32 %v1801_v21  ;;  %v5760_v21 = vld [vmem:[#allocation65_spill] sm:$0xff] }
 0x324   :  { %1966 = vmatpush.bf16.msrb.mxu2 %v4343_v49  ;;  %1979 = vmatpush.bf16.msra.mxu3 %v5620_v34 }
 0x325   :  { %1992 = vmatpush.bf16.msra.mxu0 %v5621_v20  ;;  %2055 = vmatpush.bf16.msra.mxu1 %v5622_v31 }
 0x327   :  { %v3679_v16 = vpop.eup %3678 }
 0x328   :  { %1967 = vmatpush.bf16.msrb.mxu2 %v4353_v18  ;;  %1980 = vmatpush.bf16.msra.mxu3 %v5623_v25  ;;  %v1804_v38 = vmul.f32 %v3679_v16, %v1803_v52  ;;  %v5764_v52 = vld [vmem:[#allocation69_spill] sm:$0xff]  ;;  %v5765_v16 = vld [vmem:[#allocation38_spill] sm:$0xff] }
 0x329   :  { %1993 = vmatpush.bf16.msra.mxu0 %v5624_v8  ;;  %2056 = vmatpush.bf16.msra.mxu1 %v5625_v28 }
 0x32a   :  { %v4820_v30 = vadd.f32 %v1805_v63, %v1804_v38  ;;  %v5766_v38 = vld [vmem:[#allocation37_spill] sm:$0xff]  ;;  %v5767_v63 = vld [vmem:[#allocation59_spill] sm:$0xff] }
 0x32c   :  { %5742 = vst [vmem:[#allocation21_spill] sm:$0xff] %v4820_v30  ;;  %1968 = vmatpush.bf16.msrb.mxu2 %v5627_v51  ;;  %1981 = vmatpush.bf16.msra.mxu3 %v5628_v19  ;;  %v1899_v58 = vpack.c.bf16 %v4820_v30, %v4820_v30 }
 0x32d   :  { %1994 = vmatpush.bf16.msra.mxu0 %v5629_v23  ;;  %2057 = vmatpush.bf16.msra.mxu1 %v5630_v50 }
 0x32e   :  { %1934 = vmatmul.bf16.vlgmr.msrb.gmra.mxu3 %v4795_v33  ;;  %1921 = vmatmul.bf16.vlgmr.msra.gmra.mxu2 %v1899_v58 }
 0x32f   :  { %1947 = vmatmul.bf16.vlgmr.msrb.gmra.mxu0 %v1899_v58  ;;  %1960 = vmatmul.bf16.vlgmr.msrb.gmra.mxu1 %v4795_v33 }
 0x330   :  { %1969 = vmatpush.bf16.msrb.mxu2 %v4373_v32  ;;  %1982 = vmatpush.bf16.msra.mxu3 %v5631_v40 }
 0x331   :  { %1995 = vmatpush.bf16.msra.mxu0 %v5632_v7  ;;  %2058 = vmatpush.bf16.msra.mxu1 %v5633_v6 }
 0x334   :  { %1970 = vmatpush.bf16.msrb.mxu2 %v4385_v11  ;;  %1983 = vmatpush.bf16.msra.mxu3 %v4387_v0 }
 0x335   :  { %1996 = vmatpush.bf16.msra.mxu0 %v4390_v57  ;;  %2059 = vmatpush.bf16.msra.mxu1 %v4045_v47 }
 0x338   :  { %1971 = vmatpush.bf16.msrb.mxu2 %v4395_v4  ;;  %1984 = vmatpush.bf16.msra.mxu3 %v4397_v43 }
 0x339   :  { %1997 = vmatpush.bf16.msra.mxu0 %v4400_v5  ;;  %2060 = vmatpush.bf16.msra.mxu1 %v4048_v59 }
 0x33c   :  { %1972 = vmatpush.bf16.msrb.mxu2 %v4405_v48  ;;  %1985 = vmatpush.bf16.msra.mxu3 %v4407_v24 }
 0x33d   :  { %1998 = vmatpush.bf16.msra.mxu0 %v4410_v41  ;;  %2061 = vmatpush.bf16.msra.mxu1 %v5744_v9 }
 0x33f   :  { %1973 = vmatmul.bf16.vlgmr.msrb.gmra.mxu2 %v1899_v58  ;;  %1986 = vmatmul.bf16.vlgmr.msra.gmra.mxu3 %v4795_v33  ;;  %v5753_v33 = vld [vmem:[#allocation32_spill] sm:$0xff] }
 0x340   :  { %2067 = vmatpush.bf16.msra.mxu2 %v4055_v15  ;;  %2080 = vmatpush.bf16.msrb.mxu3 %v4053_v10 }
 0x341   :  { %2142 = vmatpush.bf16.msrb.mxu0 %v5743_v26  ;;  %2155 = vmatpush.bf16.msrb.mxu1 %v5748_v45 }
 0x342   :  { %1999 = vmatmul.bf16.vlgmr.msra.gmra.mxu0 %v1899_v58  ;;  %v5768_v58 = vld [vmem:[#allocation74_spill] sm:$0xff] }
 0x344   :  { %2068 = vmatpush.bf16.msra.mxu2 %v5745_v42  ;;  %2081 = vmatpush.bf16.msrb.mxu3 %v5746_v12 }
 0x345   :  { %2143 = vmatpush.bf16.msrb.mxu0 %v5747_v22  ;;  %2156 = vmatpush.bf16.msrb.mxu1 %v5752_v29 }
 0x348   :  { %2069 = vmatpush.bf16.msra.mxu2 %v5749_v55  ;;  %2082 = vmatpush.bf16.msrb.mxu3 %v5750_v2 }
 0x349   :  { %2144 = vmatpush.bf16.msrb.mxu0 %v5751_v14  ;;  %2157 = vmatpush.bf16.msrb.mxu1 %v5756_v44 }
 0x34c   :  { %2070 = vmatpush.bf16.msra.mxu2 %v5753_v33  ;;  %2083 = vmatpush.bf16.msrb.mxu3 %v5754_v46 }
 0x34d   :  { %2145 = vmatpush.bf16.msrb.mxu0 %v5755_v39  ;;  %2158 = vmatpush.bf16.msrb.mxu1 %v5760_v21  ;;  %v5771_v21 = vld [vmem:[#allocation51_spill] sm:$0xff] }
 0x350   :  { %2071 = vmatpush.bf16.msra.mxu2 %v5757_v62  ;;  %2084 = vmatpush.bf16.msrb.mxu3 %v5758_v1  ;;  %v5798_v1 = vld [vmem:[#allocation56_spill] sm:$0xff] }
 0x351   :  { %2146 = vmatpush.bf16.msrb.mxu0 %v5759_v61  ;;  %2159 = vmatpush.bf16.msrb.mxu1 %v5764_v52  ;;  %v5770_v61 = vld [vmem:[#allocation39_spill] sm:$0xff]  ;;  %v5775_v52 = vld [vmem:[#allocation68_spill] sm:$0xff] }
 0x354   :  { %2072 = vmatpush.bf16.msra.mxu2 %v5761_v35  ;;  %2085 = vmatpush.bf16.msrb.mxu3 %v5762_v3  ;;  %v5772_v35 = vld [vmem:[#allocation52_spill] sm:$0xff] }
 0x355   :  { %2147 = vmatpush.bf16.msrb.mxu0 %v5763_v13  ;;  %2160 = vmatpush.bf16.msrb.mxu1 %v5768_v58  ;;  %v5773_v3 = vld [vmem:[#allocation64_spill] sm:$0xff]  ;;  %v5774_v13 = vld [vmem:[#allocation78_spill] sm:$0xff] }
 0x356   :  { %v5779_v58 = vld [vmem:[#allocation72_spill] sm:$0xff] }
 0x358   :  { %2073 = vmatpush.bf16.msra.mxu2 %v5765_v16  ;;  %2086 = vmatpush.bf16.msrb.mxu3 %v5766_v38  ;;  %v5776_v16 = vld [vmem:[#allocation55_spill] sm:$0xff]  ;;  %v5777_v38 = vld [vmem:[#allocation57_spill] sm:$0xff] }
 0x359   :  { %2148 = vmatpush.bf16.msrb.mxu0 %v5767_v63  ;;  %2161 = vmatpush.bf16.msrb.mxu1 %v5774_v13  ;;  %v5778_v63 = vld [vmem:[#allocation83_spill] sm:$0xff]  ;;  %v5785_v13 = vld [vmem:[#allocation81_spill] sm:$0xff] }
 0x35c   :  { %2074 = vmatpush.bf16.msra.mxu2 %v5769_v53  ;;  %2087 = vmatpush.bf16.msrb.mxu3 %v5770_v61  ;;  %v5780_v53 = vld [vmem:[#allocation61_spill] sm:$0xff]  ;;  %v5781_v61 = vld [vmem:[#allocation62_spill] sm:$0xff] }
 0x35d   :  { %2149 = vmatpush.bf16.msrb.mxu0 %v5773_v3  ;;  %2162 = vmatpush.bf16.msrb.mxu1 %v5778_v63  ;;  %v5784_v3 = vld [vmem:[#allocation67_spill] sm:$0xff] }
 0x35e   :  { %v5789_v63 = vld [vmem:[#allocation75_spill] sm:$0xff] }
 0x360   :  { %2168 = vmatpush.bf16.msrb.mxu2 %v5771_v21  ;;  %2181 = vmatpush.bf16.msra.mxu3 %v5772_v35  ;;  %v5782_v21 = vld [vmem:[#allocation77_spill] sm:$0xff]  ;;  %v5783_v35 = vld [vmem:[#allocation66_spill] sm:$0xff] }
 0x361   :  { %2194 = vmatpush.bf16.msra.mxu0 %v5775_v52  ;;  %v5786_v52 = vld [vmem:[#allocation70_spill] sm:$0xff] }
 0x364   :  { %2169 = vmatpush.bf16.msrb.mxu2 %v5776_v16  ;;  %2182 = vmatpush.bf16.msra.mxu3 %v5777_v38  ;;  %v5787_v16 = vld [vmem:[#allocation71_spill] sm:$0xff]  ;;  %v5788_v38 = vld [vmem:[#allocation86_spill] sm:$0xff] }
 0x365   :  { %2195 = vmatpush.bf16.msra.mxu0 %v5779_v58  ;;  %v5790_v58 = vld [vmem:[#allocation76_spill] sm:$0xff] }
 0x368   :  { %2170 = vmatpush.bf16.msrb.mxu2 %v5780_v53  ;;  %2183 = vmatpush.bf16.msra.mxu3 %v5781_v61  ;;  %v5791_v53 = vld [vmem:[#allocation88_spill] sm:$0xff]  ;;  %v5792_v61 = vld [vmem:[#allocation79_spill] sm:$0xff] }
 0x369   :  { %2196 = vmatpush.bf16.msra.mxu0 %v5782_v21  ;;  %v5793_v21 = vld [vmem:[#allocation80_spill] sm:$0xff] }
 0x36c   :  { %2171 = vmatpush.bf16.msrb.mxu2 %v5783_v35  ;;  %2184 = vmatpush.bf16.msra.mxu3 %v5784_v3  ;;  %v5794_v35 = vld [vmem:[#allocation89_spill] sm:$0xff]  ;;  %v5795_v3 = vld [vmem:[#allocation84_spill] sm:$0xff] }
 0x36d   :  { %2197 = vmatpush.bf16.msra.mxu0 %v5785_v13  ;;  %v5796_v13 = vld [vmem:[#allocation85_spill] sm:$0xff] }
 0x370   :  { %2172 = vmatpush.bf16.msrb.mxu2 %v5786_v52  ;;  %2185 = vmatpush.bf16.msra.mxu3 %v5787_v16  ;;  %v5797_v52 = vld [vmem:[#allocation90_spill] sm:$0xff] }
 0x371   :  { %2198 = vmatpush.bf16.msra.mxu0 %v5788_v38 }
 0x374   :  { %2173 = vmatpush.bf16.msrb.mxu2 %v5789_v63  ;;  %2186 = vmatpush.bf16.msra.mxu3 %v5790_v58  ;;  %v5799_v63 = vld [vmem:[#allocation107_spill] sm:$0xff] }
 0x375   :  { %2199 = vmatpush.bf16.msra.mxu0 %v5791_v53  ;;  %v372_v62 = vadd.f32 %v5799_v63, %v5798_v1  ;;  %v5800_v53 = vld [vmem:[#allocation58_spill] sm:$0xff] }
 0x376   :  { %v5801_v1 = vld [vmem:[#allocation42_spill] sm:$0xff] }
 0x378   :  { %2174 = vmatpush.bf16.msrb.mxu2 %v5792_v61  ;;  %2187 = vmatpush.bf16.msra.mxu3 %v5793_v21 }
 0x379   :  { %2200 = vmatpush.bf16.msra.mxu0 %v5794_v35 }
 0x37c   :  { %2175 = vmatpush.bf16.msrb.mxu2 %v5795_v3  ;;  %2188 = vmatpush.bf16.msra.mxu3 %v5796_v13 }
 0x37d   :  { %2201 = vmatpush.bf16.msra.mxu0 %v5797_v52 }
 0x39c   :  { %v1847_v16 = vpop.f32.mrf.mxu0  ;;  %v1909_v38 = vpop.f32.mrf.mxu1 }
 0x3a1   :  { %v1821_v58 = vpop.f32.mrf.mxu2  ;;  %v1834_v44 = vpop.f32.mrf.mxu3 }
 0x3a2   :  { %v1851_v39 = vadd.f32 %v1821_v58, %v5800_v53  ;;  %v1871_v61 = vadd.f32 %v1834_v44, %v372_v62  ;;  %v1910_v53 = vadd.f32 %v1909_v38, %v5801_v1  ;;  %v5802_v62 = vld [vmem:[#allocation115_spill] sm:$0xff] }
 0x3a4   :  { %v3458_v46 = vmul.f32 -1.442695, %v1851_v39  ;;  %v3459_v21 = vmul.f32 -1.442695, %v1871_v61  ;;  %v1849_v33 = vpop.f32.mrf.mxu0  ;;  %v1911_v35 = vpop.f32.mrf.mxu1 }
 0x3a6   :  { %3680 = vpow2.f32 %v3458_v46 }
 0x3a7   :  { %3682 = vpow2.f32 %v3459_v21 }
 0x3a9   :  { %v1823_v3 = vpop.f32.mrf.mxu2  ;;  %v1836_v13 = vpop.f32.mrf.mxu3 }
 0x3ac   :  { %v3681_v29 = vpop.eup %3680  ;;  %v1948_v52 = vpop.f32.mrf.mxu0 }
 0x3ad   :  { %v3683_v14 = vpop.eup %3682  ;;  %v1855_v2 = vadd.f32 1.0, %v3681_v29  ;;  %v4906_v55 = vpop.f32.mrf.mxu1 }
 0x3ae   :  { %v1875_v63 = vadd.f32 1.0, %v3683_v14 }
 0x3af   :  { %3684 = vrcp.f32 %v1855_v2  ;;  %v1867_v12 = vand.u32 2147483648, %v1855_v2  ;;  %v1865_v9 = vand.u32 2147483647, %v1855_v2  ;;  %vm1861_vm9 = vweird.f32 %v1855_v2 }
 0x3b0   :  { %3686 = vrcp.f32 %v1875_v63  ;;  %vm1881_vm13 = vweird.f32 %v1875_v63 }
 0x3b1   :  { %v1935_v44 = vpop.f32.mrf.mxu3  ;;  %v1922_v39 = vpop.f32.mrf.mxu2  ;;  %vm1866_vm11 = vcmp.eq.f32.partialorder %v1865_v9, 8.507059e+37 }
 0x3b2   :  { %v1936_v33 = vadd.f32 %v1935_v44, %v5802_v62  ;;  %v1923_v61 = vadd.f32 %v1922_v39, %v1910_v53 }
 0x3b4   :  { %v1949_v46 = vadd.f32 %v1948_v52, %v1936_v33  ;;  %v1950_v21 = vpop.f32.mrf.mxu0  ;;  %v3460_v3 = vmul.f32 -1.442695, %v1923_v61  ;;  %v1868_v33 = vor.u32 1.1754944e-38, %v1867_v12  ;;  %v1885_v12 = vand.u32 2147483647, %v1875_v63 }
 0x3b5   :  { %v3685_v35 = vpop.eup %3684  ;;  %v1963_v13 = vpop.f32.mrf.mxu1 }
 0x3b6   :  { %v3687_v58 = vpop.eup %3686  ;;  %v1857_v45 = vmul.f32 %v3685_v35, %v1855_v2  ;;  %v3461_v29 = vmul.f32 -1.442695, %v1949_v46  ;;  %3688 = vpow2.f32 %v3460_v3  ;;  %vm1862_vm8 = vweird.f32 %v3685_v35  ;;  %v5803_v46 = vld [vmem:[#allocation92_spill] sm:$0xff] }
 0x3b7   :  { %v1877_v22 = vmul.f32 %v3687_v58, %v1875_v63  ;;  %vm1863_vm10 = vmor %vm1861_vm9, %vm1862_vm8  ;;  %v1891_v13 = vadd.f32 %v5803_v46, %v1847_v16  ;;  %vm1882_vm12 = vweird.f32 %v3687_v58  ;;  %v1887_v2 = vand.u32 2147483648, %v1875_v63 }
 0x3b8   :  { %v1858_v14 = vsub.f32 1.0, %v1857_v45  ;;  %3690 = vpow2.f32 %v3461_v29  ;;  %vm1883_vm14 = vmor %vm1881_vm13, %vm1882_vm12  ;;  %vm1886_vm15 = vcmp.eq.f32.partialorder %v1885_v12, 8.507059e+37 }
 0x3b9   :  { %v1878_v42 = vsub.f32 1.0, %v1877_v22  ;;  %v1937_v38 = vpop.f32.mrf.mxu3  ;;  %v1924_v44 = vpop.f32.mrf.mxu2 }
 0x3ba   :  { %v1859_v1 = vmul.f32 %v3685_v35, %v1858_v14  ;;  %v5804_v38 = vld [vmem:[#allocation87_spill] sm:$0xff]  ;;  %v5805_v44 = vld [vmem:[#allocation108_spill] sm:$0xff] }
 0x3bb   :  { %v1879_v53 = vmul.f32 %v3687_v58, %v1878_v42  ;;  %v401_v42 = vadd.f32 %v5805_v44, %v5804_v38 }
 0x3bc   :  { %v1860_v52 = vadd.f32 %v3685_v35, %v1859_v1  ;;  %v3689_v39 = vpop.eup %3688 }
 0x3bd   :  { %v2007_v45 = vadd.f32 1.0, %v3689_v39  ;;  %v1880_v22 = vadd.f32 %v3687_v58, %v1879_v53  ;;  %v1888_v53 = vor.u32 1.1754944e-38, %v1887_v2 }
 0x3be   :  { %v3691_v21 = vpop.eup %3690  ;;  %v1864_v3 = vsel %vm1863_vm10, %v3685_v35, %v1860_v52 }
 0x3bf   :  { %v2000_v61 = vpop.f32.mrf.mxu0  ;;  %v1869_v29 = vsel %vm1866_vm11, %v1868_v33, %v1864_v3  ;;  %v4911_v14 = vadd.f32 1.0, %v3691_v21  ;;  %3692 = vrcp.f32 %v2007_v45  ;;  %v1884_v9 = vsel %vm1883_vm14, %v3687_v58, %v1880_v22 }
 0x3c0   :  { %v1892_v1 = vmul.f32 %v1891_v13, %v1869_v29  ;;  %v1889_v33 = vsel %vm1886_vm15, %v1888_v53, %v1884_v9  ;;  %v2019_v38 = vand.u32 2147483648, %v2007_v45  ;;  %vm2013_vm1 = vweird.f32 %v2007_v45 }
 0x3c1   :  { %3694 = vrcp.f32 %v4911_v14  ;;  %v1895_v3 = vsub.f32 1.0, %v1889_v33  ;;  %v1897_v44 = vmul.f32 %v1889_v33, %v4789_v56  ;;  %vm2032_vm5 = vweird.f32 %v4911_v14 }
 0x3c2   :  { %v1893_v62 = vadd.f32 %v1892_v1, %v401_v42  ;;  %v1974_v16 = vpop.f32.mrf.mxu2  ;;  %v1987_v35 = vpop.f32.mrf.mxu3  ;;  %v2017_v1 = vand.u32 2147483647, %v2007_v45  ;;  %v2020_v56 = vor.u32 1.1754944e-38, %v2019_v38 }
 0x3c4   :  { %3696 = vtanh.f32 %v1893_v62  ;;  %v1988_v62 = vadd.f32 %v1987_v35, %v4522_v36  ;;  %vm2018_vm3 = vcmp.eq.f32.partialorder %v2017_v1, 8.507059e+37 }
 0x3c5   :  { %v3693_v39 = vpop.eup %3692 }
 0x3c6   :  { %v2009_v46 = vmul.f32 %v3693_v39, %v2007_v45  ;;  %vm2014_vm0 = vweird.f32 %v3693_v39 }
 0x3c7   :  { %v2002_v52 = vpop.f32.mrf.mxu0  ;;  %v3695_v21 = vpop.eup %3694  ;;  %vm2015_vm2 = vmor %vm2013_vm1, %vm2014_vm0 }
 0x3c8   :  { %v2028_v13 = vmul.f32 %v3695_v21, %v4911_v14  ;;  %v2010_v29 = vsub.f32 1.0, %v2009_v46  ;;  %v1962_v46 = vadd.f32 %v4906_v55, %v4525_v54  ;;  %vm2033_vm4 = vweird.f32 %v3695_v21 }
 0x3c9   :  { %v2036_v55 = vand.u32 2147483647, %v4911_v14  ;;  %vm2034_vm6 = vmor %vm2032_vm5, %vm2033_vm4 }
 0x3ca   :  { %v3697_v63 = vpop.eup %3696  ;;  %v2029_v42 = vsub.f32 1.0, %v2028_v13  ;;  %v1976_v58 = vpop.f32.mrf.mxu2  ;;  %v2011_v2 = vmul.f32 %v3693_v39, %v2010_v29  ;;  %v2001_v13 = vadd.f32 %v2000_v61, %v1988_v62  ;;  %v5807_v62 = vld [vmem:[#allocation26_spill] sm:$0xff] }
 0x3cb   :  { %v1896_v22 = vmul.f32 %v3697_v63, %v1895_v3  ;;  %v1989_v12 = vpop.f32.mrf.mxu3  ;;  %v2038_v63 = vand.u32 2147483648, %v4911_v14  ;;  %vm2037_vm7 = vcmp.eq.f32.partialorder %v2036_v55, 8.507059e+37  ;;  %v5822_v55 = vld [vmem:[#allocation48_spill] sm:$0xff] }
 0x3cc   :  { %v2030_v9 = vmul.f32 %v3695_v21, %v2029_v42  ;;  %v2012_v52 = vadd.f32 %v3693_v39, %v2011_v2  ;;  %v5808_v2 = vld [vmem:[#allocation28_spill] sm:$0xff]  ;;  %v5809_v12 = vld [vmem:[#allocation27_spill] sm:$0xff] }
 0x3cd   :  { %v4919_v53 = vadd.f32 %v1897_v44, %v1896_v22  ;;  %v1975_v44 = vadd.f32 %v1974_v16, %v1962_v46  ;;  %v2039_v38 = vor.u32 1.1754944e-38, %v2038_v63  ;;  %v5812_v46 = vld [vmem:[#allocation30_spill] sm:$0xff]  ;;  %v5819_v63 = vld [vmem:[#allocation60_spill] sm:$0xff] }
 0x3ce   :  { %v2016_v3 = vsel %vm2015_vm2, %v3693_v39, %v2012_v52  ;;  %v2031_v35 = vadd.f32 %v3695_v21, %v2030_v9  ;;  %v5810_v9 = vld [vmem:[#allocation44_spill] sm:$0xff]  ;;  %v5811_v52 = vld [vmem:[#allocation50_spill] sm:$0xff] }
 0x3cf   :  { %v4925_v33 = vpack.c.bf16 %v4919_v53, %v4919_v53  ;;  %v2021_v29 = vsel %vm2018_vm3, %v2020_v56, %v2016_v3  ;;  %v5813_v56 = vld [vmem:[#allocation29_spill] sm:$0xff]  ;;  %v5815_v3 = vld [vmem:[#allocation54_spill] sm:$0xff] }
 0x3d0   :  { %v2042_v42 = vmul.f32 %v2021_v29, %v2001_v13  ;;  %v2035_v45 = vsel %vm2034_vm6, %v3695_v21, %v2031_v35  ;;  %v5814_v13 = vld [vmem:[#allocation45_spill] sm:$0xff]  ;;  %v5817_v35 = vld [vmem:[#allocation31_spill] sm:$0xff] }
 0x3d1   :  { %2062 = vmatmul.bf16.vlgmr.msra.gmra.mxu1 %v4925_v33  ;;  %2075 = vmatmul.bf16.vlgmr.msra.gmra.mxu2 %v4925_v33  ;;  %v2040_v16 = vsel %vm2037_vm7, %v2039_v38, %v2035_v45  ;;  %v5818_v29 = vld [vmem:[#allocation47_spill] sm:$0xff]  ;;  %v5824_v45 = vld [vmem:[#allocation36_spill] sm:$0xff] }
 0x3d2   :  { %2088 = vmatmul.bf16.vlgmr.msrb.gmra.mxu3 %v4925_v33  ;;  %2150 = vmatmul.bf16.vlgmr.msrb.gmra.mxu0 %v4925_v33  ;;  %v2043_v61 = vadd.f32 %v2042_v42, %v1975_v44  ;;  %v2045_v14 = vsub.f32 1.0, %v2040_v16  ;;  %v2047_v1 = vmul.f32 %v2040_v16, %v4820_v30  ;;  %v5820_v44 = vld [vmem:[#allocation34_spill] sm:$0xff]  ;;  %v5821_v42 = vld [vmem:[#allocation33_spill] sm:$0xff]  ;;  %v5825_v38 = vld [vmem:[#allocation35_spill] sm:$0xff] }
 0x3d3   :  { %2207 = vmatpush.bf16.msra.mxu1 %v4331_v37  ;;  %2220 = vmatpush.bf16.msra.mxu2 %v5617_v17  ;;  %v5826_v16 = vld [vmem:[#allocation53_spill] sm:$0xff]  ;;  %v5832_v30 = vld [vmem:[#allocation40_spill] sm:$0xff] }
 0x3d4   :  { %2233 = vmatpush.bf16.msrb.mxu3 %v5618_v27  ;;  %2296 = vmatpush.bf16.msrb.mxu0 %v5619_v60  ;;  %3698 = vtanh.f32 %v2043_v61  ;;  %v5823_v61 = vld [vmem:[#allocation65_spill] sm:$0xff] }
 0x3d7   :  { %2208 = vmatpush.bf16.msra.mxu1 %v4343_v49  ;;  %2221 = vmatpush.bf16.msra.mxu2 %v5620_v34 }
 0x3d8   :  { %2234 = vmatpush.bf16.msrb.mxu3 %v5621_v20  ;;  %2297 = vmatpush.bf16.msrb.mxu0 %v5622_v31 }
 0x3da   :  { %v3699_v39 = vpop.eup %3698 }
 0x3db   :  { %2209 = vmatpush.bf16.msra.mxu1 %v4353_v18  ;;  %2222 = vmatpush.bf16.msra.mxu2 %v5623_v25  ;;  %v2046_v21 = vmul.f32 %v3699_v39, %v2045_v14  ;;  %v5827_v14 = vld [vmem:[#allocation69_spill] sm:$0xff]  ;;  %v5828_v39 = vld [vmem:[#allocation38_spill] sm:$0xff] }
 0x3dc   :  { %2235 = vmatpush.bf16.msrb.mxu3 %v5624_v8  ;;  %2298 = vmatpush.bf16.msrb.mxu0 %v5625_v28 }
 0x3dd   :  { %v4947_v58 = vadd.f32 %v2047_v1, %v2046_v21  ;;  %v5829_v21 = vld [vmem:[#allocation37_spill] sm:$0xff]  ;;  %v5830_v1 = vld [vmem:[#allocation59_spill] sm:$0xff] }
 0x3df   :  { %5806 = vst [vmem:[#allocation94_spill] sm:$0xff] %v4947_v58  ;;  %2210 = vmatpush.bf16.msra.mxu1 %v5627_v51  ;;  %2223 = vmatpush.bf16.msra.mxu2 %v5628_v19  ;;  %v2141_v22 = vpack.c.bf16 %v4947_v58, %v4947_v58 }
 0x3e0   :  { %2236 = vmatpush.bf16.msrb.mxu3 %v5629_v23  ;;  %2299 = vmatpush.bf16.msrb.mxu0 %v5630_v50 }
 0x3e1   :  { %2176 = vmatmul.bf16.vlgmr.msrb.gmra.mxu2 %v4925_v33  ;;  %2163 = vmatmul.bf16.vlgmr.msrb.gmra.mxu1 %v2141_v22 }
 0x3e2   :  { %2189 = vmatmul.bf16.vlgmr.msra.gmra.mxu3 %v2141_v22  ;;  %2202 = vmatmul.bf16.vlgmr.msra.gmra.mxu0 %v4925_v33 }
 0x3e3   :  { %2211 = vmatpush.bf16.msra.mxu1 %v4373_v32  ;;  %2224 = vmatpush.bf16.msra.mxu2 %v5631_v40 }
 0x3e4   :  { %2237 = vmatpush.bf16.msrb.mxu3 %v5632_v7  ;;  %2300 = vmatpush.bf16.msrb.mxu0 %v5633_v6 }
 0x3e7   :  { %2212 = vmatpush.bf16.msra.mxu1 %v4385_v11  ;;  %2225 = vmatpush.bf16.msra.mxu2 %v4387_v0 }
 0x3e8   :  { %2238 = vmatpush.bf16.msrb.mxu3 %v4390_v57  ;;  %2301 = vmatpush.bf16.msrb.mxu0 %v4045_v47 }
 0x3eb   :  { %2213 = vmatpush.bf16.msra.mxu1 %v4395_v4  ;;  %2226 = vmatpush.bf16.msra.mxu2 %v4397_v43 }
 0x3ec   :  { %2239 = vmatpush.bf16.msrb.mxu3 %v4400_v5  ;;  %2302 = vmatpush.bf16.msrb.mxu0 %v4048_v59 }
 0x3ef   :  { %2214 = vmatpush.bf16.msra.mxu1 %v4405_v48  ;;  %2227 = vmatpush.bf16.msra.mxu2 %v4407_v24 }
 0x3f0   :  { %2240 = vmatpush.bf16.msrb.mxu3 %v4410_v41  ;;  %2303 = vmatpush.bf16.msrb.mxu0 %v5807_v62 }
 0x3f2   :  { %2215 = vmatmul.bf16.vlgmr.msra.gmra.mxu1 %v2141_v22  ;;  %2228 = vmatmul.bf16.vlgmr.msra.gmra.mxu2 %v4925_v33  ;;  %v5816_v33 = vld [vmem:[#allocation32_spill] sm:$0xff] }
 0x3f3   :  { %2309 = vmatpush.bf16.msrb.mxu1 %v4055_v15  ;;  %2322 = vmatpush.bf16.msrb.mxu2 %v4053_v10 }
 0x3f4   :  { %2384 = vmatpush.bf16.msra.mxu3 %v5743_v26  ;;  %2397 = vmatpush.bf16.msra.mxu0 %v5811_v52 }
 0x3f5   :  { %2241 = vmatmul.bf16.vlgmr.msrb.gmra.mxu3 %v2141_v22  ;;  %v5831_v22 = vld [vmem:[#allocation74_spill] sm:$0xff] }
 0x3f7   :  { %2310 = vmatpush.bf16.msrb.mxu1 %v5808_v2  ;;  %2323 = vmatpush.bf16.msrb.mxu2 %v5809_v12 }
 0x3f8   :  { %2385 = vmatpush.bf16.msra.mxu3 %v5810_v9  ;;  %2398 = vmatpush.bf16.msra.mxu0 %v5815_v3 }
 0x3fb   :  { %2311 = vmatpush.bf16.msrb.mxu1 %v5812_v46  ;;  %2324 = vmatpush.bf16.msrb.mxu2 %v5813_v56 }
 0x3fc   :  { %2386 = vmatpush.bf16.msra.mxu3 %v5814_v13  ;;  %2399 = vmatpush.bf16.msra.mxu0 %v5819_v63 }
 0x3ff   :  { %2312 = vmatpush.bf16.msrb.mxu1 %v5816_v33  ;;  %2325 = vmatpush.bf16.msrb.mxu2 %v5817_v35  ;;  %v5864_v35 = vld [vmem:[#allocation109_spill] sm:$0xff] }
 0x400   :  { %2387 = vmatpush.bf16.msra.mxu3 %v5818_v29  ;;  %2400 = vmatpush.bf16.msra.mxu0 %v5823_v61 }
 0x403   :  { %2313 = vmatpush.bf16.msrb.mxu1 %v5820_v44  ;;  %2326 = vmatpush.bf16.msrb.mxu2 %v5821_v42  ;;  %v5834_v42 = vld [vmem:[#allocation51_spill] sm:$0xff] }
 0x404   :  { %2388 = vmatpush.bf16.msra.mxu3 %v5822_v55  ;;  %2401 = vmatpush.bf16.msra.mxu0 %v5827_v14  ;;  %v5833_v55 = vld [vmem:[#allocation39_spill] sm:$0xff]  ;;  %v5838_v14 = vld [vmem:[#allocation68_spill] sm:$0xff] }
 0x407   :  { %2314 = vmatpush.bf16.msrb.mxu1 %v5824_v45  ;;  %2327 = vmatpush.bf16.msrb.mxu2 %v5825_v38  ;;  %v5835_v45 = vld [vmem:[#allocation52_spill] sm:$0xff] }
 0x408   :  { %2389 = vmatpush.bf16.msra.mxu3 %v5826_v16  ;;  %2402 = vmatpush.bf16.msra.mxu0 %v5831_v22  ;;  %v5836_v38 = vld [vmem:[#allocation64_spill] sm:$0xff]  ;;  %v5837_v16 = vld [vmem:[#allocation78_spill] sm:$0xff] }
 0x409   :  { %v5842_v22 = vld [vmem:[#allocation72_spill] sm:$0xff] }
 0x40b   :  { %2315 = vmatpush.bf16.msrb.mxu1 %v5828_v39  ;;  %2328 = vmatpush.bf16.msrb.mxu2 %v5829_v21  ;;  %v5839_v39 = vld [vmem:[#allocation55_spill] sm:$0xff]  ;;  %v5840_v21 = vld [vmem:[#allocation57_spill] sm:$0xff] }
 0x40c   :  { %2390 = vmatpush.bf16.msra.mxu3 %v5830_v1  ;;  %2403 = vmatpush.bf16.msra.mxu0 %v5837_v16  ;;  %v5841_v1 = vld [vmem:[#allocation83_spill] sm:$0xff]  ;;  %v5848_v16 = vld [vmem:[#allocation81_spill] sm:$0xff] }
 0x40f   :  { %2316 = vmatpush.bf16.msrb.mxu1 %v5832_v30  ;;  %2329 = vmatpush.bf16.msrb.mxu2 %v5833_v55  ;;  %v5843_v30 = vld [vmem:[#allocation61_spill] sm:$0xff]  ;;  %v5844_v55 = vld [vmem:[#allocation62_spill] sm:$0xff] }
 0x410   :  { %2391 = vmatpush.bf16.msra.mxu3 %v5836_v38  ;;  %2404 = vmatpush.bf16.msra.mxu0 %v5841_v1  ;;  %v5847_v38 = vld [vmem:[#allocation67_spill] sm:$0xff] }
 0x411   :  { %v5852_v1 = vld [vmem:[#allocation75_spill] sm:$0xff] }
 0x413   :  { %2410 = vmatpush.bf16.msra.mxu1 %v5834_v42  ;;  %2423 = vmatpush.bf16.msra.mxu2 %v5835_v45  ;;  %v5845_v42 = vld [vmem:[#allocation77_spill] sm:$0xff]  ;;  %v5846_v45 = vld [vmem:[#allocation66_spill] sm:$0xff] }
 0x414   :  { %2436 = vmatpush.bf16.msrb.mxu3 %v5838_v14  ;;  %v5849_v14 = vld [vmem:[#allocation70_spill] sm:$0xff] }
 0x417   :  { %2411 = vmatpush.bf16.msra.mxu1 %v5839_v39  ;;  %2424 = vmatpush.bf16.msra.mxu2 %v5840_v21  ;;  %v5850_v39 = vld [vmem:[#allocation71_spill] sm:$0xff]  ;;  %v5851_v21 = vld [vmem:[#allocation86_spill] sm:$0xff] }
 0x418   :  { %2437 = vmatpush.bf16.msrb.mxu3 %v5842_v22  ;;  %v5853_v22 = vld [vmem:[#allocation76_spill] sm:$0xff] }
 0x41b   :  { %2412 = vmatpush.bf16.msra.mxu1 %v5843_v30  ;;  %2425 = vmatpush.bf16.msra.mxu2 %v5844_v55  ;;  %v5854_v30 = vld [vmem:[#allocation88_spill] sm:$0xff]  ;;  %v5855_v55 = vld [vmem:[#allocation79_spill] sm:$0xff] }
 0x41c   :  { %2438 = vmatpush.bf16.msrb.mxu3 %v5845_v42  ;;  %v5856_v42 = vld [vmem:[#allocation80_spill] sm:$0xff] }
 0x41f   :  { %2413 = vmatpush.bf16.msra.mxu1 %v5846_v45  ;;  %2426 = vmatpush.bf16.msra.mxu2 %v5847_v38  ;;  %v5857_v45 = vld [vmem:[#allocation89_spill] sm:$0xff]  ;;  %v5858_v38 = vld [vmem:[#allocation84_spill] sm:$0xff] }
 0x420   :  { %2439 = vmatpush.bf16.msrb.mxu3 %v5848_v16  ;;  %v5859_v16 = vld [vmem:[#allocation85_spill] sm:$0xff] }
 0x423   :  { %2414 = vmatpush.bf16.msra.mxu1 %v5849_v14  ;;  %2427 = vmatpush.bf16.msra.mxu2 %v5850_v39  ;;  %v5860_v14 = vld [vmem:[#allocation90_spill] sm:$0xff]  ;;  %v5861_v39 = vld [vmem:[#allocation43_spill] sm:$0xff] }
 0x424   :  { %2440 = vmatpush.bf16.msrb.mxu3 %v5851_v21  ;;  %v5862_v21 = vld [vmem:[#allocation63_spill] sm:$0xff] }
 0x425   :  { %v345_v61 = vadd.f32 %v5862_v21, %v5861_v39  ;;  %v5865_v39 = vld [vmem:[#allocation42_spill] sm:$0xff] }
 0x427   :  { %2415 = vmatpush.bf16.msra.mxu1 %v5852_v1  ;;  %2428 = vmatpush.bf16.msra.mxu2 %v5853_v22 }
 0x428   :  { %2441 = vmatpush.bf16.msrb.mxu3 %v5854_v30  ;;  %v5863_v30 = vld [vmem:[#allocation56_spill] sm:$0xff] }
 0x42b   :  { %2416 = vmatpush.bf16.msra.mxu1 %v5855_v55  ;;  %2429 = vmatpush.bf16.msra.mxu2 %v5856_v42  ;;  %v374_v55 = vadd.f32 %v5864_v35, %v5863_v30 }
 0x42c   :  { %2442 = vmatpush.bf16.msrb.mxu3 %v5857_v45 }
 0x42f   :  { %2417 = vmatpush.bf16.msra.mxu1 %v5858_v38  ;;  %2430 = vmatpush.bf16.msra.mxu2 %v5859_v16 }
 0x430   :  { %2443 = vmatpush.bf16.msrb.mxu3 %v5860_v14 }
 0x44e   :  { %v2063_v1 = vpop.f32.mrf.mxu1 }
 0x44f   :  { %v2093_v44 = vadd.f32 %v2063_v1, %v345_v61  ;;  %v2151_v22 = vpop.f32.mrf.mxu0 }
 0x450   :  { %v2152_v61 = vadd.f32 %v2151_v22, %v5865_v39 }
 0x451   :  { %v3462_v29 = vmul.f32 -1.442695, %v2093_v44 }
 0x453   :  { %3700 = vpow2.f32 %v3462_v29 }
 0x454   :  { %v2076_v42 = vpop.f32.mrf.mxu2 }
 0x455   :  { %v2113_v63 = vadd.f32 %v2076_v42, %v374_v55  ;;  %v2089_v45 = vpop.f32.mrf.mxu3  ;;  %v5866_v55 = vld [vmem:[#allocation115_spill] sm:$0xff] }
 0x456   :  { %v2065_v33 = vpop.f32.mrf.mxu1 }
 0x457   :  { %v3463_v38 = vmul.f32 -1.442695, %v2113_v63  ;;  %v2153_v13 = vpop.f32.mrf.mxu0 }
 0x459   :  { %v3701_v16 = vpop.eup %3700  ;;  %3702 = vpow2.f32 %v3463_v38 }
 0x45a   :  { %v2097_v14 = vadd.f32 1.0, %v3701_v16 }
 0x45c   :  { %3704 = vrcp.f32 %v2097_v14  ;;  %v2078_v56 = vpop.f32.mrf.mxu2  ;;  %v2107_v22 = vand.u32 2147483647, %v2097_v14  ;;  %vm2103_vm9 = vweird.f32 %v2097_v14 }
 0x45d   :  { %v2091_v21 = vpop.f32.mrf.mxu3  ;;  %v2109_v56 = vand.u32 2147483648, %v2097_v14 }
 0x45e   :  { %v2164_v44 = vpop.f32.mrf.mxu1  ;;  %vm2108_vm11 = vcmp.eq.f32.partialorder %v2107_v22, 8.507059e+37 }
 0x45f   :  { %v3703_v1 = vpop.eup %3702  ;;  %v2165_v46 = vadd.f32 %v2164_v44, %v2152_v61  ;;  %v5035_v35 = vpop.f32.mrf.mxu0 }
 0x460   :  { %v2117_v3 = vadd.f32 1.0, %v3703_v1 }
 0x461   :  { %v3464_v33 = vmul.f32 -1.442695, %v2165_v46  ;;  %v2110_v46 = vor.u32 1.1754944e-38, %v2109_v56 }
 0x462   :  { %v3705_v29 = vpop.eup %3704  ;;  %3706 = vrcp.f32 %v2117_v3  ;;  %v2129_v56 = vand.u32 2147483648, %v2117_v3  ;;  %v2127_v62 = vand.u32 2147483647, %v2117_v3  ;;  %vm2123_vm13 = vweird.f32 %v2117_v3 }
 0x463   :  { %v2099_v42 = vmul.f32 %v3705_v29, %v2097_v14  ;;  %3708 = vpow2.f32 %v3464_v33  ;;  %vm2104_vm8 = vweird.f32 %v3705_v29 }
 0x464   :  { %v2177_v63 = vpop.f32.mrf.mxu2  ;;  %vm2105_vm10 = vmor %vm2103_vm9, %vm2104_vm8  ;;  %vm2128_vm15 = vcmp.eq.f32.partialorder %v2127_v62, 8.507059e+37 }
 0x465   :  { %v2100_v13 = vsub.f32 1.0, %v2099_v42  ;;  %v2178_v38 = vadd.f32 %v2177_v63, %v5866_v55  ;;  %v2190_v16 = vpop.f32.mrf.mxu3  ;;  %v5041_v42 = vld [vmem:[%s5331_s6] ss:$0 sm:$0xff]  ;;  %s3966_s6 = smov [#allocation15]  }
 0x466   :  { %v2166_v30 = vpop.f32.mrf.mxu1  ;;  %v2133_v33 = vadd.f32 %v5041_v42, %v2089_v45  ;;  %s2965_s21 = sshll.u32 %s3966_s6, 4  ;;  %s2966_s21 = int_to_ptr.vmem [resolvable:$true] %s2965_s21 }
 0x467   :  { %v2101_v21 = vmul.f32 %v3705_v29, %v2100_v13  ;;  %v2191_v39 = vadd.f32 %v2190_v16, %v2178_v38  ;;  %v2205_v61 = vpop.f32.mrf.mxu0  ;;  %v5867_v30 = vld [vmem:[#allocation87_spill] sm:$0xff]  ;;  %v5868_v38 = vld [vmem:[#allocation110_spill] sm:$0xff] }
 0x468   :  { %v3707_v1 = vpop.eup %3706  ;;  %v403_v16 = vadd.f32 %v5868_v38, %v5867_v30 }
 0x469   :  { %v2119_v44 = vmul.f32 %v3707_v1, %v2117_v3  ;;  %v2102_v9 = vadd.f32 %v3705_v29, %v2101_v21  ;;  %v3465_v12 = vmul.f32 -1.442695, %v2191_v39  ;;  %v3709_v63 = vpop.eup %3708  ;;  %vm2124_vm12 = vweird.f32 %v3707_v1 }
 0x46a   :  { %v2249_v14 = vadd.f32 1.0, %v3709_v63  ;;  %vm2125_vm14 = vmor %vm2123_vm13, %vm2124_vm12 }
 0x46b   :  { %v2120_v13 = vsub.f32 1.0, %v2119_v44  ;;  %v2106_v55 = vsel %vm2105_vm10, %v3705_v29, %v2102_v9  ;;  %3710 = vpow2.f32 %v3465_v12  ;;  %v2130_v12 = vor.u32 1.1754944e-38, %v2129_v56 }
 0x46c   :  { %v2111_v21 = vsel %vm2108_vm11, %v2110_v46, %v2106_v55  ;;  %v2179_v39 = vpop.f32.mrf.mxu2  ;;  %3712 = vrcp.f32 %v2249_v14  ;;  %v2259_v62 = vand.u32 2147483647, %v2249_v14  ;;  %vm2255_vm1 = vweird.f32 %v2249_v14 }
 0x46d   :  { %v2121_v61 = vmul.f32 %v3707_v1, %v2120_v13  ;;  %v2134_v52 = vmul.f32 %v2133_v33, %v2111_v21  ;;  %v2192_v2 = vpop.f32.mrf.mxu3 }
 0x46e   :  { %vm2260_vm3 = vcmp.eq.f32.partialorder %v2259_v62, 8.507059e+37 }
 0x46f   :  { %v2122_v26 = vadd.f32 %v3707_v1, %v2121_v61  ;;  %v2135_v45 = vadd.f32 %v2134_v52, %v403_v16  ;;  %v2216_v44 = vpop.f32.mrf.mxu1  ;;  %v2261_v16 = vand.u32 2147483648, %v2249_v14 }
 0x471   :  { %v3711_v9 = vpop.eup %3710  ;;  %v2126_v29 = vsel %vm2125_vm14, %v3707_v1, %v2122_v26  ;;  %3714 = vtanh.f32 %v2135_v45 }
 0x472   :  { %v2268_v55 = vadd.f32 1.0, %v3711_v9  ;;  %v2131_v22 = vsel %vm2128_vm15, %v2130_v12, %v2126_v29  ;;  %v3713_v46 = vpop.eup %3712  ;;  %v2204_v29 = vadd.f32 %v5035_v35, %v4525_v54 }
 0x473   :  { %v2251_v63 = vmul.f32 %v3713_v46, %v2249_v14  ;;  %v2137_v13 = vsub.f32 1.0, %v2131_v22  ;;  %v2139_v52 = vmul.f32 %v2131_v22, %v4919_v53  ;;  %vm2256_vm0 = vweird.f32 %v3713_v46 }
 0x474   :  { %3716 = vrcp.f32 %v2268_v55  ;;  %vm2257_vm2 = vmor %vm2255_vm1, %vm2256_vm0  ;;  %v2262_v53 = vor.u32 1.1754944e-38, %v2261_v16  ;;  %vm2274_vm5 = vweird.f32 %v2268_v55 }
 0x475   :  { %v2229_v33 = vpop.f32.mrf.mxu2  ;;  %v2252_v21 = vsub.f32 1.0, %v2251_v63 }
 0x476   :  { %v2230_v61 = vadd.f32 %v2229_v33, %v4522_v36  ;;  %v2280_v33 = vand.u32 2147483648, %v2268_v55 }
 0x477   :  { %v3715_v38 = vpop.eup %3714  ;;  %v2218_v39 = vpop.f32.mrf.mxu1  ;;  %v2253_v26 = vmul.f32 %v3713_v46, %v2252_v21 }
 0x478   :  { %v2242_v2 = vpop.f32.mrf.mxu3  ;;  %v2138_v3 = vmul.f32 %v3715_v38, %v2137_v13  ;;  %v2217_v38 = vadd.f32 %v2216_v44, %v2204_v29  ;;  %v5878_v29 = vld [vmem:[#allocation45_spill] sm:$0xff] }
 0x479   :  { %v2254_v9 = vadd.f32 %v3713_v46, %v2253_v26  ;;  %v2243_v63 = vadd.f32 %v2242_v2, %v2230_v61 }
 0x47a   :  { %v3717_v1 = vpop.eup %3716  ;;  %v5048_v56 = vadd.f32 %v2139_v52, %v2138_v3  ;;  %v2278_v52 = vand.u32 2147483647, %v2268_v55 }
 0x47b   :  { %v2270_v45 = vmul.f32 %v3717_v1, %v2268_v55  ;;  %v2258_v13 = vsel %vm2257_vm2, %v3713_v46, %v2254_v9  ;;  %vm2275_vm4 = vweird.f32 %v3717_v1  ;;  %v2281_v46 = vor.u32 1.1754944e-38, %v2280_v33  ;;  %v5875_v9 = vld [vmem:[#allocation30_spill] sm:$0xff]  ;;  %v5884_v33 = vld [vmem:[#allocation65_spill] sm:$0xff] }
 0x47c   :  { %v5052_v12 = vpack.c.bf16 %v5048_v56, %v5048_v56  ;;  %v2263_v21 = vsel %vm2260_vm3, %v2262_v53, %v2258_v13  ;;  %vm2276_vm6 = vmor %vm2274_vm5, %vm2275_vm4  ;;  %vm2279_vm7 = vcmp.eq.f32.partialorder %v2278_v52, 8.507059e+37  ;;  %v5880_v53 = vld [vmem:[#allocation60_spill] sm:$0xff]  ;;  %v5883_v13 = vld [vmem:[#allocation34_spill] sm:$0xff] }
 0x47d   :  { %v2271_v22 = vsub.f32 1.0, %v2270_v45  ;;  %v2231_v39 = vpop.f32.mrf.mxu2  ;;  %v2284_v26 = vmul.f32 %v2263_v21, %v2243_v63  ;;  %v5874_v45 = vld [vmem:[#allocation44_spill] sm:$0xff]  ;;  %v5882_v63 = vld [vmem:[#allocation47_spill] sm:$0xff]  ;;  %v5890_v52 = vld [vmem:[#allocation53_spill] sm:$0xff] }
 0x47e   :  { %2304 = vmatmul.bf16.vlgmr.msrb.gmra.mxu0 %v5052_v12  ;;  %2317 = vmatmul.bf16.vlgmr.msrb.gmra.mxu1 %v5052_v12  ;;  %v5886_v21 = vld [vmem:[#allocation48_spill] sm:$0xff] }
 0x47f   :  { %v2272_v14 = vmul.f32 %v3717_v1, %v2271_v22  ;;  %2330 = vmatmul.bf16.vlgmr.msrb.gmra.mxu2 %v5052_v12  ;;  %2392 = vmatmul.bf16.vlgmr.msra.gmra.mxu3 %v5052_v12  ;;  %v2285_v44 = vadd.f32 %v2284_v26, %v2217_v38  ;;  %v5881_v22 = vld [vmem:[#allocation31_spill] sm:$0xff]  ;;  %v5885_v38 = vld [vmem:[#allocation33_spill] sm:$0xff]  ;;  %v5887_v39 = vld [vmem:[#allocation36_spill] sm:$0xff] }
 0x480   :  { %v2244_v3 = vpop.f32.mrf.mxu3  ;;  %2449 = vmatpush.bf16.msrb.mxu0 %v4331_v37  ;;  %2462 = vmatpush.bf16.msrb.mxu1 %v5617_v17  ;;  %v5891_v26 = vld [vmem:[#allocation38_spill] sm:$0xff] }
 0x481   :  { %v2273_v35 = vadd.f32 %v3717_v1, %v2272_v14  ;;  %2475 = vmatpush.bf16.msrb.mxu2 %v5618_v27  ;;  %2538 = vmatpush.bf16.msra.mxu3 %v5619_v60  ;;  %3718 = vtanh.f32 %v2285_v44  ;;  %v5888_v3 = vld [vmem:[#allocation69_spill] sm:$0xff]  ;;  %v5889_v14 = vld [vmem:[#allocation35_spill] sm:$0xff] }
 0x482   :  { %v5893_v44 = vld [vmem:[#allocation37_spill] sm:$0xff] }
 0x483   :  { %v2277_v2 = vsel %vm2276_vm6, %v3717_v1, %v2273_v35  ;;  %v5892_v35 = vld [vmem:[#allocation74_spill] sm:$0xff] }
 0x484   :  { %v2282_v16 = vsel %vm2279_vm7, %v2281_v46, %v2277_v2  ;;  %2450 = vmatpush.bf16.msrb.mxu0 %v4343_v49  ;;  %2463 = vmatpush.bf16.msrb.mxu1 %v5620_v34  ;;  %v5894_v46 = vld [vmem:[#allocation59_spill] sm:$0xff]  ;;  %v5895_v2 = vld [vmem:[#allocation40_spill] sm:$0xff] }
 0x485   :  { %2476 = vmatpush.bf16.msrb.mxu2 %v5621_v20  ;;  %2539 = vmatpush.bf16.msra.mxu3 %v5622_v31  ;;  %v2287_v55 = vsub.f32 1.0, %v2282_v16  ;;  %v2289_v62 = vmul.f32 %v2282_v16, %v4947_v58  ;;  %v5896_v16 = vld [vmem:[#allocation78_spill] sm:$0xff]  ;;  %v5917_v58 = vld [vmem:[#allocation88_spill] sm:$0xff] }
 0x487   :  { %v3719_v60 = vpop.eup %3718 }
 0x488   :  { %2451 = vmatpush.bf16.msrb.mxu0 %v4353_v18  ;;  %2464 = vmatpush.bf16.msrb.mxu1 %v5623_v25  ;;  %v2288_v61 = vmul.f32 %v3719_v60, %v2287_v55  ;;  %v5897_v55 = vld [vmem:[#allocation39_spill] sm:$0xff] }
 0x489   :  { %2477 = vmatpush.bf16.msrb.mxu2 %v5624_v8  ;;  %2540 = vmatpush.bf16.msra.mxu3 %v5625_v28  ;;  %v5869_v28 = vld [vmem:[#allocation41_spill] sm:$0xff]  ;;  %v5898_v60 = vld [vmem:[#allocation51_spill] sm:$0xff] }
 0x48a   :  { %v5073_v1 = vadd.f32 %v2289_v62, %v2288_v61  ;;  %v5899_v61 = vld [vmem:[#allocation52_spill] sm:$0xff] }
 0x48b   :  { %v5900_v62 = vld [vmem:[#allocation64_spill] sm:$0xff] }
 0x48c   :  { %2452 = vmatpush.bf16.msrb.mxu0 %v5627_v51  ;;  %2465 = vmatpush.bf16.msrb.mxu1 %v5628_v19  ;;  %v2383_v31 = vpack.c.bf16 %v5073_v1, %v5073_v1 }
 0x48d   :  { %2478 = vmatpush.bf16.msrb.mxu2 %v5629_v23  ;;  %2541 = vmatpush.bf16.msra.mxu3 %v5630_v50  ;;  %v5871_v50 = vld [vmem:[#allocation28_spill] sm:$0xff] }
 0x48e   :  { %2418 = vmatmul.bf16.vlgmr.msra.gmra.mxu1 %v5052_v12  ;;  %2405 = vmatmul.bf16.vlgmr.msra.gmra.mxu0 %v2383_v31 }
 0x48f   :  { %2444 = vmatmul.bf16.vlgmr.msrb.gmra.mxu3 %v5052_v12  ;;  %2431 = vmatmul.bf16.vlgmr.msra.gmra.mxu2 %v2383_v31 }
 0x490   :  { %2453 = vmatpush.bf16.msrb.mxu0 %v4373_v32  ;;  %2466 = vmatpush.bf16.msrb.mxu1 %v5631_v40 }
 0x491   :  { %2479 = vmatpush.bf16.msrb.mxu2 %v5632_v7  ;;  %2542 = vmatpush.bf16.msra.mxu3 %v5633_v6  ;;  %v5873_v6 = vld [vmem:[#allocation27_spill] sm:$0xff] }
 0x494   :  { %2454 = vmatpush.bf16.msrb.mxu0 %v4385_v11  ;;  %2467 = vmatpush.bf16.msrb.mxu1 %v4387_v0 }
 0x495   :  { %2480 = vmatpush.bf16.msrb.mxu2 %v4390_v57  ;;  %2543 = vmatpush.bf16.msra.mxu3 %v4045_v47  ;;  %v5870_v47 = vld [vmem:[#allocation26_spill] sm:$0xff] }
 0x498   :  { %2455 = vmatpush.bf16.msrb.mxu0 %v4395_v4  ;;  %2468 = vmatpush.bf16.msrb.mxu1 %v4397_v43 }
 0x499   :  { %2481 = vmatpush.bf16.msrb.mxu2 %v4400_v5  ;;  %2544 = vmatpush.bf16.msra.mxu3 %v4048_v59  ;;  %v5872_v59 = vld [vmem:[#allocation50_spill] sm:$0xff] }
 0x49c   :  { %2456 = vmatpush.bf16.msrb.mxu0 %v4405_v48  ;;  %2469 = vmatpush.bf16.msrb.mxu1 %v4407_v24 }
 0x49d   :  { %2482 = vmatpush.bf16.msrb.mxu2 %v4410_v41  ;;  %2545 = vmatpush.bf16.msra.mxu3 %v5870_v47  ;;  %v5902_v47 = vld [vmem:[#allocation83_spill] sm:$0xff] }
 0x49f   :  { %2457 = vmatmul.bf16.vlgmr.msrb.gmra.mxu0 %v2383_v31  ;;  %2470 = vmatmul.bf16.vlgmr.msrb.gmra.mxu1 %v5052_v12  ;;  %v5879_v12 = vld [vmem:[#allocation32_spill] sm:$0xff] }
 0x4a0   :  { %2551 = vmatpush.bf16.msra.mxu0 %v4055_v15  ;;  %2564 = vmatpush.bf16.msra.mxu1 %v4053_v10  ;;  %v5876_v15 = vld [vmem:[#allocation54_spill] sm:$0xff]  ;;  %v5877_v10 = vld [vmem:[#allocation29_spill] sm:$0xff] }
 0x4a1   :  { %2626 = vmatpush.bf16.msra.mxu2 %v5869_v28  ;;  %2639 = vmatpush.bf16.msrb.mxu3 %v5872_v59 }
 0x4a2   :  { %2483 = vmatmul.bf16.vlgmr.msrb.gmra.mxu2 %v2383_v31  ;;  %v5901_v31 = vld [vmem:[#allocation68_spill] sm:$0xff] }
 0x4a4   :  { %2552 = vmatpush.bf16.msra.mxu0 %v5871_v50  ;;  %2565 = vmatpush.bf16.msra.mxu1 %v5873_v6  ;;  %v5903_v50 = vld [vmem:[#allocation55_spill] sm:$0xff]  ;;  %v5904_v6 = vld [vmem:[#allocation57_spill] sm:$0xff] }
 0x4a5   :  { %2627 = vmatpush.bf16.msra.mxu2 %v5874_v45  ;;  %2640 = vmatpush.bf16.msrb.mxu3 %v5876_v15 }
 0x4a8   :  { %2553 = vmatpush.bf16.msra.mxu0 %v5875_v9  ;;  %2566 = vmatpush.bf16.msra.mxu1 %v5877_v10  ;;  %v5905_v9 = vld [vmem:[#allocation72_spill] sm:$0xff]  ;;  %v5906_v10 = vld [vmem:[#allocation61_spill] sm:$0xff] }
 0x4a9   :  { %2628 = vmatpush.bf16.msra.mxu2 %v5878_v29  ;;  %2641 = vmatpush.bf16.msrb.mxu3 %v5880_v53 }
 0x4ac   :  { %2554 = vmatpush.bf16.msra.mxu0 %v5879_v12  ;;  %2567 = vmatpush.bf16.msra.mxu1 %v5881_v22  ;;  %v5907_v12 = vld [vmem:[#allocation62_spill] sm:$0xff]  ;;  %v5908_v22 = vld [vmem:[#allocation77_spill] sm:$0xff] }
 0x4ad   :  { %2629 = vmatpush.bf16.msra.mxu2 %v5882_v63  ;;  %2642 = vmatpush.bf16.msrb.mxu3 %v5884_v33 }
 0x4b0   :  { %2555 = vmatpush.bf16.msra.mxu0 %v5883_v13  ;;  %2568 = vmatpush.bf16.msra.mxu1 %v5885_v38  ;;  %v5909_v13 = vld [vmem:[#allocation66_spill] sm:$0xff]  ;;  %v5910_v38 = vld [vmem:[#allocation67_spill] sm:$0xff] }
 0x4b1   :  { %2630 = vmatpush.bf16.msra.mxu2 %v5886_v21  ;;  %2643 = vmatpush.bf16.msrb.mxu3 %v5888_v3  ;;  %v5921_v3 = vld [vmem:[#allocation84_spill] sm:$0xff] }
 0x4b4   :  { %2556 = vmatpush.bf16.msra.mxu0 %v5887_v39  ;;  %2569 = vmatpush.bf16.msra.mxu1 %v5889_v14  ;;  %v5911_v39 = vld [vmem:[#allocation81_spill] sm:$0xff]  ;;  %v5912_v14 = vld [vmem:[#allocation70_spill] sm:$0xff] }
 0x4b5   :  { %2631 = vmatpush.bf16.msra.mxu2 %v5890_v52  ;;  %2644 = vmatpush.bf16.msrb.mxu3 %v5892_v35  ;;  %v5920_v35 = vld [vmem:[#allocation89_spill] sm:$0xff] }
 0x4b8   :  { %2557 = vmatpush.bf16.msra.mxu0 %v5891_v26  ;;  %2570 = vmatpush.bf16.msra.mxu1 %v5893_v44  ;;  %v5913_v26 = vld [vmem:[#allocation71_spill] sm:$0xff]  ;;  %v5914_v44 = vld [vmem:[#allocation86_spill] sm:$0xff] }
 0x4b9   :  { %2632 = vmatpush.bf16.msra.mxu2 %v5894_v46  ;;  %2645 = vmatpush.bf16.msrb.mxu3 %v5896_v16  ;;  %v5919_v16 = vld [vmem:[#allocation80_spill] sm:$0xff] }
 0x4bc   :  { %2558 = vmatpush.bf16.msra.mxu0 %v5895_v2  ;;  %2571 = vmatpush.bf16.msra.mxu1 %v5897_v55  ;;  %v5915_v2 = vld [vmem:[#allocation75_spill] sm:$0xff]  ;;  %v5916_v55 = vld [vmem:[#allocation76_spill] sm:$0xff] }
 0x4bd   :  { %2633 = vmatpush.bf16.msra.mxu2 %v5900_v62  ;;  %2646 = vmatpush.bf16.msrb.mxu3 %v5902_v47  ;;  %v5918_v47 = vld [vmem:[#allocation79_spill] sm:$0xff] }
 0x4c0   :  { %2652 = vmatpush.bf16.msrb.mxu0 %v5898_v60  ;;  %2665 = vmatpush.bf16.msrb.mxu1 %v5899_v61 }
 0x4c1   :  { %2678 = vmatpush.bf16.msrb.mxu2 %v5901_v31 }
 0x4c4   :  { %2653 = vmatpush.bf16.msrb.mxu0 %v5903_v50  ;;  %2666 = vmatpush.bf16.msrb.mxu1 %v5904_v6  ;;  %v5927_v6 = vld [vmem:[#allocation42_spill] sm:$0xff] }
 0x4c5   :  { %2679 = vmatpush.bf16.msrb.mxu2 %v5905_v9 }
 0x4c8   :  { %2654 = vmatpush.bf16.msrb.mxu0 %v5906_v10  ;;  %2667 = vmatpush.bf16.msrb.mxu1 %v5907_v12 }
 0x4c9   :  { %2680 = vmatpush.bf16.msrb.mxu2 %v5908_v22 }
 0x4cc   :  { %2655 = vmatpush.bf16.msrb.mxu0 %v5909_v13  ;;  %2668 = vmatpush.bf16.msrb.mxu1 %v5910_v38 }
 0x4cd   :  { %2681 = vmatpush.bf16.msrb.mxu2 %v5911_v39  ;;  %v5922_v39 = vld [vmem:[#allocation85_spill] sm:$0xff] }
 0x4d0   :  { %2656 = vmatpush.bf16.msrb.mxu0 %v5912_v14  ;;  %2669 = vmatpush.bf16.msrb.mxu1 %v5913_v26  ;;  %v5923_v14 = vld [vmem:[#allocation90_spill] sm:$0xff]  ;;  %v5924_v26 = vld [vmem:[#allocation56_spill] sm:$0xff] }
 0x4d1   :  { %2682 = vmatpush.bf16.msrb.mxu2 %v5914_v44  ;;  %v5925_v44 = vld [vmem:[#allocation111_spill] sm:$0xff] }
 0x4d2   :  { %v377_v38 = vadd.f32 %v5925_v44, %v5924_v26 }
 0x4d4   :  { %2657 = vmatpush.bf16.msrb.mxu0 %v5915_v2  ;;  %2670 = vmatpush.bf16.msrb.mxu1 %v5916_v55  ;;  %v5926_v55 = vld [vmem:[#allocation73_spill] sm:$0xff] }
 0x4d5   :  { %2683 = vmatpush.bf16.msrb.mxu2 %v5917_v58 }
 0x4d8   :  { %2658 = vmatpush.bf16.msrb.mxu0 %v5918_v47  ;;  %2671 = vmatpush.bf16.msrb.mxu1 %v5919_v16 }
 0x4d9   :  { %2684 = vmatpush.bf16.msrb.mxu2 %v5920_v35 }
 0x4dc   :  { %2659 = vmatpush.bf16.msrb.mxu0 %v5921_v3  ;;  %2672 = vmatpush.bf16.msrb.mxu1 %v5922_v39 }
 0x4dd   :  { %2685 = vmatpush.bf16.msrb.mxu2 %v5923_v14 }
 0x4fb   :  { %v2305_v2 = vpop.f32.mrf.mxu0  ;;  %v2318_v33 = vpop.f32.mrf.mxu1 }
 0x4fc   :  { %v2335_v22 = vadd.f32 %v2305_v2, %v5926_v55  ;;  %v2355_v58 = vadd.f32 %v2318_v33, %v377_v38 }
 0x4fe   :  { %v3466_v13 = vmul.f32 -1.442695, %v2335_v22  ;;  %v3467_v47 = vmul.f32 -1.442695, %v2355_v58 }
 0x500   :  { %3720 = vpow2.f32 %v3466_v13 }
 0x501   :  { %3722 = vpow2.f32 %v3467_v47 }
 0x502   :  { %v2331_v16 = vpop.f32.mrf.mxu2  ;;  %v2393_v35 = vpop.f32.mrf.mxu3 }
 0x503   :  { %v2307_v12 = vpop.f32.mrf.mxu0  ;;  %v2320_v3 = vpop.f32.mrf.mxu1  ;;  %v2394_v2 = vadd.f32 %v2393_v35, %v5927_v6 }
 0x504   :  { %v5928_v3 = vld [vmem:[#allocation115_spill] sm:$0xff] }
 0x506   :  { %v3721_v53 = vpop.eup %3720 }
 0x507   :  { %v3723_v39 = vpop.eup %3722  ;;  %v2339_v9 = vadd.f32 1.0, %v3721_v53 }
 0x508   :  { %v2359_v14 = vadd.f32 1.0, %v3723_v39 }
 0x509   :  { %3724 = vrcp.f32 %v2339_v9  ;;  %v2351_v31 = vand.u32 2147483648, %v2339_v9  ;;  %v2349_v35 = vand.u32 2147483647, %v2339_v9  ;;  %vm2345_vm9 = vweird.f32 %v2339_v9 }
 0x50a   :  { %3726 = vrcp.f32 %v2359_v14  ;;  %v2333_v44 = vpop.f32.mrf.mxu2  ;;  %v2395_v26 = vpop.f32.mrf.mxu3  ;;  %vm2365_vm13 = vweird.f32 %v2359_v14 }
 0x50b   :  { %v2419_v10 = vpop.f32.mrf.mxu1  ;;  %v2406_v33 = vpop.f32.mrf.mxu0  ;;  %vm2350_vm11 = vcmp.eq.f32.partialorder %v2349_v35, 8.507059e+37 }
 0x50c   :  { %v2407_v22 = vadd.f32 %v2406_v33, %v2394_v2  ;;  %v2420_v15 = vadd.f32 %v2419_v10, %v5928_v3  ;;  %v2375_v10 = vadd.f32 %v5041_v42, %v2331_v16  ;;  %v5929_v3 = vld [vmem:[#allocation112_spill] sm:$0xff] }
 0x50e   :  { %v3468_v38 = vmul.f32 -1.442695, %v2407_v22 }
 0x50f   :  { %v3725_v58 = vpop.eup %3724 }
 0x510   :  { %v3727_v13 = vpop.eup %3726  ;;  %v2341_v47 = vmul.f32 %v3725_v58, %v2339_v9  ;;  %3728 = vpow2.f32 %v3468_v38  ;;  %vm2346_vm8 = vweird.f32 %v3725_v58 }
 0x511   :  { %v2361_v55 = vmul.f32 %v3727_v13, %v2359_v14  ;;  %vm2347_vm10 = vmor %vm2345_vm9, %vm2346_vm8  ;;  %vm2366_vm12 = vweird.f32 %v3727_v13 }
 0x512   :  { %v2342_v12 = vsub.f32 1.0, %v2341_v47  ;;  %v5161_v53 = vpop.f32.mrf.mxu3  ;;  %v2432_v44 = vpop.f32.mrf.mxu2  ;;  %v2352_v47 = vor.u32 1.1754944e-38, %v2351_v31  ;;  %vm2367_vm14 = vmor %vm2365_vm13, %vm2366_vm12 }
 0x513   :  { %v2362_v39 = vsub.f32 1.0, %v2361_v55  ;;  %v2421_v26 = vpop.f32.mrf.mxu1  ;;  %v2433_v6 = vadd.f32 %v2432_v44, %v2420_v15  ;;  %v2408_v33 = vpop.f32.mrf.mxu0  ;;  %v406_v15 = vadd.f32 %v5929_v3, %v5867_v30 }
 0x514   :  { %v2343_v50 = vmul.f32 %v3725_v58, %v2342_v12 }
 0x515   :  { %v2363_v2 = vmul.f32 %v3727_v13, %v2362_v39  ;;  %v3469_v22 = vmul.f32 -1.442695, %v2433_v6  ;;  %v2371_v39 = vand.u32 2147483648, %v2359_v14  ;;  %v2369_v6 = vand.u32 2147483647, %v2359_v14 }
 0x516   :  { %v2344_v62 = vadd.f32 %v3725_v58, %v2343_v50  ;;  %v3729_v38 = vpop.eup %3728 }
 0x517   :  { %3730 = vpow2.f32 %v3469_v22  ;;  %v2364_v55 = vadd.f32 %v3727_v13, %v2363_v2  ;;  %v2491_v12 = vadd.f32 1.0, %v3729_v38  ;;  %v2372_v2 = vor.u32 1.1754944e-38, %v2371_v39 }
 0x518   :  { %v2348_v61 = vsel %vm2347_vm10, %v3725_v58, %v2344_v62  ;;  %vm2370_vm15 = vcmp.eq.f32.partialorder %v2369_v6, 8.507059e+37 }
 0x519   :  { %v2353_v26 = vsel %vm2350_vm11, %v2352_v47, %v2348_v61  ;;  %3732 = vrcp.f32 %v2491_v12  ;;  %v2368_v9 = vsel %vm2367_vm14, %v3727_v13, %v2364_v55  ;;  %v2501_v39 = vand.u32 2147483647, %v2491_v12 }
 0x51a   :  { %v2376_v44 = vmul.f32 %v2375_v10, %v2353_v26  ;;  %v2447_v50 = vpop.f32.mrf.mxu3  ;;  %v2434_v31 = vpop.f32.mrf.mxu2  ;;  %v2373_v33 = vsel %vm2370_vm15, %v2372_v2, %v2368_v9  ;;  %vm2497_vm1 = vweird.f32 %v2491_v12 }
 0x51b   :  { %v2379_v47 = vsub.f32 1.0, %v2373_v33  ;;  %v2381_v50 = vmul.f32 %v2373_v33, %v5048_v56  ;;  %v2446_v56 = vadd.f32 %v5161_v53, %v4525_v54  ;;  %vm2502_vm3 = vcmp.eq.f32.partialorder %v2501_v39, 8.507059e+37 }
 0x51c   :  { %v2377_v62 = vadd.f32 %v2376_v44, %v406_v15  ;;  %v2458_v58 = vpop.f32.mrf.mxu0  ;;  %v2471_v16 = vpop.f32.mrf.mxu1  ;;  %v2503_v15 = vand.u32 2147483648, %v2491_v12 }
 0x51d   :  { %v3731_v35 = vpop.eup %3730  ;;  %v2472_v9 = vadd.f32 %v2471_v16, %v4522_v36 }
 0x51e   :  { %3734 = vtanh.f32 %v2377_v62  ;;  %v2510_v61 = vadd.f32 1.0, %v3731_v35  ;;  %v2504_v33 = vor.u32 1.1754944e-38, %v2503_v15 }
 0x51f   :  { %v3733_v22 = vpop.eup %3732 }
 0x520   :  { %3736 = vrcp.f32 %v2510_v61  ;;  %v2493_v3 = vmul.f32 %v3733_v22, %v2491_v12  ;;  %vm2498_vm0 = vweird.f32 %v3733_v22  ;;  %v2522_v16 = vand.u32 2147483648, %v2510_v61 }
 0x521   :  { %vm2499_vm2 = vmor %vm2497_vm1, %vm2498_vm0  ;;  %v2520_v53 = vand.u32 2147483647, %v2510_v61  ;;  %vm2516_vm5 = vweird.f32 %v2510_v61 }
 0x522   :  { %v2494_v14 = vsub.f32 1.0, %v2493_v3 }
 0x523   :  { %vm2521_vm7 = vcmp.eq.f32.partialorder %v2520_v53, 8.507059e+37  ;;  %v5952_v53 = vld [vmem:[#allocation79_spill] sm:$0xff] }
 0x524   :  { %v3735_v38 = vpop.eup %3734  ;;  %v2460_v13 = vpop.f32.mrf.mxu0  ;;  %v2495_v44 = vmul.f32 %v3733_v22, %v2494_v14  ;;  %v2459_v14 = vadd.f32 %v2458_v58, %v2446_v56  ;;  %v5941_v56 = vld [vmem:[#allocation77_spill] sm:$0xff] }
 0x525   :  { %v2484_v10 = vpop.f32.mrf.mxu2  ;;  %v2380_v26 = vmul.f32 %v3735_v38, %v2379_v47  ;;  %v2473_v55 = vpop.f32.mrf.mxu1 }
 0x526   :  { %v3737_v31 = vpop.eup %3736  ;;  %v2496_v35 = vadd.f32 %v3733_v22, %v2495_v44  ;;  %v2485_v47 = vadd.f32 %v2484_v10, %v2472_v9  ;;  %v2523_v10 = vor.u32 1.1754944e-38, %v2522_v16  ;;  %v5936_v9 = vld [vmem:[#allocation61_spill] sm:$0xff]  ;;  %v5949_v16 = vld [vmem:[#allocation86_spill] sm:$0xff] }
 0x527   :  { %v5167_v6 = vadd.f32 %v2381_v50, %v2380_v26  ;;  %v2512_v62 = vmul.f32 %v3737_v31, %v2510_v61  ;;  %vm2517_vm4 = vweird.f32 %v3737_v31 }
 0x528   :  { %v2500_v38 = vsel %vm2499_vm2, %v3733_v22, %v2496_v35  ;;  %vm2518_vm6 = vmor %vm2516_vm5, %vm2517_vm4  ;;  %v5939_v35 = vld [vmem:[#allocation62_spill] sm:$0xff] }
 0x529   :  { %v5172_v2 = vpack.c.bf16 %v5167_v6, %v5167_v6  ;;  %v2513_v3 = vsub.f32 1.0, %v2512_v62  ;;  %v2505_v26 = vsel %vm2502_vm3, %v2504_v33, %v2500_v38  ;;  %v5935_v62 = vld [vmem:[#allocation57_spill] sm:$0xff] }
 0x52a   :  { %v2526_v50 = vmul.f32 %v2505_v26, %v2485_v47  ;;  %v5942_v33 = vld [vmem:[#allocation65_spill] sm:$0xff]  ;;  %v5944_v47 = vld [vmem:[#allocation70_spill] sm:$0xff]  ;;  %v5947_v26 = vld [vmem:[#allocation71_spill] sm:$0xff] }
 0x52b   :  { %2546 = vmatmul.bf16.vlgmr.msra.gmra.mxu3 %v5172_v2  ;;  %2559 = vmatmul.bf16.vlgmr.msra.gmra.mxu0 %v5172_v2  ;;  %v2514_v12 = vmul.f32 %v3737_v31, %v2513_v3  ;;  %v5943_v3 = vld [vmem:[#allocation67_spill] sm:$0xff]  ;;  %v5945_v38 = vld [vmem:[#allocation81_spill] sm:$0xff] }
 0x52c   :  { %2572 = vmatmul.bf16.vlgmr.msra.gmra.mxu1 %v5172_v2  ;;  %2634 = vmatmul.bf16.vlgmr.msra.gmra.mxu2 %v5172_v2  ;;  %v2527_v22 = vadd.f32 %v2526_v50, %v2459_v14  ;;  %v5946_v14 = vld [vmem:[#allocation69_spill] sm:$0xff]  ;;  %v5950_v50 = vld [vmem:[#allocation74_spill] sm:$0xff] }
 0x52d   :  { %v2486_v13 = vpop.f32.mrf.mxu2  ;;  %2691 = vmatpush.bf16.msra.mxu3 %v4331_v37  ;;  %2704 = vmatpush.bf16.msra.mxu0 %v5617_v17  ;;  %v2515_v58 = vadd.f32 %v3737_v31, %v2514_v12  ;;  %v5948_v12 = vld [vmem:[#allocation75_spill] sm:$0xff] }
 0x52e   :  { %2717 = vmatpush.bf16.msra.mxu1 %v5618_v27  ;;  %2778 = vmatpush.bf16.msra.mxu2 %v5869_v28  ;;  %3738 = vtanh.f32 %v2527_v22  ;;  %v5951_v13 = vld [vmem:[#allocation76_spill] sm:$0xff]  ;;  %v5954_v22 = vld [vmem:[#allocation78_spill] sm:$0xff] }
 0x52f   :  { %v2519_v15 = vsel %vm2518_vm6, %v3737_v31, %v2515_v58  ;;  %v5953_v58 = vld [vmem:[#allocation88_spill] sm:$0xff] }
 0x530   :  { %v2524_v55 = vsel %vm2521_vm7, %v2523_v10, %v2519_v15  ;;  %v5955_v10 = vld [vmem:[#allocation80_spill] sm:$0xff] }
 0x531   :  { %2692 = vmatpush.bf16.msra.mxu3 %v4343_v49  ;;  %2705 = vmatpush.bf16.msra.mxu0 %v5620_v34  ;;  %v2529_v61 = vsub.f32 1.0, %v2524_v55  ;;  %v2531_v39 = vmul.f32 %v2524_v55, %v5073_v1  ;;  %v5956_v15 = vld [vmem:[#allocation84_spill] sm:$0xff]  ;;  %v5957_v55 = vld [vmem:[#allocation89_spill] sm:$0xff] }
 0x532   :  { %2718 = vmatpush.bf16.msra.mxu1 %v5621_v20  ;;  %2779 = vmatpush.bf16.msra.mxu2 %v5874_v45 }
 0x534   :  { %v3739_v28 = vpop.eup %3738 }
 0x535   :  { %2693 = vmatpush.bf16.msra.mxu3 %v4353_v18  ;;  %2706 = vmatpush.bf16.msra.mxu0 %v5623_v25  ;;  %v2530_v44 = vmul.f32 %v3739_v28, %v2529_v61  ;;  %v5958_v61 = vld [vmem:[#allocation83_spill] sm:$0xff]  ;;  %v5959_v28 = vld [vmem:[#allocation85_spill] sm:$0xff] }
 0x536   :  { %2719 = vmatpush.bf16.msra.mxu1 %v5624_v8  ;;  %2780 = vmatpush.bf16.msra.mxu2 %v5878_v29  ;;  %v5930_v29 = vld [vmem:[#allocation52_spill] sm:$0xff] }
 0x537   :  { %v5193_v31 = vadd.f32 %v2531_v39, %v2530_v44  ;;  %v5960_v44 = vld [vmem:[#allocation90_spill] sm:$0xff] }
 0x539   :  { %2694 = vmatpush.bf16.msra.mxu3 %v5627_v51  ;;  %2707 = vmatpush.bf16.msra.mxu0 %v5628_v19  ;;  %v2625_v45 = vpack.c.bf16 %v5193_v31, %v5193_v31 }
 0x53a   :  { %2720 = vmatpush.bf16.msra.mxu1 %v5629_v23  ;;  %2781 = vmatpush.bf16.msra.mxu2 %v5882_v63  ;;  %v5931_v63 = vld [vmem:[#allocation64_spill] sm:$0xff] }
 0x53b   :  { %2660 = vmatmul.bf16.vlgmr.msrb.gmra.mxu0 %v5172_v2  ;;  %2647 = vmatmul.bf16.vlgmr.msrb.gmra.mxu3 %v2625_v45 }
 0x53c   :  { %2686 = vmatmul.bf16.vlgmr.msrb.gmra.mxu2 %v5172_v2  ;;  %2673 = vmatmul.bf16.vlgmr.msrb.gmra.mxu1 %v2625_v45 }
 0x53d   :  { %2695 = vmatpush.bf16.msra.mxu3 %v4373_v32  ;;  %2708 = vmatpush.bf16.msra.mxu0 %v5631_v40 }
 0x53e   :  { %2721 = vmatpush.bf16.msra.mxu1 %v5632_v7  ;;  %2782 = vmatpush.bf16.msra.mxu2 %v5886_v21  ;;  %v5932_v21 = vld [vmem:[#allocation55_spill] sm:$0xff] }
 0x541   :  { %2696 = vmatpush.bf16.msra.mxu3 %v4385_v11  ;;  %2709 = vmatpush.bf16.msra.mxu0 %v4387_v0 }
 0x542   :  { %2722 = vmatpush.bf16.msra.mxu1 %v4390_v57  ;;  %2783 = vmatpush.bf16.msra.mxu2 %v5890_v52  ;;  %v5933_v52 = vld [vmem:[#allocation68_spill] sm:$0xff] }
 0x545   :  { %2697 = vmatpush.bf16.msra.mxu3 %v4395_v4  ;;  %2710 = vmatpush.bf16.msra.mxu0 %v4397_v43 }
 0x546   :  { %2723 = vmatpush.bf16.msra.mxu1 %v4400_v5  ;;  %2784 = vmatpush.bf16.msra.mxu2 %v5894_v46  ;;  %v5934_v46 = vld [vmem:[#allocation54_spill] sm:$0xff] }
 0x549   :  { %2698 = vmatpush.bf16.msra.mxu3 %v4405_v48  ;;  %2711 = vmatpush.bf16.msra.mxu0 %v4407_v24 }
 0x54a   :  { %2724 = vmatpush.bf16.msra.mxu1 %v4410_v41  ;;  %2785 = vmatpush.bf16.msra.mxu2 %v5931_v63 }
 0x54c   :  { %2699 = vmatmul.bf16.vlgmr.msra.gmra.mxu3 %v2625_v45  ;;  %2712 = vmatmul.bf16.vlgmr.msra.gmra.mxu0 %v5172_v2  ;;  %v5940_v2 = vld [vmem:[#allocation66_spill] sm:$0xff] }
 0x54d   :  { %2804 = vmatpush.bf16.msrb.mxu0 %v5898_v60  ;;  %2791 = vmatpush.bf16.msrb.mxu3 %v5872_v59  ;;  %v5937_v60 = vld [vmem:[#allocation72_spill] sm:$0xff] }
 0x54e   :  { %2817 = vmatpush.bf16.msrb.mxu1 %v5930_v29  ;;  %2830 = vmatpush.bf16.msrb.mxu2 %v5933_v52  ;;  %v5938_v59 = vld [vmem:[#allocation60_spill] sm:$0xff]  ;;  %v5966_v52 = vld [vmem:[#allocation42_spill] sm:$0xff] }
 0x54f   :  { %2725 = vmatmul.bf16.vlgmr.msra.gmra.mxu1 %v2625_v45 }
 0x551   :  { %2805 = vmatpush.bf16.msrb.mxu0 %v5932_v21  ;;  %2792 = vmatpush.bf16.msrb.mxu3 %v5934_v46 }
 0x552   :  { %2818 = vmatpush.bf16.msrb.mxu1 %v5935_v62  ;;  %2831 = vmatpush.bf16.msrb.mxu2 %v5937_v60 }
 0x555   :  { %2806 = vmatpush.bf16.msrb.mxu0 %v5936_v9  ;;  %2793 = vmatpush.bf16.msrb.mxu3 %v5938_v59 }
 0x556   :  { %2819 = vmatpush.bf16.msrb.mxu1 %v5939_v35  ;;  %2832 = vmatpush.bf16.msrb.mxu2 %v5941_v56 }
 0x559   :  { %2807 = vmatpush.bf16.msrb.mxu0 %v5940_v2  ;;  %2794 = vmatpush.bf16.msrb.mxu3 %v5942_v33 }
 0x55a   :  { %2820 = vmatpush.bf16.msrb.mxu1 %v5943_v3  ;;  %2833 = vmatpush.bf16.msrb.mxu2 %v5945_v38 }
 0x55d   :  { %2808 = vmatpush.bf16.msrb.mxu0 %v5944_v47  ;;  %2795 = vmatpush.bf16.msrb.mxu3 %v5946_v14 }
 0x55e   :  { %2821 = vmatpush.bf16.msrb.mxu1 %v5947_v26  ;;  %2834 = vmatpush.bf16.msrb.mxu2 %v5949_v16 }
 0x561   :  { %2809 = vmatpush.bf16.msrb.mxu0 %v5948_v12  ;;  %2796 = vmatpush.bf16.msrb.mxu3 %v5950_v50 }
 0x562   :  { %2822 = vmatpush.bf16.msrb.mxu1 %v5951_v13  ;;  %2835 = vmatpush.bf16.msrb.mxu2 %v5953_v58 }
 0x565   :  { %2810 = vmatpush.bf16.msrb.mxu0 %v5952_v53  ;;  %2797 = vmatpush.bf16.msrb.mxu3 %v5954_v22 }
 0x566   :  { %2823 = vmatpush.bf16.msrb.mxu1 %v5955_v10  ;;  %2836 = vmatpush.bf16.msrb.mxu2 %v5957_v55 }
 0x569   :  { %2811 = vmatpush.bf16.msrb.mxu0 %v5956_v15  ;;  %2798 = vmatpush.bf16.msrb.mxu3 %v5958_v61 }
 0x56a   :  { %2824 = vmatpush.bf16.msrb.mxu1 %v5959_v28  ;;  %2837 = vmatpush.bf16.msrb.mxu2 %v5960_v44 }
 0x56d   :  { %2856 = vmatpush.bf16.msra.mxu0 %v5617_v17  ;;  %2843 = vmatpush.bf16.msra.mxu3 %v4331_v37  ;;  %v5961_v37 = vld [vmem:[#allocation56_spill] sm:$0xff] }
 0x56e   :  { %2869 = vmatpush.bf16.msra.mxu1 %v5618_v27  ;;  %v5964_v27 = vld [vmem:[#allocation82_spill] sm:$0xff] }
 0x571   :  { %2857 = vmatpush.bf16.msra.mxu0 %v5620_v34  ;;  %2844 = vmatpush.bf16.msra.mxu3 %v4343_v49  ;;  %v5962_v49 = vld [vmem:[#allocation113_spill] sm:$0xff] }
 0x572   :  { %2870 = vmatpush.bf16.msra.mxu1 %v5621_v20 }
 0x575   :  { %2858 = vmatpush.bf16.msra.mxu0 %v5623_v25  ;;  %2845 = vmatpush.bf16.msra.mxu3 %v4353_v18  ;;  %v379_v18 = vadd.f32 %v5962_v49, %v5961_v37 }
 0x576   :  { %2871 = vmatpush.bf16.msra.mxu1 %v5624_v8 }
 0x579   :  { %2859 = vmatpush.bf16.msra.mxu0 %v5628_v19  ;;  %2846 = vmatpush.bf16.msra.mxu3 %v5627_v51 }
 0x57a   :  { %2872 = vmatpush.bf16.msra.mxu1 %v5629_v23 }
 0x57d   :  { %2860 = vmatpush.bf16.msra.mxu0 %v5631_v40  ;;  %2847 = vmatpush.bf16.msra.mxu3 %v4373_v32  ;;  %v5965_v40 = vld [vmem:[#allocation115_spill] sm:$0xff] }
 0x57e   :  { %2873 = vmatpush.bf16.msra.mxu1 %v5632_v7 }
 0x581   :  { %2861 = vmatpush.bf16.msra.mxu0 %v4387_v0  ;;  %2848 = vmatpush.bf16.msra.mxu3 %v4385_v11 }
 0x582   :  { %2874 = vmatpush.bf16.msra.mxu1 %v4390_v57  ;;  %v5963_v57 = vld [vmem:[#allocation43_spill] sm:$0xff] }
 0x585   :  { %2862 = vmatpush.bf16.msra.mxu0 %v4397_v43  ;;  %2849 = vmatpush.bf16.msra.mxu3 %v4395_v4  ;;  %v350_v43 = vadd.f32 %v5964_v27, %v5963_v57 }
 0x586   :  { %2875 = vmatpush.bf16.msra.mxu1 %v4400_v5 }
 0x589   :  { %2863 = vmatpush.bf16.msra.mxu0 %v4407_v24  ;;  %2850 = vmatpush.bf16.msra.mxu3 %v4405_v48 }
 0x58a   :  { %2876 = vmatpush.bf16.msra.mxu1 %v4410_v41 }
 0x5a8   :  { %v2560_v32 = vpop.f32.mrf.mxu0 }
 0x5a9   :  { %v2597_v0 = vadd.f32 %v2560_v32, %v379_v18  ;;  %v2573_v11 = vpop.f32.mrf.mxu1  ;;  %v5967_v32 = vld [vmem:[#allocation114_spill] sm:$0xff] }
 0x5aa   :  { %v2617_v61 = vadd.f32 %v5041_v42, %v2573_v11 }
 0x5ab   :  { %v3471_v17 = vmul.f32 -1.442695, %v2597_v0  ;;  %v408_v0 = vadd.f32 %v5967_v32, %v5867_v30 }
 0x5ad   :  { %3740 = vpow2.f32 %v3471_v17 }
 0x5ae   :  { %v2547_v4 = vpop.f32.mrf.mxu3 }
 0x5af   :  { %v2577_v34 = vadd.f32 %v2547_v4, %v350_v43  ;;  %v2635_v5 = vpop.f32.mrf.mxu2 }
 0x5b0   :  { %v2562_v20 = vpop.f32.mrf.mxu0  ;;  %v2636_v46 = vadd.f32 %v2635_v5, %v5966_v52 }
 0x5b1   :  { %v3470_v24 = vmul.f32 -1.442695, %v2577_v34  ;;  %v2575_v25 = vpop.f32.mrf.mxu1 }
 0x5b3   :  { %v3741_v48 = vpop.eup %3740  ;;  %3742 = vpow2.f32 %v3470_v24 }
 0x5b4   :  { %v5280_v41 = vadd.f32 1.0, %v3741_v48 }
 0x5b6   :  { %v2549_v8 = vpop.f32.mrf.mxu3  ;;  %3744 = vrcp.f32 %v5280_v41  ;;  %v2613_v17 = vand.u32 2147483648, %v5280_v41  ;;  %vm2607_vm13 = vweird.f32 %v5280_v41  ;;  %v2611_v27 = vand.u32 2147483647, %v5280_v41 }
 0x5b7   :  { %v2637_v51 = vpop.f32.mrf.mxu2 }
 0x5b8   :  { %v2661_v19 = vpop.f32.mrf.mxu0  ;;  %v2614_v34 = vor.u32 1.1754944e-38, %v2613_v17  ;;  %vm2612_vm15 = vcmp.eq.f32.partialorder %v2611_v27, 8.507059e+37 }
 0x5b9   :  { %v3743_v23 = vpop.eup %3742  ;;  %v2662_v7 = vadd.f32 %v2661_v19, %v5965_v40  ;;  %v2674_v45 = vpop.f32.mrf.mxu1 }
 0x5ba   :  { %v2581_v39 = vadd.f32 1.0, %v3743_v23 }
 0x5bb   :  { %v2675_v29 = vadd.f32 %v2674_v45, %v2662_v7 }
 0x5bc   :  { %3746 = vrcp.f32 %v2581_v39  ;;  %v3745_v63 = vpop.eup %3744  ;;  %v2593_v26 = vand.u32 2147483648, %v2581_v39  ;;  %v2591_v50 = vand.u32 2147483647, %v2581_v39  ;;  %vm2587_vm9 = vweird.f32 %v2581_v39 }
 0x5bd   :  { %v3473_v21 = vmul.f32 -1.442695, %v2675_v29  ;;  %v2603_v9 = vmul.f32 %v3745_v63, %v5280_v41  ;;  %vm2608_vm12 = vweird.f32 %v3745_v63 }
 0x5be   :  { %v2648_v60 = vpop.f32.mrf.mxu3  ;;  %v2594_v10 = vor.u32 1.1754944e-38, %v2593_v26  ;;  %vm2592_vm11 = vcmp.eq.f32.partialorder %v2591_v50, 8.507059e+37  ;;  %vm2609_vm14 = vmor %vm2607_vm13, %vm2608_vm12 }
 0x5bf   :  { %3748 = vpow2.f32 %v3473_v21  ;;  %v5285_v62 = vpop.f32.mrf.mxu2  ;;  %v2649_v35 = vadd.f32 %v2648_v60, %v2636_v46  ;;  %v2604_v47 = vsub.f32 1.0, %v2603_v9 }
 0x5c0   :  { %v2663_v59 = vpop.f32.mrf.mxu0 }
 0x5c1   :  { %v2676_v56 = vpop.f32.mrf.mxu1  ;;  %v3472_v3 = vmul.f32 -1.442695, %v2649_v35  ;;  %v2605_v53 = vmul.f32 %v3745_v63, %v2604_v47 }
 0x5c2   :  { %v3747_v2 = vpop.eup %3746 }
 0x5c3   :  { %v2583_v33 = vmul.f32 %v3747_v2, %v2581_v39  ;;  %3750 = vpow2.f32 %v3472_v3  ;;  %vm2588_vm8 = vweird.f32 %v3747_v2  ;;  %v2606_v37 = vadd.f32 %v3745_v63, %v2605_v53 }
 0x5c4   :  { %vm2589_vm10 = vmor %vm2587_vm9, %vm2588_vm8 }
 0x5c5   :  { %v3749_v38 = vpop.eup %3748  ;;  %v2584_v14 = vsub.f32 1.0, %v2583_v33  ;;  %v2610_v4 = vsel %vm2609_vm14, %v3745_v63, %v2606_v37 }
 0x5c6   :  { %v5288_v12 = vadd.f32 1.0, %v3749_v38  ;;  %v2650_v58 = vpop.f32.mrf.mxu3  ;;  %v2615_v24 = vsel %vm2612_vm15, %v2614_v34, %v2610_v4 }
 0x5c7   :  { %v2585_v16 = vmul.f32 %v3747_v2, %v2584_v14  ;;  %v2689_v13 = vpop.f32.mrf.mxu2  ;;  %v2621_v51 = vsub.f32 1.0, %v2615_v24  ;;  %v2623_v45 = vmul.f32 %v2615_v24, %v5167_v6 }
 0x5c8   :  { %3752 = vrcp.f32 %v5288_v12  ;;  %v2764_v47 = vand.u32 2147483648, %v5288_v12  ;;  %vm2758_vm5 = vweird.f32 %v5288_v12  ;;  %v2762_v26 = vand.u32 2147483647, %v5288_v12 }
 0x5c9   :  { %v2586_v22 = vadd.f32 %v3747_v2, %v2585_v16  ;;  %v2713_v15 = vpop.f32.mrf.mxu0  ;;  %v3751_v55 = vpop.eup %3750 }
 0x5ca   :  { %v2733_v18 = vadd.f32 1.0, %v3751_v55  ;;  %v2714_v29 = vadd.f32 %v2713_v15, %v4522_v36  ;;  %vm2763_vm7 = vcmp.eq.f32.partialorder %v2762_v26, 8.507059e+37 }
 0x5cb   :  { %v2590_v28 = vsel %vm2589_vm10, %v3747_v2, %v2586_v22  ;;  %v2688_v2 = vadd.f32 %v5285_v62, %v4525_v54  ;;  %v2765_v62 = vor.u32 1.1754944e-38, %v2764_v47  ;;  %v2936_v47 = vld [vmem:[#allocation4 + $0x10] sm:$0xff] }
 0x5cc   :  { %v2726_v44 = vpop.f32.mrf.mxu1  ;;  %v2595_v49 = vsel %vm2592_vm11, %v2594_v10, %v2590_v28  ;;  %3754 = vrcp.f32 %v2733_v18  ;;  %v2745_v23 = vand.u32 2147483648, %v2733_v18  ;;  %v2743_v21 = vand.u32 2147483647, %v2733_v18 }
 0x5cd   :  { %v2618_v57 = vmul.f32 %v2617_v61, %v2595_v49  ;;  %vm2739_vm1 = vweird.f32 %v2733_v18  ;;  %v2727_v56 = vadd.f32 %v2726_v44, %v2714_v29 }
 0x5ce   :  { %v3753_v43 = vpop.eup %3752  ;;  %v2746_v59 = vor.u32 1.1754944e-38, %v2745_v23  ;;  %vm2744_vm3 = vcmp.eq.f32.partialorder %v2743_v21, 8.507059e+37 }
 0x5cf   :  { %v2619_v42 = vadd.f32 %v2618_v57, %v408_v0  ;;  %v2700_v11 = vpop.f32.mrf.mxu3  ;;  %v2754_v5 = vmul.f32 %v3753_v43, %v5288_v12  ;;  %vm2759_vm4 = vweird.f32 %v3753_v43 }
 0x5d0   :  { %v2701_v14 = vadd.f32 %v2700_v11, %v2688_v2  ;;  %vm2760_vm6 = vmor %vm2758_vm5, %vm2759_vm4 }
 0x5d1   :  { %3756 = vtanh.f32 %v2619_v42  ;;  %v2715_v20 = vpop.f32.mrf.mxu0  ;;  %v2755_v8 = vsub.f32 1.0, %v2754_v5 }
 0x5d2   :  { %v3755_v25 = vpop.eup %3754 }
 0x5d3   :  { %v2735_v48 = vmul.f32 %v3755_v25, %v2733_v18  ;;  %vm2740_vm0 = vweird.f32 %v3755_v25  ;;  %v2756_v46 = vmul.f32 %v3753_v43, %v2755_v8 }
 0x5d4   :  { %v2728_v30 = vpop.f32.mrf.mxu1  ;;  %vm2741_vm2 = vmor %vm2739_vm1, %vm2740_vm0 }
 0x5d5   :  { %v2736_v41 = vsub.f32 1.0, %v2735_v48  ;;  %v2757_v3 = vadd.f32 %v3753_v43, %v2756_v46 }
 0x5d7   :  { %v3757_v19 = vpop.eup %3756  ;;  %v2702_v7 = vpop.f32.mrf.mxu3  ;;  %v2737_v63 = vmul.f32 %v3755_v25, %v2736_v41  ;;  %v2761_v50 = vsel %vm2760_vm6, %v3753_v43, %v2757_v3  ;;  %v2929_v3 = vld [vmem:[#allocation4] sm:$0xff] }
 0x5d8   :  { %v2622_v39 = vmul.f32 %v3757_v19, %v2621_v51  ;;  %v2766_v13 = vsel %vm2763_vm7, %v2765_v62, %v2761_v50 }
 0x5d9   :  { %v2738_v60 = vadd.f32 %v3755_v25, %v2737_v63  ;;  %v2771_v53 = vsub.f32 1.0, %v2766_v13  ;;  %v2773_v10 = vmul.f32 %v2766_v13, %v5193_v31  ;;  %v2940_v13 = vld [vmem:[#allocation4 + $0x18] sm:$0xff] }
 0x5da   :  { %v2624_v9 = vadd.f32 %v2623_v45, %v2622_v39 }
 0x5db   :  { %v2742_v33 = vsel %vm2741_vm2, %v3755_v25, %v2738_v60 }
 0x5dc   :  { %v2776_v35 = vpack.c.bf16 %v2624_v9, %v2624_v9  ;;  %v2747_v6 = vsel %vm2744_vm3, %v2746_v59, %v2742_v33  ;;  %v2932_v59 = vld [vmem:[#allocation4 + $0x8] sm:$0xff] }
 0x5dd   :  { %v2768_v38 = vmul.f32 %v2747_v6, %v2727_v56 }
 0x5de   :  { %2786 = vmatmul.bf16.vlgmr.msra.gmra.mxu2 %v2776_v35  ;;  %2812 = vmatmul.bf16.vlgmr.msrb.gmra.mxu0 %v2776_v35 }
 0x5df   :  { %v2769_v16 = vadd.f32 %v2768_v38, %v2701_v14 }
 0x5e1   :  { %3758 = vtanh.f32 %v2769_v16  ;;  %v5968_v16 = vld [vmem:[#allocation93_spill] sm:$0xff] }
 0x5e7   :  { %v3759_v58 = vpop.eup %3758 }
 0x5e8   :  { %v2772_v22 = vmul.f32 %v3759_v58, %v2771_v53  ;;  %v5969_v53 = vld [vmem:[#allocation91_spill] sm:$0xff]  ;;  %v5970_v58 = vld [vmem:[#allocation21_spill] sm:$0xff] }
 0x5ea   :  { %v5306_v15 = vadd.f32 %v2773_v10, %v2772_v22  ;;  %v2937_v22 = vmul.f32 %v2936_v47, %v5970_v58 }
 0x5ec   :  { %v2777_v55 = vpack.c.bf16 %v5306_v15, %v5306_v15 }
 0x5ee   :  { %2838 = vmatmul.bf16.vlgmr.msrb.gmra.mxu2 %v2776_v35  ;;  %2864 = vmatmul.bf16.vlgmr.msra.gmra.mxu0 %v2776_v35 }
 0x5ef   :  { %2799 = vmatmul.bf16.vlgmr.msrb.gmra.mxu3 %v2777_v55  ;;  %2825 = vmatmul.bf16.vlgmr.msrb.gmra.mxu1 %v2777_v55 }
 0x5ff   :  { %2851 = vmatmul.bf16.vlgmr.msra.gmra.mxu3 %v2777_v55  ;;  %2877 = vmatmul.bf16.vlgmr.msra.gmra.mxu1 %v2777_v55 }
 0x65b   :  { %v2813_v12 = vpop.f32.mrf.mxu0 }
 0x65c   :  { %v2814_v49 = vadd.f32 %v2813_v12, %v5965_v40  ;;  %v2944_v12 = vld [vmem:[#allocation4 + $0x20] sm:$0xff] }
 0x661   :  { %v2787_v61 = vpop.f32.mrf.mxu2 }
 0x662   :  { %v2788_v57 = vadd.f32 %v2787_v61, %v5966_v52 }
 0x663   :  { %v2815_v28 = vpop.f32.mrf.mxu0 }
 0x664   :  { %v5971_v28 = vld [vmem:[#allocation94_spill] sm:$0xff] }
 0x669   :  { %v2789_v44 = vpop.f32.mrf.mxu2 }
 0x66a   :  { %v2941_v44 = vmul.f32 %v2940_v13, %v5971_v28 }
 0x66b   :  { %v2865_v37 = vpop.f32.mrf.mxu0 }
 0x66c   :  { %v2826_v18 = vpop.f32.mrf.mxu1  ;;  %v2866_v46 = vadd.f32 %v2865_v37, %v4522_v36  ;;  %v2933_v36 = vmul.f32 %v2932_v59, %v5968_v16 }
 0x66d   :  { %v2827_v32 = vadd.f32 %v2826_v18, %v2814_v49  ;;  %v2948_v49 = vld [vmem:[#allocation4 + $0x28] sm:$0xff] }
 0x66f   :  { %v3475_v0 = vmul.f32 -1.442695, %v2827_v32  ;;  %v2945_v32 = vmul.f32 %v2944_v12, %v5073_v1 }
 0x671   :  { %v2839_v17 = vpop.f32.mrf.mxu2  ;;  %3760 = vpow2.f32 %v3475_v0  ;;  %v2952_v0 = vld [vmem:[#allocation4 + $0x30] sm:$0xff] }
 0x672   :  { %v2800_v27 = vpop.f32.mrf.mxu3  ;;  %v2840_v35 = vadd.f32 %v2839_v17, %v4525_v54  ;;  %v2930_v54 = vmul.f32 %v2929_v3, %v5969_v53 }
 0x673   :  { %v2867_v43 = vpop.f32.mrf.mxu0  ;;  %v2801_v42 = vadd.f32 %v2800_v27, %v2788_v57  ;;  %v2949_v27 = vmul.f32 %v2948_v49, %v5193_v31 }
 0x674   :  { %v2828_v11 = vpop.f32.mrf.mxu1  ;;  %v2934_v61 = vadd.f32 %v2933_v36, %v2930_v54 }
 0x675   :  { %v3474_v4 = vmul.f32 -1.442695, %v2801_v42 }
 0x676   :  { %v2938_v18 = vadd.f32 %v2937_v22, %v2934_v61 }
 0x677   :  { %v3761_v34 = vpop.eup %3760  ;;  %3762 = vpow2.f32 %v3474_v4 }
 0x678   :  { %v2904_v5 = vadd.f32 1.0, %v3761_v34  ;;  %v2942_v57 = vadd.f32 %v2941_v44, %v2938_v18  ;;  %v2953_v34 = vmul.f32 %v2952_v0, %v5306_v15 }
 0x679   :  { %v2841_v20 = vpop.f32.mrf.mxu2 }
 0x67a   :  { %v2802_v30 = vpop.f32.mrf.mxu3  ;;  %3764 = vrcp.f32 %v2904_v5  ;;  %v2916_v38 = vand.u32 2147483648, %v2904_v5  ;;  %vm2910_vm13 = vweird.f32 %v2904_v5  ;;  %v2914_v50 = vand.u32 2147483647, %v2904_v5 }
 0x67b   :  { %v2946_v4 = vadd.f32 %v2945_v32, %v2942_v57 }
 0x67c   :  { %v2878_v24 = vpop.f32.mrf.mxu1  ;;  %v2917_v55 = vor.u32 1.1754944e-38, %v2916_v38  ;;  %vm2915_vm15 = vcmp.eq.f32.partialorder %v2914_v50, 8.507059e+37 }
 0x67d   :  { %v3763_v40 = vpop.eup %3762  ;;  %v2879_v2 = vadd.f32 %v2878_v24, %v2866_v46  ;;  %v2950_v30 = vadd.f32 %v2949_v27, %v2946_v4 }
 0x67e   :  { %v2885_v25 = vadd.f32 1.0, %v3763_v40 }
 0x67f   :  { %v2954_v1 = vadd.f32 %v2953_v34, %v2950_v30 }
 0x680   :  { %3766 = vrcp.f32 %v2885_v25  ;;  %v3765_v48 = vpop.eup %3764  ;;  %v2897_v39 = vand.u32 2147483648, %v2885_v25  ;;  %v2895_v63 = vand.u32 2147483647, %v2885_v25  ;;  %vm2891_vm9 = vweird.f32 %v2885_v25 }
 0x681   :  { %v2906_v51 = vmul.f32 %v3765_v48, %v2904_v5  ;;  %vm2911_vm12 = vweird.f32 %v3765_v48  ;;  %v2956_v5 = vld [vmem:[#allocation4 + $0x38] sm:$0xff] }
 0x682   :  { %v2852_v8 = vpop.f32.mrf.mxu3  ;;  %v2898_v60 = vor.u32 1.1754944e-38, %v2897_v39  ;;  %vm2896_vm11 = vcmp.eq.f32.partialorder %v2895_v63, 8.507059e+37  ;;  %vm2912_vm14 = vmor %vm2910_vm13, %vm2911_vm12 }
 0x683   :  { %v2907_v23 = vsub.f32 1.0, %v2906_v51  ;;  %v2853_v26 = vadd.f32 %v2852_v8, %v2840_v35 }
 0x684   :  { %v2880_v52 = vpop.f32.mrf.mxu1 }
 0x685   :  { %v2908_v21 = vmul.f32 %v3765_v48, %v2907_v23 }
 0x686   :  { %v3767_v19 = vpop.eup %3766 }
 0x687   :  { %v2887_v41 = vmul.f32 %v3767_v19, %v2885_v25  ;;  %vm2892_vm8 = vweird.f32 %v3767_v19  ;;  %v2909_v6 = vadd.f32 %v3765_v48, %v2908_v21 }
 0x688   :  { %vm2893_vm10 = vmor %vm2891_vm9, %vm2892_vm8 }
 0x689   :  { %v2888_v7 = vsub.f32 1.0, %v2887_v41  ;;  %v2913_v10 = vsel %vm2912_vm14, %v3765_v48, %v2909_v6 }
 0x68a   :  { %v2854_v45 = vpop.f32.mrf.mxu3  ;;  %v2918_v37 = vsel %vm2915_vm15, %v2917_v55, %v2913_v10 }
 0x68b   :  { %v2889_v29 = vmul.f32 %v3767_v19, %v2888_v7  ;;  %v2923_v17 = vsub.f32 1.0, %v2918_v37  ;;  %v2925_v11 = vmul.f32 %v2918_v37, %v5306_v15 }
 0x68d   :  { %v2890_v9 = vadd.f32 %v3767_v19, %v2889_v29 }
 0x68f   :  { %v2894_v56 = vsel %vm2893_vm10, %v3767_v19, %v2890_v9 }
 0x690   :  { %v2899_v33 = vsel %vm2896_vm11, %v2898_v60, %v2894_v56 }
 0x691   :  { %v2920_v14 = vmul.f32 %v2899_v33, %v2879_v2 }
 0x693   :  { %v2921_v62 = vadd.f32 %v2920_v14, %v2853_v26 }
 0x695   :  { %3768 = vtanh.f32 %v2921_v62 }
 0x69b   :  { %v3769_v43 = vpop.eup %3768 }
 0x69c   :  { %v2924_v42 = vmul.f32 %v3769_v43, %v2923_v17 }
 0x69e   :  { %v2926_v20 = vadd.f32 %v2925_v11, %v2924_v42 }
 0x6a0   :  { %v2957_v24 = vmul.f32 %v2956_v5, %v2926_v20 }
 0x6a2   :  { %v2958_v40 = vadd.f32 %v2957_v24, %v2954_v1 }
 0x6a4   :  { %2959 = vst [vmem:[#allocation15] sm:$0xff] %v2958_v40 }
 0x6a5   :  { %2970 = dma.vmem_to_hbm [thread:$0]  %s2966_s21, 128, %s2968_s24, [#allocation6]  }
 0x6a6   :  { %3948 = dma.done.wait [#allocation6], 128  }
 0x6a7   :  { %3949 = vsyncadd [#allocation6], 4294967168 }
 0x6a8   :  { %2975 = vsyncpa [#allocation5], 1 }
 0x6a9   :  { %2976 = vsyncpa [#allocation8], 1 }
 0x6aa   :  { %2977 = vsyncpa [#allocation11], 1 }
 0x6ab   :  { %2978 = vsyncpa [#allocation14], 1 }
 0x6ac   :  { %2979 = vsyncpa [#allocation6], 1 }

</bundles_post_ra>
